<compile_context>
chip_gen: v7x
topology: tpu7x:2x2x1
jax: 0.10.0
libtpu: 0.0.40
codegen_flags: <defaults>
</compile_context>

<pallas_src>
import math
import jax
import jax.numpy as jnp
from jax.experimental import pallas as pl
from jax.experimental.pallas import tpu as pltpu

EMBED_DIM = 768          # fixed by the module (RoBERTa-base hidden size)
HIDDEN_DIM = 32
N_LAYERS = 2
BIDIRECTIONAL = True
OUTPUT_DIM = 2
VOCAB = 100
BATCH = 2
SEQ = 8

_GATE = 3 * HIDDEN_DIM   # 96  (r|z|n gate block of one direction)
_DIRBLK = 128            # per-direction gate block padded to one lane tile

_VMEM = pl.BlockSpec(memory_space=pltpu.MemorySpace.VMEM)


# ---------------------------------------------------------------------------
# In-kernel helper: one GRU direction's recurrence, given the hoisted input
# projection GI (= X @ W_ih^T + folded biases).  Only tiny (B,H)x(H,H) matmuls
# and gate math remain on the serial h-dependency chain.
# ---------------------------------------------------------------------------
def _gru_recurrence(gi, whh_ref, bhn_ref, *, T, B, reverse):
    """gi:      (T*B, 3H) f32 value, row t*B+b, columns [r|z|n]
       whh_ref: (3, H, H) pre-transposed recurrent weights, one per gate
       bhn_ref: (1, H)    b_hn (cannot be folded: it is scaled by r)
       Returns (list of per-timestep h in original time order, final h)."""
    H = HIDDEN_DIM
    gi_r = gi[:, 0:H]
    gi_z = gi[:, H:2 * H]
    gi_n = gi[:, 2 * H:3 * H]

    w_hr = whh_ref[0]                                  # (H, H)
    w_hz = whh_ref[1]
    w_hn = whh_ref[2]
    b_hn = jnp.broadcast_to(bhn_ref[...], (B, H))      # broadcast hoisted

    h = jnp.zeros((B, H), jnp.float32)                 # h0 made in-kernel
    ys = [None] * T
    steps = range(T - 1, -1, -1) if reverse else range(T)
    for t in steps:                                    # fully unrolled (T=8)
        s = t * B
        # Only these three tiny matmuls + gate math sit on the serial chain.
        hr = jnp.dot(h, w_hr, preferred_element_type=jnp.float32)
        hz = jnp.dot(h, w_hz, preferred_element_type=jnp.float32)
        hn = jnp.dot(h, w_hn, preferred_element_type=jnp.float32)
        r = jax.nn.sigmoid(gi_r[s:s + B, :] + hr)
        z = jax.nn.sigmoid(gi_z[s:s + B, :] + hz)
        n = jnp.tanh(gi_n[s:s + B, :] + r * (hn + b_hn))
        h = n + z * (h - n)                            # == (1-z)*n + z*h
        ys[t] = h
    return ys, h


# ---------------------------------------------------------------------------
# Fused kernel: GRU layer 0 (fwd+bwd) -> GRU layer 1 (fwd+bwd) -> head.
# ---------------------------------------------------------------------------
def _fused_kernel(x_ref,
                  wih0_ref, bgi0_ref, whhf0_ref, bhnf0_ref, whhb0_ref, bhnb0_ref,
                  wih1_ref, bgi1_ref, whhf1_ref, bhnf1_ref, whhb1_ref, bhnb1_ref,
                  w1_ref, b1_ref, w2_ref, b2_ref,
                  out_ref):
    B = out_ref.shape[0]
    T = x_ref.shape[0] // B
    G = _GATE

    # ---- GRU layer 0: ONE fused (fwd|bwd) input projection, bf16 ops / f32 acc
    gi0 = (jnp.dot(x_ref[...], wih0_ref[...], preferred_element_type=jnp.float32)
           + bgi0_ref[...])                            # (T*B, 2*_DIRBLK) f32
    ys_f0, _ = _gru_recurrence(gi0[:, 0:G], whhf0_ref, bhnf0_ref,
                               T=T, B=B, reverse=False)
    ys_b0, _ = _gru_recurrence(gi0[:, _DIRBLK:_DIRBLK + G], whhb0_ref, bhnb0_ref,
                               T=T, B=B, reverse=True)

    # Next-layer input stays resident (values / VMEM), never round-trips HBM.
    x1 = jnp.concatenate([jnp.concatenate(ys_f0, axis=0),
                          jnp.concatenate(ys_b0, axis=0)], axis=1)   # (T*B, 2H)

    # ---- GRU layer 1: again one fused (fwd|bwd) input projection -----------
    gi1 = (jnp.dot(x1, wih1_ref[...], preferred_element_type=jnp.float32)
           + bgi1_ref[...])                            # (T*B, 2*_DIRBLK) f32
    _, h_f1 = _gru_recurrence(gi1[:, 0:G], whhf1_ref, bhnf1_ref,
                              T=T, B=B, reverse=False)
    _, h_b1 = _gru_recurrence(gi1[:, _DIRBLK:_DIRBLK + G], whhb1_ref, bhnb1_ref,
                              T=T, B=B, reverse=True)

    # hidden = cat(hidden[-2], hidden[-1]); dropout = eval-mode identity.
    hidden = jnp.concatenate([h_f1, h_b1], axis=1)     # (B, 2H)

    # classifier head: linear2(relu(linear1(hidden)))
    z1 = (jnp.dot(hidden, w1_ref[...], preferred_element_type=jnp.float32)
          + b1_ref[...])
    a1 = jnp.maximum(z1, 0.0)
    out_ref[...] = (jnp.dot(a1, w2_ref[...], preferred_element_type=jnp.float32)
                    + b2_ref[...])


# ---------------------------------------------------------------------------
# Wrapper: PyTorch-layout params -> kernel layout (layout work done by XLA).
# ---------------------------------------------------------------------------
def _pack_layer(layer, ih_dtype):
    """Pack one GRU layer (both directions) for the kernel.
       Returns [wih_c (in, 2*_DIRBLK), bgi_c (1, 2*_DIRBLK),
                whh_fwd (3,H,H), bhn_fwd (1,H), whh_bwd (3,H,H), bhn_bwd (1,H)].
       wih_c columns: [fwd r|z|n | pad ... | bwd r|z|n | pad] so each direction's
       gate block starts on a 128-lane tile boundary."""
    H = HIDDEN_DIM
    blocks_w, blocks_b, whhs, bhns = [], [], [], []
    for direction in ("fwd", "bwd"):
        w_ih, w_hh, b_ih, b_hh = layer[direction]
        wt = jnp.pad(w_ih.T, ((0, 0), (0, _DIRBLK - 3 * H)))        # (in, 128)
        bg = jnp.concatenate([b_ih[0:H] + b_hh[0:H],                 # folded
                              b_ih[H:2 * H] + b_hh[H:2 * H],
                              b_ih[2 * H:3 * H],
                              jnp.zeros((_DIRBLK - 3 * H,), b_ih.dtype)])
        blocks_w.append(wt)
        blocks_b.append(bg)
        whhs.append(jnp.stack([w_hh[0:H, :].T,
                               w_hh[H:2 * H, :].T,
                               w_hh[2 * H:3 * H, :].T]))             # (3, H, H)
        bhns.append(b_hh[2 * H:3 * H].reshape(1, H))                 # (1, H)
    wih_c = jnp.concatenate(blocks_w, axis=1).astype(ih_dtype)       # (in, 256)
    bgi_c = jnp.concatenate(blocks_b).reshape(1, 2 * _DIRBLK)        # (1, 256)
    return [wih_c, bgi_c, whhs[0], bhns[0], whhs[1], bhns[1]]


def bert_gru_sentiment_forward(text, params):
    B, T = text.shape
    # attention_mask = text.masked_fill(text != 0, 1)
    mask = (text != 0).astype(jnp.float32)                           # (B, T)
    # TODO(synk): stand-in for frozen bert(text, attention_mask)[0] -> (B,T,768)
    embedded = params["emb_table"][text] * mask[:, :, None]

    # time-major, flattened: row t*B + b; bf16 operands for layer-0 projection.
    x_flat = (jnp.transpose(embedded, (1, 0, 2))
              .reshape(T * B, EMBED_DIM).astype(jnp.bfloat16))

    inputs = [x_flat]
    for li, layer in enumerate(params["gru"]):
        ih_dtype = jnp.bfloat16 if li == 0 else jnp.float32
        inputs.extend(_pack_layer(layer, ih_dtype))
    inputs.extend([params["w1"].T, params["b1"].reshape(1, -1),
                   params["w2"].T, params["b2"].reshape(1, -1)])

    return pl.pallas_call(
        _fused_kernel,
        out_shape=jax.ShapeDtypeStruct((B, OUTPUT_DIM), jnp.float32),
        in_specs=[_VMEM] * len(inputs),
        out_specs=_VMEM,
    )(*inputs)


# ---------------------------------------------------------------------------
# Deterministic parameter initialization (shapes match the nn.Module)
# ---------------------------------------------------------------------------
def init_params(key):
    keys = iter(jax.random.split(key, 64))
    params = {}

    params["emb_table"] = (
        0.02 * jax.random.normal(next(keys), (VOCAB, EMBED_DIM), jnp.float32))

    gru_layers = []
    k = 1.0 / math.sqrt(HIDDEN_DIM)
    for layer in range(N_LAYERS):
        in_dim = EMBED_DIM if layer == 0 else 2 * HIDDEN_DIM
        layer_p = {}
        for direction in ("fwd", "bwd"):
            w_ih = jax.random.uniform(next(keys), (3 * HIDDEN_DIM, in_dim),
                                      jnp.float32, -k, k)
            w_hh = jax.random.uniform(next(keys), (3 * HIDDEN_DIM, HIDDEN_DIM),
                                      jnp.float32, -k, k)
            b_ih = jax.random.uniform(next(keys), (3 * HIDDEN_DIM,),
                                      jnp.float32, -k, k)
            b_hh = jax.random.uniform(next(keys), (3 * HIDDEN_DIM,),
                                      jnp.float32, -k, k)
            layer_p[direction] = (w_ih, w_hh, b_ih, b_hh)
        gru_layers.append(layer_p)
    params["gru"] = gru_layers

    head_dim = 2 * HIDDEN_DIM if BIDIRECTIONAL else HIDDEN_DIM
    # linear1: kaiming_normal_(nonlinearity='relu') -> std = sqrt(2 / fan_in)
    params["w1"] = (math.sqrt(2.0 / head_dim)
                    * jax.random.normal(next(keys), (head_dim, head_dim),
                                        jnp.float32))
    params["b1"] = jax.random.uniform(next(keys), (head_dim,), jnp.float32,
                                      -1.0 / math.sqrt(head_dim),
                                      1.0 / math.sqrt(head_dim))
    # linear2: xavier_normal_ -> std = sqrt(2 / (fan_in + fan_out))
    params["w2"] = (math.sqrt(2.0 / (head_dim + OUTPUT_DIM))
                    * jax.random.normal(next(keys), (OUTPUT_DIM, head_dim),
                                        jnp.float32))
    params["b2"] = jax.random.uniform(next(keys), (OUTPUT_DIM,), jnp.float32,
                                      -1.0 / math.sqrt(head_dim),
                                      1.0 / math.sqrt(head_dim))
    return params


if __name__ == "__main__":
    key = jax.random.PRNGKey(0)
    k_param, k_text = jax.random.split(key)

    params = init_params(k_param)

    # token ids; zeros act as padding (mask = text != 0)
    text = jax.random.randint(k_text, (BATCH, SEQ), 1, VOCAB, dtype=jnp.int32)
    text = text.at[:, -2:].set(0)   # add some padding positions

    fwd = jax.jit(bert_gru_sentiment_forward)
    out = fwd(text, params)
    out = jax.block_until_ready(out)
    assert out.shape == (BATCH, OUTPUT_DIM)
    assert bool(jnp.all(jnp.isfinite(out)))
    print("KERNEL_OK")
</pallas_src>

<mosaic_0001>
module attributes {stable_mosaic.version = 11 : i64} {
  func.func @_fused_kernel(%arg0: memref<16x768xbf16, #tpu.memory_space<vmem>>, %arg1: memref<768x256xbf16, #tpu.memory_space<vmem>>, %arg2: memref<1x256xf32, #tpu.memory_space<vmem>>, %arg3: memref<3x32x32xf32, #tpu.memory_space<vmem>>, %arg4: memref<1x32xf32, #tpu.memory_space<vmem>>, %arg5: memref<3x32x32xf32, #tpu.memory_space<vmem>>, %arg6: memref<1x32xf32, #tpu.memory_space<vmem>>, %arg7: memref<64x256xf32, #tpu.memory_space<vmem>>, %arg8: memref<1x256xf32, #tpu.memory_space<vmem>>, %arg9: memref<3x32x32xf32, #tpu.memory_space<vmem>>, %arg10: memref<1x32xf32, #tpu.memory_space<vmem>>, %arg11: memref<3x32x32xf32, #tpu.memory_space<vmem>>, %arg12: memref<1x32xf32, #tpu.memory_space<vmem>>, %arg13: memref<64x64xf32, #tpu.memory_space<vmem>>, %arg14: memref<1x64xf32, #tpu.memory_space<vmem>>, %arg15: memref<64x2xf32, #tpu.memory_space<vmem>>, %arg16: memref<1x2xf32, #tpu.memory_space<vmem>>, %arg17: memref<2x2xf32, #tpu.memory_space<vmem>>) attributes {dimension_semantics = [], scalar_prefetch = 0 : i64, scratch_operands = 0 : i64, tpu.core_type = #tpu.core_type<tc>} {
    %c0 = arith.constant 0 : index
    %c0_0 = arith.constant 0 : index
    %0 = vector.load %arg0[%c0, %c0_0] : memref<16x768xbf16, #tpu.memory_space<vmem>>, vector<16x768xbf16>
    %c0_1 = arith.constant 0 : index
    %c0_2 = arith.constant 0 : index
    %1 = vector.load %arg1[%c0_1, %c0_2] : memref<768x256xbf16, #tpu.memory_space<vmem>>, vector<768x256xbf16>
    %cst = arith.constant dense<0.000000e+00> : vector<16x256xf32>
    %2 = tpu.matmul %0, %1, %cst {dimension_numbers = #tpu.dot_dimension_numbers<[1], [0], [0], [1], [0, 0, 1, 1], [], []>} : vector<16x768xbf16>, vector<768x256xbf16>, vector<16x256xf32> -> vector<16x256xf32>
    %c0_3 = arith.constant 0 : index
    %c0_4 = arith.constant 0 : index
    %3 = vector.load %arg2[%c0_3, %c0_4] : memref<1x256xf32, #tpu.memory_space<vmem>>, vector<1x256xf32>
    %4 = vector.broadcast %3 : vector<1x256xf32> to vector<16x256xf32>
    %5 = arith.addf %2, %4 : vector<16x256xf32>
    %6 = vector.extract_strided_slice %5 {offsets = [0, 0], sizes = [16, 96], strides = [1, 1]} : vector<16x256xf32> to vector<16x96xf32>
    %7 = vector.extract_strided_slice %6 {offsets = [0, 0], sizes = [16, 32], strides = [1, 1]} : vector<16x96xf32> to vector<16x32xf32>
    %8 = vector.extract_strided_slice %6 {offsets = [0, 32], sizes = [16, 32], strides = [1, 1]} : vector<16x96xf32> to vector<16x32xf32>
    %9 = vector.extract_strided_slice %6 {offsets = [0, 64], sizes = [16, 32], strides = [1, 1]} : vector<16x96xf32> to vector<16x32xf32>
    %c0_5 = arith.constant 0 : index
    %c0_6 = arith.constant 0 : index
    %c0_7 = arith.constant 0 : index
    %10 = vector.load %arg3[%c0_5, %c0_6, %c0_7] : memref<3x32x32xf32, #tpu.memory_space<vmem>>, vector<1x32x32xf32>
    %11 = vector.shape_cast %10 : vector<1x32x32xf32> to vector<32x32xf32>
    %c1 = arith.constant 1 : index
    %c0_8 = arith.constant 0 : index
    %c0_9 = arith.constant 0 : index
    %12 = vector.load %arg3[%c1, %c0_8, %c0_9] : memref<3x32x32xf32, #tpu.memory_space<vmem>>, vector<1x32x32xf32>
    %13 = vector.shape_cast %12 : vector<1x32x32xf32> to vector<32x32xf32>
    %c2 = arith.constant 2 : index
    %c0_10 = arith.constant 0 : index
    %c0_11 = arith.constant 0 : index
    %14 = vector.load %arg3[%c2, %c0_10, %c0_11] : memref<3x32x32xf32, #tpu.memory_space<vmem>>, vector<1x32x32xf32>
    %15 = vector.shape_cast %14 : vector<1x32x32xf32> to vector<32x32xf32>
    %c0_12 = arith.constant 0 : index
    %c0_13 = arith.constant 0 : index
    %16 = vector.load %arg4[%c0_12, %c0_13] : memref<1x32xf32, #tpu.memory_space<vmem>>, vector<1x32xf32>
    %17 = vector.shape_cast %16 : vector<1x32xf32> to vector<1x32xf32>
    %18 = vector.broadcast %17 : vector<1x32xf32> to vector<2x32xf32>
    %cst_14 = arith.constant 0.000000e+00 : f32
    %19 = vector.broadcast %cst_14 : f32 to vector<2x32xf32>
    %cst_15 = arith.constant dense<0.000000e+00> : vector<2x32xf32>
    %20 = tpu.matmul %19, %11, %cst_15 {dimension_numbers = #tpu.dot_dimension_numbers<[1], [0], [0], [1], [0, 0, 1, 1], [], []>} : vector<2x32xf32>, vector<32x32xf32>, vector<2x32xf32> -> vector<2x32xf32>
    %cst_16 = arith.constant dense<0.000000e+00> : vector<2x32xf32>
    %21 = tpu.matmul %19, %13, %cst_16 {dimension_numbers = #tpu.dot_dimension_numbers<[1], [0], [0], [1], [0, 0, 1, 1], [], []>} : vector<2x32xf32>, vector<32x32xf32>, vector<2x32xf32> -> vector<2x32xf32>
    %cst_17 = arith.constant dense<0.000000e+00> : vector<2x32xf32>
    %22 = tpu.matmul %19, %15, %cst_17 {dimension_numbers = #tpu.dot_dimension_numbers<[1], [0], [0], [1], [0, 0, 1, 1], [], []>} : vector<2x32xf32>, vector<32x32xf32>, vector<2x32xf32> -> vector<2x32xf32>
    %23 = vector.extract_strided_slice %7 {offsets = [0, 0], sizes = [2, 32], strides = [1, 1]} : vector<16x32xf32> to vector<2x32xf32>
    %24 = arith.addf %23, %20 : vector<2x32xf32>
    %25 = arith.negf %24 : vector<2x32xf32>
    %26 = math.exp %25 : vector<2x32xf32>
    %cst_18 = arith.constant 1.000000e+00 : f32
    %27 = vector.broadcast %cst_18 : f32 to vector<2x32xf32>
    %28 = arith.addf %27, %26 : vector<2x32xf32>
    %29 = arith.divf %27, %28 : vector<2x32xf32>
    %30 = vector.extract_strided_slice %8 {offsets = [0, 0], sizes = [2, 32], strides = [1, 1]} : vector<16x32xf32> to vector<2x32xf32>
    %31 = arith.addf %30, %21 : vector<2x32xf32>
    %32 = arith.negf %31 : vector<2x32xf32>
    %33 = math.exp %32 : vector<2x32xf32>
    %cst_19 = arith.constant 1.000000e+00 : f32
    %34 = vector.broadcast %cst_19 : f32 to vector<2x32xf32>
    %35 = arith.addf %34, %33 : vector<2x32xf32>
    %36 = arith.divf %34, %35 : vector<2x32xf32>
    %37 = vector.extract_strided_slice %9 {offsets = [0, 0], sizes = [2, 32], strides = [1, 1]} : vector<16x32xf32> to vector<2x32xf32>
    %38 = arith.addf %22, %18 : vector<2x32xf32>
    %39 = arith.mulf %29, %38 : vector<2x32xf32>
    %40 = arith.addf %37, %39 : vector<2x32xf32>
    %41 = math.tanh %40 : vector<2x32xf32>
    %42 = arith.subf %19, %41 : vector<2x32xf32>
    %43 = arith.mulf %36, %42 : vector<2x32xf32>
    %44 = arith.addf %41, %43 : vector<2x32xf32>
    %cst_20 = arith.constant dense<0.000000e+00> : vector<2x32xf32>
    %45 = tpu.matmul %44, %11, %cst_20 {dimension_numbers = #tpu.dot_dimension_numbers<[1], [0], [0], [1], [0, 0, 1, 1], [], []>} : vector<2x32xf32>, vector<32x32xf32>, vector<2x32xf32> -> vector<2x32xf32>
    %cst_21 = arith.constant dense<0.000000e+00> : vector<2x32xf32>
    %46 = tpu.matmul %44, %13, %cst_21 {dimension_numbers = #tpu.dot_dimension_numbers<[1], [0], [0], [1], [0, 0, 1, 1], [], []>} : vector<2x32xf32>, vector<32x32xf32>, vector<2x32xf32> -> vector<2x32xf32>
    %cst_22 = arith.constant dense<0.000000e+00> : vector<2x32xf32>
    %47 = tpu.matmul %44, %15, %cst_22 {dimension_numbers = #tpu.dot_dimension_numbers<[1], [0], [0], [1], [0, 0, 1, 1], [], []>} : vector<2x32xf32>, vector<32x32xf32>, vector<2x32xf32> -> vector<2x32xf32>
    %48 = vector.extract_strided_slice %7 {offsets = [2, 0], sizes = [2, 32], strides = [1, 1]} : vector<16x32xf32> to vector<2x32xf32>
    %49 = arith.addf %48, %45 : vector<2x32xf32>
    %50 = arith.negf %49 : vector<2x32xf32>
    %51 = math.exp %50 : vector<2x32xf32>
    %cst_23 = arith.constant 1.000000e+00 : f32
    %52 = vector.broadcast %cst_23 : f32 to vector<2x32xf32>
    %53 = arith.addf %52, %51 : vector<2x32xf32>
    %54 = arith.divf %52, %53 : vector<2x32xf32>
    %55 = vector.extract_strided_slice %8 {offsets = [2, 0], sizes = [2, 32], strides = [1, 1]} : vector<16x32xf32> to vector<2x32xf32>
    %56 = arith.addf %55, %46 : vector<2x32xf32>
    %57 = arith.negf %56 : vector<2x32xf32>
    %58 = math.exp %57 : vector<2x32xf32>
    %cst_24 = arith.constant 1.000000e+00 : f32
    %59 = vector.broadcast %cst_24 : f32 to vector<2x32xf32>
    %60 = arith.addf %59, %58 : vector<2x32xf32>
    %61 = arith.divf %59, %60 : vector<2x32xf32>
    %62 = vector.extract_strided_slice %9 {offsets = [2, 0], sizes = [2, 32], strides = [1, 1]} : vector<16x32xf32> to vector<2x32xf32>
    %63 = arith.addf %47, %18 : vector<2x32xf32>
    %64 = arith.mulf %54, %63 : vector<2x32xf32>
    %65 = arith.addf %62, %64 : vector<2x32xf32>
    %66 = math.tanh %65 : vector<2x32xf32>
    %67 = arith.subf %44, %66 : vector<2x32xf32>
    %68 = arith.mulf %61, %67 : vector<2x32xf32>
    %69 = arith.addf %66, %68 : vector<2x32xf32>
    %cst_25 = arith.constant dense<0.000000e+00> : vector<2x32xf32>
    %70 = tpu.matmul %69, %11, %cst_25 {dimension_numbers = #tpu.dot_dimension_numbers<[1], [0], [0], [1], [0, 0, 1, 1], [], []>} : vector<2x32xf32>, vector<32x32xf32>, vector<2x32xf32> -> vector<2x32xf32>
    %cst_26 = arith.constant dense<0.000000e+00> : vector<2x32xf32>
    %71 = tpu.matmul %69, %13, %cst_26 {dimension_numbers = #tpu.dot_dimension_numbers<[1], [0], [0], [1], [0, 0, 1, 1], [], []>} : vector<2x32xf32>, vector<32x32xf32>, vector<2x32xf32> -> vector<2x32xf32>
    %cst_27 = arith.constant dense<0.000000e+00> : vector<2x32xf32>
    %72 = tpu.matmul %69, %15, %cst_27 {dimension_numbers = #tpu.dot_dimension_numbers<[1], [0], [0], [1], [0, 0, 1, 1], [], []>} : vector<2x32xf32>, vector<32x32xf32>, vector<2x32xf32> -> vector<2x32xf32>
    %73 = vector.extract_strided_slice %7 {offsets = [4, 0], sizes = [2, 32], strides = [1, 1]} : vector<16x32xf32> to vector<2x32xf32>
    %74 = arith.addf %73, %70 : vector<2x32xf32>
    %75 = arith.negf %74 : vector<2x32xf32>
    %76 = math.exp %75 : vector<2x32xf32>
    %cst_28 = arith.constant 1.000000e+00 : f32
    %77 = vector.broadcast %cst_28 : f32 to vector<2x32xf32>
    %78 = arith.addf %77, %76 : vector<2x32xf32>
    %79 = arith.divf %77, %78 : vector<2x32xf32>
    %80 = vector.extract_strided_slice %8 {offsets = [4, 0], sizes = [2, 32], strides = [1, 1]} : vector<16x32xf32> to vector<2x32xf32>
    %81 = arith.addf %80, %71 : vector<2x32xf32>
    %82 = arith.negf %81 : vector<2x32xf32>
    %83 = math.exp %82 : vector<2x32xf32>
    %cst_29 = arith.constant 1.000000e+00 : f32
    %84 = vector.broadcast %cst_29 : f32 to vector<2x32xf32>
    %85 = arith.addf %84, %83 : vector<2x32xf32>
    %86 = arith.divf %84, %85 : vector<2x32xf32>
    %87 = vector.extract_strided_slice %9 {offsets = [4, 0], sizes = [2, 32], strides = [1, 1]} : vector<16x32xf32> to vector<2x32xf32>
    %88 = arith.addf %72, %18 : vector<2x32xf32>
    %89 = arith.mulf %79, %88 : vector<2x32xf32>
    %90 = arith.addf %87, %89 : vector<2x32xf32>
    %91 = math.tanh %90 : vector<2x32xf32>
    %92 = arith.subf %69, %91 : vector<2x32xf32>
    %93 = arith.mulf %86, %92 : vector<2x32xf32>
    %94 = arith.addf %91, %93 : vector<2x32xf32>
    %cst_30 = arith.constant dense<0.000000e+00> : vector<2x32xf32>
    %95 = tpu.matmul %94, %11, %cst_30 {dimension_numbers = #tpu.dot_dimension_numbers<[1], [0], [0], [1], [0, 0, 1, 1], [], []>} : vector<2x32xf32>, vector<32x32xf32>, vector<2x32xf32> -> vector<2x32xf32>
    %cst_31 = arith.constant dense<0.000000e+00> : vector<2x32xf32>
    %96 = tpu.matmul %94, %13, %cst_31 {dimension_numbers = #tpu.dot_dimension_numbers<[1], [0], [0], [1], [0, 0, 1, 1], [], []>} : vector<2x32xf32>, vector<32x32xf32>, vector<2x32xf32> -> vector<2x32xf32>
    %cst_32 = arith.constant dense<0.000000e+00> : vector<2x32xf32>
    %97 = tpu.matmul %94, %15, %cst_32 {dimension_numbers = #tpu.dot_dimension_numbers<[1], [0], [0], [1], [0, 0, 1, 1], [], []>} : vector<2x32xf32>, vector<32x32xf32>, vector<2x32xf32> -> vector<2x32xf32>
    %98 = vector.extract_strided_slice %7 {offsets = [6, 0], sizes = [2, 32], strides = [1, 1]} : vector<16x32xf32> to vector<2x32xf32>
    %99 = arith.addf %98, %95 : vector<2x32xf32>
    %100 = arith.negf %99 : vector<2x32xf32>
    %101 = math.exp %100 : vector<2x32xf32>
    %cst_33 = arith.constant 1.000000e+00 : f32
    %102 = vector.broadcast %cst_33 : f32 to vector<2x32xf32>
    %103 = arith.addf %102, %101 : vector<2x32xf32>
    %104 = arith.divf %102, %103 : vector<2x32xf32>
    %105 = vector.extract_strided_slice %8 {offsets = [6, 0], sizes = [2, 32], strides = [1, 1]} : vector<16x32xf32> to vector<2x32xf32>
    %106 = arith.addf %105, %96 : vector<2x32xf32>
    %107 = arith.negf %106 : vector<2x32xf32>
    %108 = math.exp %107 : vector<2x32xf32>
    %cst_34 = arith.constant 1.000000e+00 : f32
    %109 = vector.broadcast %cst_34 : f32 to vector<2x32xf32>
    %110 = arith.addf %109, %108 : vector<2x32xf32>
    %111 = arith.divf %109, %110 : vector<2x32xf32>
    %112 = vector.extract_strided_slice %9 {offsets = [6, 0], sizes = [2, 32], strides = [1, 1]} : vector<16x32xf32> to vector<2x32xf32>
    %113 = arith.addf %97, %18 : vector<2x32xf32>
    %114 = arith.mulf %104, %113 : vector<2x32xf32>
    %115 = arith.addf %112, %114 : vector<2x32xf32>
    %116 = math.tanh %115 : vector<2x32xf32>
    %117 = arith.subf %94, %116 : vector<2x32xf32>
    %118 = arith.mulf %111, %117 : vector<2x32xf32>
    %119 = arith.addf %116, %118 : vector<2x32xf32>
    %cst_35 = arith.constant dense<0.000000e+00> : vector<2x32xf32>
    %120 = tpu.matmul %119, %11, %cst_35 {dimension_numbers = #tpu.dot_dimension_numbers<[1], [0], [0], [1], [0, 0, 1, 1], [], []>} : vector<2x32xf32>, vector<32x32xf32>, vector<2x32xf32> -> vector<2x32xf32>
    %cst_36 = arith.constant dense<0.000000e+00> : vector<2x32xf32>
    %121 = tpu.matmul %119, %13, %cst_36 {dimension_numbers = #tpu.dot_dimension_numbers<[1], [0], [0], [1], [0, 0, 1, 1], [], []>} : vector<2x32xf32>, vector<32x32xf32>, vector<2x32xf32> -> vector<2x32xf32>
    %cst_37 = arith.constant dense<0.000000e+00> : vector<2x32xf32>
    %122 = tpu.matmul %119, %15, %cst_37 {dimension_numbers = #tpu.dot_dimension_numbers<[1], [0], [0], [1], [0, 0, 1, 1], [], []>} : vector<2x32xf32>, vector<32x32xf32>, vector<2x32xf32> -> vector<2x32xf32>
    %123 = vector.extract_strided_slice %7 {offsets = [8, 0], sizes = [2, 32], strides = [1, 1]} : vector<16x32xf32> to vector<2x32xf32>
    %124 = arith.addf %123, %120 : vector<2x32xf32>
    %125 = arith.negf %124 : vector<2x32xf32>
    %126 = math.exp %125 : vector<2x32xf32>
    %cst_38 = arith.constant 1.000000e+00 : f32
    %127 = vector.broadcast %cst_38 : f32 to vector<2x32xf32>
    %128 = arith.addf %127, %126 : vector<2x32xf32>
    %129 = arith.divf %127, %128 : vector<2x32xf32>
    %130 = vector.extract_strided_slice %8 {offsets = [8, 0], sizes = [2, 32], strides = [1, 1]} : vector<16x32xf32> to vector<2x32xf32>
    %131 = arith.addf %130, %121 : vector<2x32xf32>
    %132 = arith.negf %131 : vector<2x32xf32>
    %133 = math.exp %132 : vector<2x32xf32>
    %cst_39 = arith.constant 1.000000e+00 : f32
    %134 = vector.broadcast %cst_39 : f32 to vector<2x32xf32>
    %135 = arith.addf %134, %133 : vector<2x32xf32>
    %136 = arith.divf %134, %135 : vector<2x32xf32>
    %137 = vector.extract_strided_slice %9 {offsets = [8, 0], sizes = [2, 32], strides = [1, 1]} : vector<16x32xf32> to vector<2x32xf32>
    %138 = arith.addf %122, %18 : vector<2x32xf32>
    %139 = arith.mulf %129, %138 : vector<2x32xf32>
    %140 = arith.addf %137, %139 : vector<2x32xf32>
    %141 = math.tanh %140 : vector<2x32xf32>
    %142 = arith.subf %119, %141 : vector<2x32xf32>
    %143 = arith.mulf %136, %142 : vector<2x32xf32>
    %144 = arith.addf %141, %143 : vector<2x32xf32>
    %cst_40 = arith.constant dense<0.000000e+00> : vector<2x32xf32>
    %145 = tpu.matmul %144, %11, %cst_40 {dimension_numbers = #tpu.dot_dimension_numbers<[1], [0], [0], [1], [0, 0, 1, 1], [], []>} : vector<2x32xf32>, vector<32x32xf32>, vector<2x32xf32> -> vector<2x32xf32>
    %cst_41 = arith.constant dense<0.000000e+00> : vector<2x32xf32>
    %146 = tpu.matmul %144, %13, %cst_41 {dimension_numbers = #tpu.dot_dimension_numbers<[1], [0], [0], [1], [0, 0, 1, 1], [], []>} : vector<2x32xf32>, vector<32x32xf32>, vector<2x32xf32> -> vector<2x32xf32>
    %cst_42 = arith.constant dense<0.000000e+00> : vector<2x32xf32>
    %147 = tpu.matmul %144, %15, %cst_42 {dimension_numbers = #tpu.dot_dimension_numbers<[1], [0], [0], [1], [0, 0, 1, 1], [], []>} : vector<2x32xf32>, vector<32x32xf32>, vector<2x32xf32> -> vector<2x32xf32>
    %148 = vector.extract_strided_slice %7 {offsets = [10, 0], sizes = [2, 32], strides = [1, 1]} : vector<16x32xf32> to vector<2x32xf32>
    %149 = arith.addf %148, %145 : vector<2x32xf32>
    %150 = arith.negf %149 : vector<2x32xf32>
    %151 = math.exp %150 : vector<2x32xf32>
    %cst_43 = arith.constant 1.000000e+00 : f32
    %152 = vector.broadcast %cst_43 : f32 to vector<2x32xf32>
    %153 = arith.addf %152, %151 : vector<2x32xf32>
    %154 = arith.divf %152, %153 : vector<2x32xf32>
    %155 = vector.extract_strided_slice %8 {offsets = [10, 0], sizes = [2, 32], strides = [1, 1]} : vector<16x32xf32> to vector<2x32xf32>
    %156 = arith.addf %155, %146 : vector<2x32xf32>
    %157 = arith.negf %156 : vector<2x32xf32>
    %158 = math.exp %157 : vector<2x32xf32>
    %cst_44 = arith.constant 1.000000e+00 : f32
    %159 = vector.broadcast %cst_44 : f32 to vector<2x32xf32>
    %160 = arith.addf %159, %158 : vector<2x32xf32>
    %161 = arith.divf %159, %160 : vector<2x32xf32>
    %162 = vector.extract_strided_slice %9 {offsets = [10, 0], sizes = [2, 32], strides = [1, 1]} : vector<16x32xf32> to vector<2x32xf32>
    %163 = arith.addf %147, %18 : vector<2x32xf32>
    %164 = arith.mulf %154, %163 : vector<2x32xf32>
    %165 = arith.addf %162, %164 : vector<2x32xf32>
    %166 = math.tanh %165 : vector<2x32xf32>
    %167 = arith.subf %144, %166 : vector<2x32xf32>
    %168 = arith.mulf %161, %167 : vector<2x32xf32>
    %169 = arith.addf %166, %168 : vector<2x32xf32>
    %cst_45 = arith.constant dense<0.000000e+00> : vector<2x32xf32>
    %170 = tpu.matmul %169, %11, %cst_45 {dimension_numbers = #tpu.dot_dimension_numbers<[1], [0], [0], [1], [0, 0, 1, 1], [], []>} : vector<2x32xf32>, vector<32x32xf32>, vector<2x32xf32> -> vector<2x32xf32>
    %cst_46 = arith.constant dense<0.000000e+00> : vector<2x32xf32>
    %171 = tpu.matmul %169, %13, %cst_46 {dimension_numbers = #tpu.dot_dimension_numbers<[1], [0], [0], [1], [0, 0, 1, 1], [], []>} : vector<2x32xf32>, vector<32x32xf32>, vector<2x32xf32> -> vector<2x32xf32>
    %cst_47 = arith.constant dense<0.000000e+00> : vector<2x32xf32>
    %172 = tpu.matmul %169, %15, %cst_47 {dimension_numbers = #tpu.dot_dimension_numbers<[1], [0], [0], [1], [0, 0, 1, 1], [], []>} : vector<2x32xf32>, vector<32x32xf32>, vector<2x32xf32> -> vector<2x32xf32>
    %173 = vector.extract_strided_slice %7 {offsets = [12, 0], sizes = [2, 32], strides = [1, 1]} : vector<16x32xf32> to vector<2x32xf32>
    %174 = arith.addf %173, %170 : vector<2x32xf32>
    %175 = arith.negf %174 : vector<2x32xf32>
    %176 = math.exp %175 : vector<2x32xf32>
    %cst_48 = arith.constant 1.000000e+00 : f32
    %177 = vector.broadcast %cst_48 : f32 to vector<2x32xf32>
    %178 = arith.addf %177, %176 : vector<2x32xf32>
    %179 = arith.divf %177, %178 : vector<2x32xf32>
    %180 = vector.extract_strided_slice %8 {offsets = [12, 0], sizes = [2, 32], strides = [1, 1]} : vector<16x32xf32> to vector<2x32xf32>
    %181 = arith.addf %180, %171 : vector<2x32xf32>
    %182 = arith.negf %181 : vector<2x32xf32>
    %183 = math.exp %182 : vector<2x32xf32>
    %cst_49 = arith.constant 1.000000e+00 : f32
    %184 = vector.broadcast %cst_49 : f32 to vector<2x32xf32>
    %185 = arith.addf %184, %183 : vector<2x32xf32>
    %186 = arith.divf %184, %185 : vector<2x32xf32>
    %187 = vector.extract_strided_slice %9 {offsets = [12, 0], sizes = [2, 32], strides = [1, 1]} : vector<16x32xf32> to vector<2x32xf32>
    %188 = arith.addf %172, %18 : vector<2x32xf32>
    %189 = arith.mulf %179, %188 : vector<2x32xf32>
    %190 = arith.addf %187, %189 : vector<2x32xf32>
    %191 = math.tanh %190 : vector<2x32xf32>
    %192 = arith.subf %169, %191 : vector<2x32xf32>
    %193 = arith.mulf %186, %192 : vector<2x32xf32>
    %194 = arith.addf %191, %193 : vector<2x32xf32>
    %cst_50 = arith.constant dense<0.000000e+00> : vector<2x32xf32>
    %195 = tpu.matmul %194, %11, %cst_50 {dimension_numbers = #tpu.dot_dimension_numbers<[1], [0], [0], [1], [0, 0, 1, 1], [], []>} : vector<2x32xf32>, vector<32x32xf32>, vector<2x32xf32> -> vector<2x32xf32>
    %cst_51 = arith.constant dense<0.000000e+00> : vector<2x32xf32>
    %196 = tpu.matmul %194, %13, %cst_51 {dimension_numbers = #tpu.dot_dimension_numbers<[1], [0], [0], [1], [0, 0, 1, 1], [], []>} : vector<2x32xf32>, vector<32x32xf32>, vector<2x32xf32> -> vector<2x32xf32>
    %cst_52 = arith.constant dense<0.000000e+00> : vector<2x32xf32>
    %197 = tpu.matmul %194, %15, %cst_52 {dimension_numbers = #tpu.dot_dimension_numbers<[1], [0], [0], [1], [0, 0, 1, 1], [], []>} : vector<2x32xf32>, vector<32x32xf32>, vector<2x32xf32> -> vector<2x32xf32>
    %198 = vector.extract_strided_slice %7 {offsets = [14, 0], sizes = [2, 32], strides = [1, 1]} : vector<16x32xf32> to vector<2x32xf32>
    %199 = arith.addf %198, %195 : vector<2x32xf32>
    %200 = arith.negf %199 : vector<2x32xf32>
    %201 = math.exp %200 : vector<2x32xf32>
    %cst_53 = arith.constant 1.000000e+00 : f32
    %202 = vector.broadcast %cst_53 : f32 to vector<2x32xf32>
    %203 = arith.addf %202, %201 : vector<2x32xf32>
    %204 = arith.divf %202, %203 : vector<2x32xf32>
    %205 = vector.extract_strided_slice %8 {offsets = [14, 0], sizes = [2, 32], strides = [1, 1]} : vector<16x32xf32> to vector<2x32xf32>
    %206 = arith.addf %205, %196 : vector<2x32xf32>
    %207 = arith.negf %206 : vector<2x32xf32>
    %208 = math.exp %207 : vector<2x32xf32>
    %cst_54 = arith.constant 1.000000e+00 : f32
    %209 = vector.broadcast %cst_54 : f32 to vector<2x32xf32>
    %210 = arith.addf %209, %208 : vector<2x32xf32>
    %211 = arith.divf %209, %210 : vector<2x32xf32>
    %212 = vector.extract_strided_slice %9 {offsets = [14, 0], sizes = [2, 32], strides = [1, 1]} : vector<16x32xf32> to vector<2x32xf32>
    %213 = arith.addf %197, %18 : vector<2x32xf32>
    %214 = arith.mulf %204, %213 : vector<2x32xf32>
    %215 = arith.addf %212, %214 : vector<2x32xf32>
    %216 = math.tanh %215 : vector<2x32xf32>
    %217 = arith.subf %194, %216 : vector<2x32xf32>
    %218 = arith.mulf %211, %217 : vector<2x32xf32>
    %219 = arith.addf %216, %218 : vector<2x32xf32>
    %220 = vector.extract_strided_slice %5 {offsets = [0, 128], sizes = [16, 96], strides = [1, 1]} : vector<16x256xf32> to vector<16x96xf32>
    %221 = vector.extract_strided_slice %220 {offsets = [0, 0], sizes = [16, 32], strides = [1, 1]} : vector<16x96xf32> to vector<16x32xf32>
    %222 = vector.extract_strided_slice %220 {offsets = [0, 32], sizes = [16, 32], strides = [1, 1]} : vector<16x96xf32> to vector<16x32xf32>
    %223 = vector.extract_strided_slice %220 {offsets = [0, 64], sizes = [16, 32], strides = [1, 1]} : vector<16x96xf32> to vector<16x32xf32>
    %c0_55 = arith.constant 0 : index
    %c0_56 = arith.constant 0 : index
    %c0_57 = arith.constant 0 : index
    %224 = vector.load %arg5[%c0_55, %c0_56, %c0_57] : memref<3x32x32xf32, #tpu.memory_space<vmem>>, vector<1x32x32xf32>
    %225 = vector.shape_cast %224 : vector<1x32x32xf32> to vector<32x32xf32>
    %c1_58 = arith.constant 1 : index
    %c0_59 = arith.constant 0 : index
    %c0_60 = arith.constant 0 : index
    %226 = vector.load %arg5[%c1_58, %c0_59, %c0_60] : memref<3x32x32xf32, #tpu.memory_space<vmem>>, vector<1x32x32xf32>
    %227 = vector.shape_cast %226 : vector<1x32x32xf32> to vector<32x32xf32>
    %c2_61 = arith.constant 2 : index
    %c0_62 = arith.constant 0 : index
    %c0_63 = arith.constant 0 : index
    %228 = vector.load %arg5[%c2_61, %c0_62, %c0_63] : memref<3x32x32xf32, #tpu.memory_space<vmem>>, vector<1x32x32xf32>
    %229 = vector.shape_cast %228 : vector<1x32x32xf32> to vector<32x32xf32>
    %c0_64 = arith.constant 0 : index
    %c0_65 = arith.constant 0 : index
    %230 = vector.load %arg6[%c0_64, %c0_65] : memref<1x32xf32, #tpu.memory_space<vmem>>, vector<1x32xf32>
    %231 = vector.shape_cast %230 : vector<1x32xf32> to vector<1x32xf32>
    %232 = vector.broadcast %231 : vector<1x32xf32> to vector<2x32xf32>
    %cst_66 = arith.constant 0.000000e+00 : f32
    %233 = vector.broadcast %cst_66 : f32 to vector<2x32xf32>
    %cst_67 = arith.constant dense<0.000000e+00> : vector<2x32xf32>
    %234 = tpu.matmul %233, %225, %cst_67 {dimension_numbers = #tpu.dot_dimension_numbers<[1], [0], [0], [1], [0, 0, 1, 1], [], []>} : vector<2x32xf32>, vector<32x32xf32>, vector<2x32xf32> -> vector<2x32xf32>
    %cst_68 = arith.constant dense<0.000000e+00> : vector<2x32xf32>
    %235 = tpu.matmul %233, %227, %cst_68 {dimension_numbers = #tpu.dot_dimension_numbers<[1], [0], [0], [1], [0, 0, 1, 1], [], []>} : vector<2x32xf32>, vector<32x32xf32>, vector<2x32xf32> -> vector<2x32xf32>
    %cst_69 = arith.constant dense<0.000000e+00> : vector<2x32xf32>
    %236 = tpu.matmul %233, %229, %cst_69 {dimension_numbers = #tpu.dot_dimension_numbers<[1], [0], [0], [1], [0, 0, 1, 1], [], []>} : vector<2x32xf32>, vector<32x32xf32>, vector<2x32xf32> -> vector<2x32xf32>
    %237 = vector.extract_strided_slice %221 {offsets = [14, 0], sizes = [2, 32], strides = [1, 1]} : vector<16x32xf32> to vector<2x32xf32>
    %238 = arith.addf %237, %234 : vector<2x32xf32>
    %239 = arith.negf %238 : vector<2x32xf32>
    %240 = math.exp %239 : vector<2x32xf32>
    %cst_70 = arith.constant 1.000000e+00 : f32
    %241 = vector.broadcast %cst_70 : f32 to vector<2x32xf32>
    %242 = arith.addf %241, %240 : vector<2x32xf32>
    %243 = arith.divf %241, %242 : vector<2x32xf32>
    %244 = vector.extract_strided_slice %222 {offsets = [14, 0], sizes = [2, 32], strides = [1, 1]} : vector<16x32xf32> to vector<2x32xf32>
    %245 = arith.addf %244, %235 : vector<2x32xf32>
    %246 = arith.negf %245 : vector<2x32xf32>
    %247 = math.exp %246 : vector<2x32xf32>
    %cst_71 = arith.constant 1.000000e+00 : f32
    %248 = vector.broadcast %cst_71 : f32 to vector<2x32xf32>
    %249 = arith.addf %248, %247 : vector<2x32xf32>
    %250 = arith.divf %248, %249 : vector<2x32xf32>
    %251 = vector.extract_strided_slice %223 {offsets = [14, 0], sizes = [2, 32], strides = [1, 1]} : vector<16x32xf32> to vector<2x32xf32>
    %252 = arith.addf %236, %232 : vector<2x32xf32>
    %253 = arith.mulf %243, %252 : vector<2x32xf32>
    %254 = arith.addf %251, %253 : vector<2x32xf32>
    %255 = math.tanh %254 : vector<2x32xf32>
    %256 = arith.subf %233, %255 : vector<2x32xf32>
    %257 = arith.mulf %250, %256 : vector<2x32xf32>
    %258 = arith.addf %255, %257 : vector<2x32xf32>
    %cst_72 = arith.constant dense<0.000000e+00> : vector<2x32xf32>
    %259 = tpu.matmul %258, %225, %cst_72 {dimension_numbers = #tpu.dot_dimension_numbers<[1], [0], [0], [1], [0, 0, 1, 1], [], []>} : vector<2x32xf32>, vector<32x32xf32>, vector<2x32xf32> -> vector<2x32xf32>
    %cst_73 = arith.constant dense<0.000000e+00> : vector<2x32xf32>
    %260 = tpu.matmul %258, %227, %cst_73 {dimension_numbers = #tpu.dot_dimension_numbers<[1], [0], [0], [1], [0, 0, 1, 1], [], []>} : vector<2x32xf32>, vector<32x32xf32>, vector<2x32xf32> -> vector<2x32xf32>
    %cst_74 = arith.constant dense<0.000000e+00> : vector<2x32xf32>
    %261 = tpu.matmul %258, %229, %cst_74 {dimension_numbers = #tpu.dot_dimension_numbers<[1], [0], [0], [1], [0, 0, 1, 1], [], []>} : vector<2x32xf32>, vector<32x32xf32>, vector<2x32xf32> -> vector<2x32xf32>
    %262 = vector.extract_strided_slice %221 {offsets = [12, 0], sizes = [2, 32], strides = [1, 1]} : vector<16x32xf32> to vector<2x32xf32>
    %263 = arith.addf %262, %259 : vector<2x32xf32>
    %264 = arith.negf %263 : vector<2x32xf32>
    %265 = math.exp %264 : vector<2x32xf32>
    %cst_75 = arith.constant 1.000000e+00 : f32
    %266 = vector.broadcast %cst_75 : f32 to vector<2x32xf32>
    %267 = arith.addf %266, %265 : vector<2x32xf32>
    %268 = arith.divf %266, %267 : vector<2x32xf32>
    %269 = vector.extract_strided_slice %222 {offsets = [12, 0], sizes = [2, 32], strides = [1, 1]} : vector<16x32xf32> to vector<2x32xf32>
    %270 = arith.addf %269, %260 : vector<2x32xf32>
    %271 = arith.negf %270 : vector<2x32xf32>
    %272 = math.exp %271 : vector<2x32xf32>
    %cst_76 = arith.constant 1.000000e+00 : f32
    %273 = vector.broadcast %cst_76 : f32 to vector<2x32xf32>
    %274 = arith.addf %273, %272 : vector<2x32xf32>
    %275 = arith.divf %273, %274 : vector<2x32xf32>
    %276 = vector.extract_strided_slice %223 {offsets = [12, 0], sizes = [2, 32], strides = [1, 1]} : vector<16x32xf32> to vector<2x32xf32>
    %277 = arith.addf %261, %232 : vector<2x32xf32>
    %278 = arith.mulf %268, %277 : vector<2x32xf32>
    %279 = arith.addf %276, %278 : vector<2x32xf32>
    %280 = math.tanh %279 : vector<2x32xf32>
    %281 = arith.subf %258, %280 : vector<2x32xf32>
    %282 = arith.mulf %275, %281 : vector<2x32xf32>
    %283 = arith.addf %280, %282 : vector<2x32xf32>
    %cst_77 = arith.constant dense<0.000000e+00> : vector<2x32xf32>
    %284 = tpu.matmul %283, %225, %cst_77 {dimension_numbers = #tpu.dot_dimension_numbers<[1], [0], [0], [1], [0, 0, 1, 1], [], []>} : vector<2x32xf32>, vector<32x32xf32>, vector<2x32xf32> -> vector<2x32xf32>
    %cst_78 = arith.constant dense<0.000000e+00> : vector<2x32xf32>
    %285 = tpu.matmul %283, %227, %cst_78 {dimension_numbers = #tpu.dot_dimension_numbers<[1], [0], [0], [1], [0, 0, 1, 1], [], []>} : vector<2x32xf32>, vector<32x32xf32>, vector<2x32xf32> -> vector<2x32xf32>
    %cst_79 = arith.constant dense<0.000000e+00> : vector<2x32xf32>
    %286 = tpu.matmul %283, %229, %cst_79 {dimension_numbers = #tpu.dot_dimension_numbers<[1], [0], [0], [1], [0, 0, 1, 1], [], []>} : vector<2x32xf32>, vector<32x32xf32>, vector<2x32xf32> -> vector<2x32xf32>
    %287 = vector.extract_strided_slice %221 {offsets = [10, 0], sizes = [2, 32], strides = [1, 1]} : vector<16x32xf32> to vector<2x32xf32>
    %288 = arith.addf %287, %284 : vector<2x32xf32>
    %289 = arith.negf %288 : vector<2x32xf32>
    %290 = math.exp %289 : vector<2x32xf32>
    %cst_80 = arith.constant 1.000000e+00 : f32
    %291 = vector.broadcast %cst_80 : f32 to vector<2x32xf32>
    %292 = arith.addf %291, %290 : vector<2x32xf32>
    %293 = arith.divf %291, %292 : vector<2x32xf32>
    %294 = vector.extract_strided_slice %222 {offsets = [10, 0], sizes = [2, 32], strides = [1, 1]} : vector<16x32xf32> to vector<2x32xf32>
    %295 = arith.addf %294, %285 : vector<2x32xf32>
    %296 = arith.negf %295 : vector<2x32xf32>
    %297 = math.exp %296 : vector<2x32xf32>
    %cst_81 = arith.constant 1.000000e+00 : f32
    %298 = vector.broadcast %cst_81 : f32 to vector<2x32xf32>
    %299 = arith.addf %298, %297 : vector<2x32xf32>
    %300 = arith.divf %298, %299 : vector<2x32xf32>
    %301 = vector.extract_strided_slice %223 {offsets = [10, 0], sizes = [2, 32], strides = [1, 1]} : vector<16x32xf32> to vector<2x32xf32>
    %302 = arith.addf %286, %232 : vector<2x32xf32>
    %303 = arith.mulf %293, %302 : vector<2x32xf32>
    %304 = arith.addf %301, %303 : vector<2x32xf32>
    %305 = math.tanh %304 : vector<2x32xf32>
    %306 = arith.subf %283, %305 : vector<2x32xf32>
    %307 = arith.mulf %300, %306 : vector<2x32xf32>
    %308 = arith.addf %305, %307 : vector<2x32xf32>
    %cst_82 = arith.constant dense<0.000000e+00> : vector<2x32xf32>
    %309 = tpu.matmul %308, %225, %cst_82 {dimension_numbers = #tpu.dot_dimension_numbers<[1], [0], [0], [1], [0, 0, 1, 1], [], []>} : vector<2x32xf32>, vector<32x32xf32>, vector<2x32xf32> -> vector<2x32xf32>
    %cst_83 = arith.constant dense<0.000000e+00> : vector<2x32xf32>
    %310 = tpu.matmul %308, %227, %cst_83 {dimension_numbers = #tpu.dot_dimension_numbers<[1], [0], [0], [1], [0, 0, 1, 1], [], []>} : vector<2x32xf32>, vector<32x32xf32>, vector<2x32xf32> -> vector<2x32xf32>
    %cst_84 = arith.constant dense<0.000000e+00> : vector<2x32xf32>
    %311 = tpu.matmul %308, %229, %cst_84 {dimension_numbers = #tpu.dot_dimension_numbers<[1], [0], [0], [1], [0, 0, 1, 1], [], []>} : vector<2x32xf32>, vector<32x32xf32>, vector<2x32xf32> -> vector<2x32xf32>
    %312 = vector.extract_strided_slice %221 {offsets = [8, 0], sizes = [2, 32], strides = [1, 1]} : vector<16x32xf32> to vector<2x32xf32>
    %313 = arith.addf %312, %309 : vector<2x32xf32>
    %314 = arith.negf %313 : vector<2x32xf32>
    %315 = math.exp %314 : vector<2x32xf32>
    %cst_85 = arith.constant 1.000000e+00 : f32
    %316 = vector.broadcast %cst_85 : f32 to vector<2x32xf32>
    %317 = arith.addf %316, %315 : vector<2x32xf32>
    %318 = arith.divf %316, %317 : vector<2x32xf32>
    %319 = vector.extract_strided_slice %222 {offsets = [8, 0], sizes = [2, 32], strides = [1, 1]} : vector<16x32xf32> to vector<2x32xf32>
    %320 = arith.addf %319, %310 : vector<2x32xf32>
    %321 = arith.negf %320 : vector<2x32xf32>
    %322 = math.exp %321 : vector<2x32xf32>
    %cst_86 = arith.constant 1.000000e+00 : f32
    %323 = vector.broadcast %cst_86 : f32 to vector<2x32xf32>
    %324 = arith.addf %323, %322 : vector<2x32xf32>
    %325 = arith.divf %323, %324 : vector<2x32xf32>
    %326 = vector.extract_strided_slice %223 {offsets = [8, 0], sizes = [2, 32], strides = [1, 1]} : vector<16x32xf32> to vector<2x32xf32>
    %327 = arith.addf %311, %232 : vector<2x32xf32>
    %328 = arith.mulf %318, %327 : vector<2x32xf32>
    %329 = arith.addf %326, %328 : vector<2x32xf32>
    %330 = math.tanh %329 : vector<2x32xf32>
    %331 = arith.subf %308, %330 : vector<2x32xf32>
    %332 = arith.mulf %325, %331 : vector<2x32xf32>
    %333 = arith.addf %330, %332 : vector<2x32xf32>
    %cst_87 = arith.constant dense<0.000000e+00> : vector<2x32xf32>
    %334 = tpu.matmul %333, %225, %cst_87 {dimension_numbers = #tpu.dot_dimension_numbers<[1], [0], [0], [1], [0, 0, 1, 1], [], []>} : vector<2x32xf32>, vector<32x32xf32>, vector<2x32xf32> -> vector<2x32xf32>
    %cst_88 = arith.constant dense<0.000000e+00> : vector<2x32xf32>
    %335 = tpu.matmul %333, %227, %cst_88 {dimension_numbers = #tpu.dot_dimension_numbers<[1], [0], [0], [1], [0, 0, 1, 1], [], []>} : vector<2x32xf32>, vector<32x32xf32>, vector<2x32xf32> -> vector<2x32xf32>
    %cst_89 = arith.constant dense<0.000000e+00> : vector<2x32xf32>
    %336 = tpu.matmul %333, %229, %cst_89 {dimension_numbers = #tpu.dot_dimension_numbers<[1], [0], [0], [1], [0, 0, 1, 1], [], []>} : vector<2x32xf32>, vector<32x32xf32>, vector<2x32xf32> -> vector<2x32xf32>
    %337 = vector.extract_strided_slice %221 {offsets = [6, 0], sizes = [2, 32], strides = [1, 1]} : vector<16x32xf32> to vector<2x32xf32>
    %338 = arith.addf %337, %334 : vector<2x32xf32>
    %339 = arith.negf %338 : vector<2x32xf32>
    %340 = math.exp %339 : vector<2x32xf32>
    %cst_90 = arith.constant 1.000000e+00 : f32
    %341 = vector.broadcast %cst_90 : f32 to vector<2x32xf32>
    %342 = arith.addf %341, %340 : vector<2x32xf32>
    %343 = arith.divf %341, %342 : vector<2x32xf32>
    %344 = vector.extract_strided_slice %222 {offsets = [6, 0], sizes = [2, 32], strides = [1, 1]} : vector<16x32xf32> to vector<2x32xf32>
    %345 = arith.addf %344, %335 : vector<2x32xf32>
    %346 = arith.negf %345 : vector<2x32xf32>
    %347 = math.exp %346 : vector<2x32xf32>
    %cst_91 = arith.constant 1.000000e+00 : f32
    %348 = vector.broadcast %cst_91 : f32 to vector<2x32xf32>
    %349 = arith.addf %348, %347 : vector<2x32xf32>
    %350 = arith.divf %348, %349 : vector<2x32xf32>
    %351 = vector.extract_strided_slice %223 {offsets = [6, 0], sizes = [2, 32], strides = [1, 1]} : vector<16x32xf32> to vector<2x32xf32>
    %352 = arith.addf %336, %232 : vector<2x32xf32>
    %353 = arith.mulf %343, %352 : vector<2x32xf32>
    %354 = arith.addf %351, %353 : vector<2x32xf32>
    %355 = math.tanh %354 : vector<2x32xf32>
    %356 = arith.subf %333, %355 : vector<2x32xf32>
    %357 = arith.mulf %350, %356 : vector<2x32xf32>
    %358 = arith.addf %355, %357 : vector<2x32xf32>
    %cst_92 = arith.constant dense<0.000000e+00> : vector<2x32xf32>
    %359 = tpu.matmul %358, %225, %cst_92 {dimension_numbers = #tpu.dot_dimension_numbers<[1], [0], [0], [1], [0, 0, 1, 1], [], []>} : vector<2x32xf32>, vector<32x32xf32>, vector<2x32xf32> -> vector<2x32xf32>
    %cst_93 = arith.constant dense<0.000000e+00> : vector<2x32xf32>
    %360 = tpu.matmul %358, %227, %cst_93 {dimension_numbers = #tpu.dot_dimension_numbers<[1], [0], [0], [1], [0, 0, 1, 1], [], []>} : vector<2x32xf32>, vector<32x32xf32>, vector<2x32xf32> -> vector<2x32xf32>
    %cst_94 = arith.constant dense<0.000000e+00> : vector<2x32xf32>
    %361 = tpu.matmul %358, %229, %cst_94 {dimension_numbers = #tpu.dot_dimension_numbers<[1], [0], [0], [1], [0, 0, 1, 1], [], []>} : vector<2x32xf32>, vector<32x32xf32>, vector<2x32xf32> -> vector<2x32xf32>
    %362 = vector.extract_strided_slice %221 {offsets = [4, 0], sizes = [2, 32], strides = [1, 1]} : vector<16x32xf32> to vector<2x32xf32>
    %363 = arith.addf %362, %359 : vector<2x32xf32>
    %364 = arith.negf %363 : vector<2x32xf32>
    %365 = math.exp %364 : vector<2x32xf32>
    %cst_95 = arith.constant 1.000000e+00 : f32
    %366 = vector.broadcast %cst_95 : f32 to vector<2x32xf32>
    %367 = arith.addf %366, %365 : vector<2x32xf32>
    %368 = arith.divf %366, %367 : vector<2x32xf32>
    %369 = vector.extract_strided_slice %222 {offsets = [4, 0], sizes = [2, 32], strides = [1, 1]} : vector<16x32xf32> to vector<2x32xf32>
    %370 = arith.addf %369, %360 : vector<2x32xf32>
    %371 = arith.negf %370 : vector<2x32xf32>
    %372 = math.exp %371 : vector<2x32xf32>
    %cst_96 = arith.constant 1.000000e+00 : f32
    %373 = vector.broadcast %cst_96 : f32 to vector<2x32xf32>
    %374 = arith.addf %373, %372 : vector<2x32xf32>
    %375 = arith.divf %373, %374 : vector<2x32xf32>
    %376 = vector.extract_strided_slice %223 {offsets = [4, 0], sizes = [2, 32], strides = [1, 1]} : vector<16x32xf32> to vector<2x32xf32>
    %377 = arith.addf %361, %232 : vector<2x32xf32>
    %378 = arith.mulf %368, %377 : vector<2x32xf32>
    %379 = arith.addf %376, %378 : vector<2x32xf32>
    %380 = math.tanh %379 : vector<2x32xf32>
    %381 = arith.subf %358, %380 : vector<2x32xf32>
    %382 = arith.mulf %375, %381 : vector<2x32xf32>
    %383 = arith.addf %380, %382 : vector<2x32xf32>
    %cst_97 = arith.constant dense<0.000000e+00> : vector<2x32xf32>
    %384 = tpu.matmul %383, %225, %cst_97 {dimension_numbers = #tpu.dot_dimension_numbers<[1], [0], [0], [1], [0, 0, 1, 1], [], []>} : vector<2x32xf32>, vector<32x32xf32>, vector<2x32xf32> -> vector<2x32xf32>
    %cst_98 = arith.constant dense<0.000000e+00> : vector<2x32xf32>
    %385 = tpu.matmul %383, %227, %cst_98 {dimension_numbers = #tpu.dot_dimension_numbers<[1], [0], [0], [1], [0, 0, 1, 1], [], []>} : vector<2x32xf32>, vector<32x32xf32>, vector<2x32xf32> -> vector<2x32xf32>
    %cst_99 = arith.constant dense<0.000000e+00> : vector<2x32xf32>
    %386 = tpu.matmul %383, %229, %cst_99 {dimension_numbers = #tpu.dot_dimension_numbers<[1], [0], [0], [1], [0, 0, 1, 1], [], []>} : vector<2x32xf32>, vector<32x32xf32>, vector<2x32xf32> -> vector<2x32xf32>
    %387 = vector.extract_strided_slice %221 {offsets = [2, 0], sizes = [2, 32], strides = [1, 1]} : vector<16x32xf32> to vector<2x32xf32>
    %388 = arith.addf %387, %384 : vector<2x32xf32>
    %389 = arith.negf %388 : vector<2x32xf32>
    %390 = math.exp %389 : vector<2x32xf32>
    %cst_100 = arith.constant 1.000000e+00 : f32
    %391 = vector.broadcast %cst_100 : f32 to vector<2x32xf32>
    %392 = arith.addf %391, %390 : vector<2x32xf32>
    %393 = arith.divf %391, %392 : vector<2x32xf32>
    %394 = vector.extract_strided_slice %222 {offsets = [2, 0], sizes = [2, 32], strides = [1, 1]} : vector<16x32xf32> to vector<2x32xf32>
    %395 = arith.addf %394, %385 : vector<2x32xf32>
    %396 = arith.negf %395 : vector<2x32xf32>
    %397 = math.exp %396 : vector<2x32xf32>
    %cst_101 = arith.constant 1.000000e+00 : f32
    %398 = vector.broadcast %cst_101 : f32 to vector<2x32xf32>
    %399 = arith.addf %398, %397 : vector<2x32xf32>
    %400 = arith.divf %398, %399 : vector<2x32xf32>
    %401 = vector.extract_strided_slice %223 {offsets = [2, 0], sizes = [2, 32], strides = [1, 1]} : vector<16x32xf32> to vector<2x32xf32>
    %402 = arith.addf %386, %232 : vector<2x32xf32>
    %403 = arith.mulf %393, %402 : vector<2x32xf32>
    %404 = arith.addf %401, %403 : vector<2x32xf32>
    %405 = math.tanh %404 : vector<2x32xf32>
    %406 = arith.subf %383, %405 : vector<2x32xf32>
    %407 = arith.mulf %400, %406 : vector<2x32xf32>
    %408 = arith.addf %405, %407 : vector<2x32xf32>
    %cst_102 = arith.constant dense<0.000000e+00> : vector<2x32xf32>
    %409 = tpu.matmul %408, %225, %cst_102 {dimension_numbers = #tpu.dot_dimension_numbers<[1], [0], [0], [1], [0, 0, 1, 1], [], []>} : vector<2x32xf32>, vector<32x32xf32>, vector<2x32xf32> -> vector<2x32xf32>
    %cst_103 = arith.constant dense<0.000000e+00> : vector<2x32xf32>
    %410 = tpu.matmul %408, %227, %cst_103 {dimension_numbers = #tpu.dot_dimension_numbers<[1], [0], [0], [1], [0, 0, 1, 1], [], []>} : vector<2x32xf32>, vector<32x32xf32>, vector<2x32xf32> -> vector<2x32xf32>
    %cst_104 = arith.constant dense<0.000000e+00> : vector<2x32xf32>
    %411 = tpu.matmul %408, %229, %cst_104 {dimension_numbers = #tpu.dot_dimension_numbers<[1], [0], [0], [1], [0, 0, 1, 1], [], []>} : vector<2x32xf32>, vector<32x32xf32>, vector<2x32xf32> -> vector<2x32xf32>
    %412 = vector.extract_strided_slice %221 {offsets = [0, 0], sizes = [2, 32], strides = [1, 1]} : vector<16x32xf32> to vector<2x32xf32>
    %413 = arith.addf %412, %409 : vector<2x32xf32>
    %414 = arith.negf %413 : vector<2x32xf32>
    %415 = math.exp %414 : vector<2x32xf32>
    %cst_105 = arith.constant 1.000000e+00 : f32
    %416 = vector.broadcast %cst_105 : f32 to vector<2x32xf32>
    %417 = arith.addf %416, %415 : vector<2x32xf32>
    %418 = arith.divf %416, %417 : vector<2x32xf32>
    %419 = vector.extract_strided_slice %222 {offsets = [0, 0], sizes = [2, 32], strides = [1, 1]} : vector<16x32xf32> to vector<2x32xf32>
    %420 = arith.addf %419, %410 : vector<2x32xf32>
    %421 = arith.negf %420 : vector<2x32xf32>
    %422 = math.exp %421 : vector<2x32xf32>
    %cst_106 = arith.constant 1.000000e+00 : f32
    %423 = vector.broadcast %cst_106 : f32 to vector<2x32xf32>
    %424 = arith.addf %423, %422 : vector<2x32xf32>
    %425 = arith.divf %423, %424 : vector<2x32xf32>
    %426 = vector.extract_strided_slice %223 {offsets = [0, 0], sizes = [2, 32], strides = [1, 1]} : vector<16x32xf32> to vector<2x32xf32>
    %427 = arith.addf %411, %232 : vector<2x32xf32>
    %428 = arith.mulf %418, %427 : vector<2x32xf32>
    %429 = arith.addf %426, %428 : vector<2x32xf32>
    %430 = math.tanh %429 : vector<2x32xf32>
    %431 = arith.subf %408, %430 : vector<2x32xf32>
    %432 = arith.mulf %425, %431 : vector<2x32xf32>
    %433 = arith.addf %430, %432 : vector<2x32xf32>
    %434 = tpu.concatenate %44, %69, %94, %119, %144, %169, %194, %219 in 0 : vector<2x32xf32>, vector<2x32xf32>, vector<2x32xf32>, vector<2x32xf32>, vector<2x32xf32>, vector<2x32xf32>, vector<2x32xf32>, vector<2x32xf32> -> vector<16x32xf32>
    %435 = tpu.concatenate %433, %408, %383, %358, %333, %308, %283, %258 in 0 : vector<2x32xf32>, vector<2x32xf32>, vector<2x32xf32>, vector<2x32xf32>, vector<2x32xf32>, vector<2x32xf32>, vector<2x32xf32>, vector<2x32xf32> -> vector<16x32xf32>
    %436 = tpu.concatenate %434, %435 in 1 : vector<16x32xf32>, vector<16x32xf32> -> vector<16x64xf32>
    %c0_107 = arith.constant 0 : index
    %c0_108 = arith.constant 0 : index
    %437 = vector.load %arg7[%c0_107, %c0_108] : memref<64x256xf32, #tpu.memory_space<vmem>>, vector<64x256xf32>
    %cst_109 = arith.constant dense<0.000000e+00> : vector<16x256xf32>
    %438 = tpu.matmul %436, %437, %cst_109 {dimension_numbers = #tpu.dot_dimension_numbers<[1], [0], [0], [1], [0, 0, 1, 1], [], []>} : vector<16x64xf32>, vector<64x256xf32>, vector<16x256xf32> -> vector<16x256xf32>
    %c0_110 = arith.constant 0 : index
    %c0_111 = arith.constant 0 : index
    %439 = vector.load %arg8[%c0_110, %c0_111] : memref<1x256xf32, #tpu.memory_space<vmem>>, vector<1x256xf32>
    %440 = vector.broadcast %439 : vector<1x256xf32> to vector<16x256xf32>
    %441 = arith.addf %438, %440 : vector<16x256xf32>
    %442 = vector.extract_strided_slice %441 {offsets = [0, 0], sizes = [16, 96], strides = [1, 1]} : vector<16x256xf32> to vector<16x96xf32>
    %443 = vector.extract_strided_slice %442 {offsets = [0, 0], sizes = [16, 32], strides = [1, 1]} : vector<16x96xf32> to vector<16x32xf32>
    %444 = vector.extract_strided_slice %442 {offsets = [0, 32], sizes = [16, 32], strides = [1, 1]} : vector<16x96xf32> to vector<16x32xf32>
    %445 = vector.extract_strided_slice %442 {offsets = [0, 64], sizes = [16, 32], strides = [1, 1]} : vector<16x96xf32> to vector<16x32xf32>
    %c0_112 = arith.constant 0 : index
    %c0_113 = arith.constant 0 : index
    %c0_114 = arith.constant 0 : index
    %446 = vector.load %arg9[%c0_112, %c0_113, %c0_114] : memref<3x32x32xf32, #tpu.memory_space<vmem>>, vector<1x32x32xf32>
    %447 = vector.shape_cast %446 : vector<1x32x32xf32> to vector<32x32xf32>
    %c1_115 = arith.constant 1 : index
    %c0_116 = arith.constant 0 : index
    %c0_117 = arith.constant 0 : index
    %448 = vector.load %arg9[%c1_115, %c0_116, %c0_117] : memref<3x32x32xf32, #tpu.memory_space<vmem>>, vector<1x32x32xf32>
    %449 = vector.shape_cast %448 : vector<1x32x32xf32> to vector<32x32xf32>
    %c2_118 = arith.constant 2 : index
    %c0_119 = arith.constant 0 : index
    %c0_120 = arith.constant 0 : index
    %450 = vector.load %arg9[%c2_118, %c0_119, %c0_120] : memref<3x32x32xf32, #tpu.memory_space<vmem>>, vector<1x32x32xf32>
    %451 = vector.shape_cast %450 : vector<1x32x32xf32> to vector<32x32xf32>
    %c0_121 = arith.constant 0 : index
    %c0_122 = arith.constant 0 : index
    %452 = vector.load %arg10[%c0_121, %c0_122] : memref<1x32xf32, #tpu.memory_space<vmem>>, vector<1x32xf32>
    %453 = vector.shape_cast %452 : vector<1x32xf32> to vector<1x32xf32>
    %454 = vector.broadcast %453 : vector<1x32xf32> to vector<2x32xf32>
    %cst_123 = arith.constant 0.000000e+00 : f32
    %455 = vector.broadcast %cst_123 : f32 to vector<2x32xf32>
    %cst_124 = arith.constant dense<0.000000e+00> : vector<2x32xf32>
    %456 = tpu.matmul %455, %447, %cst_124 {dimension_numbers = #tpu.dot_dimension_numbers<[1], [0], [0], [1], [0, 0, 1, 1], [], []>} : vector<2x32xf32>, vector<32x32xf32>, vector<2x32xf32> -> vector<2x32xf32>
    %cst_125 = arith.constant dense<0.000000e+00> : vector<2x32xf32>
    %457 = tpu.matmul %455, %449, %cst_125 {dimension_numbers = #tpu.dot_dimension_numbers<[1], [0], [0], [1], [0, 0, 1, 1], [], []>} : vector<2x32xf32>, vector<32x32xf32>, vector<2x32xf32> -> vector<2x32xf32>
    %cst_126 = arith.constant dense<0.000000e+00> : vector<2x32xf32>
    %458 = tpu.matmul %455, %451, %cst_126 {dimension_numbers = #tpu.dot_dimension_numbers<[1], [0], [0], [1], [0, 0, 1, 1], [], []>} : vector<2x32xf32>, vector<32x32xf32>, vector<2x32xf32> -> vector<2x32xf32>
    %459 = vector.extract_strided_slice %443 {offsets = [0, 0], sizes = [2, 32], strides = [1, 1]} : vector<16x32xf32> to vector<2x32xf32>
    %460 = arith.addf %459, %456 : vector<2x32xf32>
    %461 = arith.negf %460 : vector<2x32xf32>
    %462 = math.exp %461 : vector<2x32xf32>
    %cst_127 = arith.constant 1.000000e+00 : f32
    %463 = vector.broadcast %cst_127 : f32 to vector<2x32xf32>
    %464 = arith.addf %463, %462 : vector<2x32xf32>
    %465 = arith.divf %463, %464 : vector<2x32xf32>
    %466 = vector.extract_strided_slice %444 {offsets = [0, 0], sizes = [2, 32], strides = [1, 1]} : vector<16x32xf32> to vector<2x32xf32>
    %467 = arith.addf %466, %457 : vector<2x32xf32>
    %468 = arith.negf %467 : vector<2x32xf32>
    %469 = math.exp %468 : vector<2x32xf32>
    %cst_128 = arith.constant 1.000000e+00 : f32
    %470 = vector.broadcast %cst_128 : f32 to vector<2x32xf32>
    %471 = arith.addf %470, %469 : vector<2x32xf32>
    %472 = arith.divf %470, %471 : vector<2x32xf32>
    %473 = vector.extract_strided_slice %445 {offsets = [0, 0], sizes = [2, 32], strides = [1, 1]} : vector<16x32xf32> to vector<2x32xf32>
    %474 = arith.addf %458, %454 : vector<2x32xf32>
    %475 = arith.mulf %465, %474 : vector<2x32xf32>
    %476 = arith.addf %473, %475 : vector<2x32xf32>
    %477 = math.tanh %476 : vector<2x32xf32>
    %478 = arith.subf %455, %477 : vector<2x32xf32>
    %479 = arith.mulf %472, %478 : vector<2x32xf32>
    %480 = arith.addf %477, %479 : vector<2x32xf32>
    %cst_129 = arith.constant dense<0.000000e+00> : vector<2x32xf32>
    %481 = tpu.matmul %480, %447, %cst_129 {dimension_numbers = #tpu.dot_dimension_numbers<[1], [0], [0], [1], [0, 0, 1, 1], [], []>} : vector<2x32xf32>, vector<32x32xf32>, vector<2x32xf32> -> vector<2x32xf32>
    %cst_130 = arith.constant dense<0.000000e+00> : vector<2x32xf32>
    %482 = tpu.matmul %480, %449, %cst_130 {dimension_numbers = #tpu.dot_dimension_numbers<[1], [0], [0], [1], [0, 0, 1, 1], [], []>} : vector<2x32xf32>, vector<32x32xf32>, vector<2x32xf32> -> vector<2x32xf32>
    %cst_131 = arith.constant dense<0.000000e+00> : vector<2x32xf32>
    %483 = tpu.matmul %480, %451, %cst_131 {dimension_numbers = #tpu.dot_dimension_numbers<[1], [0], [0], [1], [0, 0, 1, 1], [], []>} : vector<2x32xf32>, vector<32x32xf32>, vector<2x32xf32> -> vector<2x32xf32>
    %484 = vector.extract_strided_slice %443 {offsets = [2, 0], sizes = [2, 32], strides = [1, 1]} : vector<16x32xf32> to vector<2x32xf32>
    %485 = arith.addf %484, %481 : vector<2x32xf32>
    %486 = arith.negf %485 : vector<2x32xf32>
    %487 = math.exp %486 : vector<2x32xf32>
    %cst_132 = arith.constant 1.000000e+00 : f32
    %488 = vector.broadcast %cst_132 : f32 to vector<2x32xf32>
    %489 = arith.addf %488, %487 : vector<2x32xf32>
    %490 = arith.divf %488, %489 : vector<2x32xf32>
    %491 = vector.extract_strided_slice %444 {offsets = [2, 0], sizes = [2, 32], strides = [1, 1]} : vector<16x32xf32> to vector<2x32xf32>
    %492 = arith.addf %491, %482 : vector<2x32xf32>
    %493 = arith.negf %492 : vector<2x32xf32>
    %494 = math.exp %493 : vector<2x32xf32>
    %cst_133 = arith.constant 1.000000e+00 : f32
    %495 = vector.broadcast %cst_133 : f32 to vector<2x32xf32>
    %496 = arith.addf %495, %494 : vector<2x32xf32>
    %497 = arith.divf %495, %496 : vector<2x32xf32>
    %498 = vector.extract_strided_slice %445 {offsets = [2, 0], sizes = [2, 32], strides = [1, 1]} : vector<16x32xf32> to vector<2x32xf32>
    %499 = arith.addf %483, %454 : vector<2x32xf32>
    %500 = arith.mulf %490, %499 : vector<2x32xf32>
    %501 = arith.addf %498, %500 : vector<2x32xf32>
    %502 = math.tanh %501 : vector<2x32xf32>
    %503 = arith.subf %480, %502 : vector<2x32xf32>
    %504 = arith.mulf %497, %503 : vector<2x32xf32>
    %505 = arith.addf %502, %504 : vector<2x32xf32>
    %cst_134 = arith.constant dense<0.000000e+00> : vector<2x32xf32>
    %506 = tpu.matmul %505, %447, %cst_134 {dimension_numbers = #tpu.dot_dimension_numbers<[1], [0], [0], [1], [0, 0, 1, 1], [], []>} : vector<2x32xf32>, vector<32x32xf32>, vector<2x32xf32> -> vector<2x32xf32>
    %cst_135 = arith.constant dense<0.000000e+00> : vector<2x32xf32>
    %507 = tpu.matmul %505, %449, %cst_135 {dimension_numbers = #tpu.dot_dimension_numbers<[1], [0], [0], [1], [0, 0, 1, 1], [], []>} : vector<2x32xf32>, vector<32x32xf32>, vector<2x32xf32> -> vector<2x32xf32>
    %cst_136 = arith.constant dense<0.000000e+00> : vector<2x32xf32>
    %508 = tpu.matmul %505, %451, %cst_136 {dimension_numbers = #tpu.dot_dimension_numbers<[1], [0], [0], [1], [0, 0, 1, 1], [], []>} : vector<2x32xf32>, vector<32x32xf32>, vector<2x32xf32> -> vector<2x32xf32>
    %509 = vector.extract_strided_slice %443 {offsets = [4, 0], sizes = [2, 32], strides = [1, 1]} : vector<16x32xf32> to vector<2x32xf32>
    %510 = arith.addf %509, %506 : vector<2x32xf32>
    %511 = arith.negf %510 : vector<2x32xf32>
    %512 = math.exp %511 : vector<2x32xf32>
    %cst_137 = arith.constant 1.000000e+00 : f32
    %513 = vector.broadcast %cst_137 : f32 to vector<2x32xf32>
    %514 = arith.addf %513, %512 : vector<2x32xf32>
    %515 = arith.divf %513, %514 : vector<2x32xf32>
    %516 = vector.extract_strided_slice %444 {offsets = [4, 0], sizes = [2, 32], strides = [1, 1]} : vector<16x32xf32> to vector<2x32xf32>
    %517 = arith.addf %516, %507 : vector<2x32xf32>
    %518 = arith.negf %517 : vector<2x32xf32>
    %519 = math.exp %518 : vector<2x32xf32>
    %cst_138 = arith.constant 1.000000e+00 : f32
    %520 = vector.broadcast %cst_138 : f32 to vector<2x32xf32>
    %521 = arith.addf %520, %519 : vector<2x32xf32>
    %522 = arith.divf %520, %521 : vector<2x32xf32>
    %523 = vector.extract_strided_slice %445 {offsets = [4, 0], sizes = [2, 32], strides = [1, 1]} : vector<16x32xf32> to vector<2x32xf32>
    %524 = arith.addf %508, %454 : vector<2x32xf32>
    %525 = arith.mulf %515, %524 : vector<2x32xf32>
    %526 = arith.addf %523, %525 : vector<2x32xf32>
    %527 = math.tanh %526 : vector<2x32xf32>
    %528 = arith.subf %505, %527 : vector<2x32xf32>
    %529 = arith.mulf %522, %528 : vector<2x32xf32>
    %530 = arith.addf %527, %529 : vector<2x32xf32>
    %cst_139 = arith.constant dense<0.000000e+00> : vector<2x32xf32>
    %531 = tpu.matmul %530, %447, %cst_139 {dimension_numbers = #tpu.dot_dimension_numbers<[1], [0], [0], [1], [0, 0, 1, 1], [], []>} : vector<2x32xf32>, vector<32x32xf32>, vector<2x32xf32> -> vector<2x32xf32>
    %cst_140 = arith.constant dense<0.000000e+00> : vector<2x32xf32>
    %532 = tpu.matmul %530, %449, %cst_140 {dimension_numbers = #tpu.dot_dimension_numbers<[1], [0], [0], [1], [0, 0, 1, 1], [], []>} : vector<2x32xf32>, vector<32x32xf32>, vector<2x32xf32> -> vector<2x32xf32>
    %cst_141 = arith.constant dense<0.000000e+00> : vector<2x32xf32>
    %533 = tpu.matmul %530, %451, %cst_141 {dimension_numbers = #tpu.dot_dimension_numbers<[1], [0], [0], [1], [0, 0, 1, 1], [], []>} : vector<2x32xf32>, vector<32x32xf32>, vector<2x32xf32> -> vector<2x32xf32>
    %534 = vector.extract_strided_slice %443 {offsets = [6, 0], sizes = [2, 32], strides = [1, 1]} : vector<16x32xf32> to vector<2x32xf32>
    %535 = arith.addf %534, %531 : vector<2x32xf32>
    %536 = arith.negf %535 : vector<2x32xf32>
    %537 = math.exp %536 : vector<2x32xf32>
    %cst_142 = arith.constant 1.000000e+00 : f32
    %538 = vector.broadcast %cst_142 : f32 to vector<2x32xf32>
    %539 = arith.addf %538, %537 : vector<2x32xf32>
    %540 = arith.divf %538, %539 : vector<2x32xf32>
    %541 = vector.extract_strided_slice %444 {offsets = [6, 0], sizes = [2, 32], strides = [1, 1]} : vector<16x32xf32> to vector<2x32xf32>
    %542 = arith.addf %541, %532 : vector<2x32xf32>
    %543 = arith.negf %542 : vector<2x32xf32>
    %544 = math.exp %543 : vector<2x32xf32>
    %cst_143 = arith.constant 1.000000e+00 : f32
    %545 = vector.broadcast %cst_143 : f32 to vector<2x32xf32>
    %546 = arith.addf %545, %544 : vector<2x32xf32>
    %547 = arith.divf %545, %546 : vector<2x32xf32>
    %548 = vector.extract_strided_slice %445 {offsets = [6, 0], sizes = [2, 32], strides = [1, 1]} : vector<16x32xf32> to vector<2x32xf32>
    %549 = arith.addf %533, %454 : vector<2x32xf32>
    %550 = arith.mulf %540, %549 : vector<2x32xf32>
    %551 = arith.addf %548, %550 : vector<2x32xf32>
    %552 = math.tanh %551 : vector<2x32xf32>
    %553 = arith.subf %530, %552 : vector<2x32xf32>
    %554 = arith.mulf %547, %553 : vector<2x32xf32>
    %555 = arith.addf %552, %554 : vector<2x32xf32>
    %cst_144 = arith.constant dense<0.000000e+00> : vector<2x32xf32>
    %556 = tpu.matmul %555, %447, %cst_144 {dimension_numbers = #tpu.dot_dimension_numbers<[1], [0], [0], [1], [0, 0, 1, 1], [], []>} : vector<2x32xf32>, vector<32x32xf32>, vector<2x32xf32> -> vector<2x32xf32>
    %cst_145 = arith.constant dense<0.000000e+00> : vector<2x32xf32>
    %557 = tpu.matmul %555, %449, %cst_145 {dimension_numbers = #tpu.dot_dimension_numbers<[1], [0], [0], [1], [0, 0, 1, 1], [], []>} : vector<2x32xf32>, vector<32x32xf32>, vector<2x32xf32> -> vector<2x32xf32>
    %cst_146 = arith.constant dense<0.000000e+00> : vector<2x32xf32>
    %558 = tpu.matmul %555, %451, %cst_146 {dimension_numbers = #tpu.dot_dimension_numbers<[1], [0], [0], [1], [0, 0, 1, 1], [], []>} : vector<2x32xf32>, vector<32x32xf32>, vector<2x32xf32> -> vector<2x32xf32>
    %559 = vector.extract_strided_slice %443 {offsets = [8, 0], sizes = [2, 32], strides = [1, 1]} : vector<16x32xf32> to vector<2x32xf32>
    %560 = arith.addf %559, %556 : vector<2x32xf32>
    %561 = arith.negf %560 : vector<2x32xf32>
    %562 = math.exp %561 : vector<2x32xf32>
    %cst_147 = arith.constant 1.000000e+00 : f32
    %563 = vector.broadcast %cst_147 : f32 to vector<2x32xf32>
    %564 = arith.addf %563, %562 : vector<2x32xf32>
    %565 = arith.divf %563, %564 : vector<2x32xf32>
    %566 = vector.extract_strided_slice %444 {offsets = [8, 0], sizes = [2, 32], strides = [1, 1]} : vector<16x32xf32> to vector<2x32xf32>
    %567 = arith.addf %566, %557 : vector<2x32xf32>
    %568 = arith.negf %567 : vector<2x32xf32>
    %569 = math.exp %568 : vector<2x32xf32>
    %cst_148 = arith.constant 1.000000e+00 : f32
    %570 = vector.broadcast %cst_148 : f32 to vector<2x32xf32>
    %571 = arith.addf %570, %569 : vector<2x32xf32>
    %572 = arith.divf %570, %571 : vector<2x32xf32>
    %573 = vector.extract_strided_slice %445 {offsets = [8, 0], sizes = [2, 32], strides = [1, 1]} : vector<16x32xf32> to vector<2x32xf32>
    %574 = arith.addf %558, %454 : vector<2x32xf32>
    %575 = arith.mulf %565, %574 : vector<2x32xf32>
    %576 = arith.addf %573, %575 : vector<2x32xf32>
    %577 = math.tanh %576 : vector<2x32xf32>
    %578 = arith.subf %555, %577 : vector<2x32xf32>
    %579 = arith.mulf %572, %578 : vector<2x32xf32>
    %580 = arith.addf %577, %579 : vector<2x32xf32>
    %cst_149 = arith.constant dense<0.000000e+00> : vector<2x32xf32>
    %581 = tpu.matmul %580, %447, %cst_149 {dimension_numbers = #tpu.dot_dimension_numbers<[1], [0], [0], [1], [0, 0, 1, 1], [], []>} : vector<2x32xf32>, vector<32x32xf32>, vector<2x32xf32> -> vector<2x32xf32>
    %cst_150 = arith.constant dense<0.000000e+00> : vector<2x32xf32>
    %582 = tpu.matmul %580, %449, %cst_150 {dimension_numbers = #tpu.dot_dimension_numbers<[1], [0], [0], [1], [0, 0, 1, 1], [], []>} : vector<2x32xf32>, vector<32x32xf32>, vector<2x32xf32> -> vector<2x32xf32>
    %cst_151 = arith.constant dense<0.000000e+00> : vector<2x32xf32>
    %583 = tpu.matmul %580, %451, %cst_151 {dimension_numbers = #tpu.dot_dimension_numbers<[1], [0], [0], [1], [0, 0, 1, 1], [], []>} : vector<2x32xf32>, vector<32x32xf32>, vector<2x32xf32> -> vector<2x32xf32>
    %584 = vector.extract_strided_slice %443 {offsets = [10, 0], sizes = [2, 32], strides = [1, 1]} : vector<16x32xf32> to vector<2x32xf32>
    %585 = arith.addf %584, %581 : vector<2x32xf32>
    %586 = arith.negf %585 : vector<2x32xf32>
    %587 = math.exp %586 : vector<2x32xf32>
    %cst_152 = arith.constant 1.000000e+00 : f32
    %588 = vector.broadcast %cst_152 : f32 to vector<2x32xf32>
    %589 = arith.addf %588, %587 : vector<2x32xf32>
    %590 = arith.divf %588, %589 : vector<2x32xf32>
    %591 = vector.extract_strided_slice %444 {offsets = [10, 0], sizes = [2, 32], strides = [1, 1]} : vector<16x32xf32> to vector<2x32xf32>
    %592 = arith.addf %591, %582 : vector<2x32xf32>
    %593 = arith.negf %592 : vector<2x32xf32>
    %594 = math.exp %593 : vector<2x32xf32>
    %cst_153 = arith.constant 1.000000e+00 : f32
    %595 = vector.broadcast %cst_153 : f32 to vector<2x32xf32>
    %596 = arith.addf %595, %594 : vector<2x32xf32>
    %597 = arith.divf %595, %596 : vector<2x32xf32>
    %598 = vector.extract_strided_slice %445 {offsets = [10, 0], sizes = [2, 32], strides = [1, 1]} : vector<16x32xf32> to vector<2x32xf32>
    %599 = arith.addf %583, %454 : vector<2x32xf32>
    %600 = arith.mulf %590, %599 : vector<2x32xf32>
    %601 = arith.addf %598, %600 : vector<2x32xf32>
    %602 = math.tanh %601 : vector<2x32xf32>
    %603 = arith.subf %580, %602 : vector<2x32xf32>
    %604 = arith.mulf %597, %603 : vector<2x32xf32>
    %605 = arith.addf %602, %604 : vector<2x32xf32>
    %cst_154 = arith.constant dense<0.000000e+00> : vector<2x32xf32>
    %606 = tpu.matmul %605, %447, %cst_154 {dimension_numbers = #tpu.dot_dimension_numbers<[1], [0], [0], [1], [0, 0, 1, 1], [], []>} : vector<2x32xf32>, vector<32x32xf32>, vector<2x32xf32> -> vector<2x32xf32>
    %cst_155 = arith.constant dense<0.000000e+00> : vector<2x32xf32>
    %607 = tpu.matmul %605, %449, %cst_155 {dimension_numbers = #tpu.dot_dimension_numbers<[1], [0], [0], [1], [0, 0, 1, 1], [], []>} : vector<2x32xf32>, vector<32x32xf32>, vector<2x32xf32> -> vector<2x32xf32>
    %cst_156 = arith.constant dense<0.000000e+00> : vector<2x32xf32>
    %608 = tpu.matmul %605, %451, %cst_156 {dimension_numbers = #tpu.dot_dimension_numbers<[1], [0], [0], [1], [0, 0, 1, 1], [], []>} : vector<2x32xf32>, vector<32x32xf32>, vector<2x32xf32> -> vector<2x32xf32>
    %609 = vector.extract_strided_slice %443 {offsets = [12, 0], sizes = [2, 32], strides = [1, 1]} : vector<16x32xf32> to vector<2x32xf32>
    %610 = arith.addf %609, %606 : vector<2x32xf32>
    %611 = arith.negf %610 : vector<2x32xf32>
    %612 = math.exp %611 : vector<2x32xf32>
    %cst_157 = arith.constant 1.000000e+00 : f32
    %613 = vector.broadcast %cst_157 : f32 to vector<2x32xf32>
    %614 = arith.addf %613, %612 : vector<2x32xf32>
    %615 = arith.divf %613, %614 : vector<2x32xf32>
    %616 = vector.extract_strided_slice %444 {offsets = [12, 0], sizes = [2, 32], strides = [1, 1]} : vector<16x32xf32> to vector<2x32xf32>
    %617 = arith.addf %616, %607 : vector<2x32xf32>
    %618 = arith.negf %617 : vector<2x32xf32>
    %619 = math.exp %618 : vector<2x32xf32>
    %cst_158 = arith.constant 1.000000e+00 : f32
    %620 = vector.broadcast %cst_158 : f32 to vector<2x32xf32>
    %621 = arith.addf %620, %619 : vector<2x32xf32>
    %622 = arith.divf %620, %621 : vector<2x32xf32>
    %623 = vector.extract_strided_slice %445 {offsets = [12, 0], sizes = [2, 32], strides = [1, 1]} : vector<16x32xf32> to vector<2x32xf32>
    %624 = arith.addf %608, %454 : vector<2x32xf32>
    %625 = arith.mulf %615, %624 : vector<2x32xf32>
    %626 = arith.addf %623, %625 : vector<2x32xf32>
    %627 = math.tanh %626 : vector<2x32xf32>
    %628 = arith.subf %605, %627 : vector<2x32xf32>
    %629 = arith.mulf %622, %628 : vector<2x32xf32>
    %630 = arith.addf %627, %629 : vector<2x32xf32>
    %cst_159 = arith.constant dense<0.000000e+00> : vector<2x32xf32>
    %631 = tpu.matmul %630, %447, %cst_159 {dimension_numbers = #tpu.dot_dimension_numbers<[1], [0], [0], [1], [0, 0, 1, 1], [], []>} : vector<2x32xf32>, vector<32x32xf32>, vector<2x32xf32> -> vector<2x32xf32>
    %cst_160 = arith.constant dense<0.000000e+00> : vector<2x32xf32>
    %632 = tpu.matmul %630, %449, %cst_160 {dimension_numbers = #tpu.dot_dimension_numbers<[1], [0], [0], [1], [0, 0, 1, 1], [], []>} : vector<2x32xf32>, vector<32x32xf32>, vector<2x32xf32> -> vector<2x32xf32>
    %cst_161 = arith.constant dense<0.000000e+00> : vector<2x32xf32>
    %633 = tpu.matmul %630, %451, %cst_161 {dimension_numbers = #tpu.dot_dimension_numbers<[1], [0], [0], [1], [0, 0, 1, 1], [], []>} : vector<2x32xf32>, vector<32x32xf32>, vector<2x32xf32> -> vector<2x32xf32>
    %634 = vector.extract_strided_slice %443 {offsets = [14, 0], sizes = [2, 32], strides = [1, 1]} : vector<16x32xf32> to vector<2x32xf32>
    %635 = arith.addf %634, %631 : vector<2x32xf32>
    %636 = arith.negf %635 : vector<2x32xf32>
    %637 = math.exp %636 : vector<2x32xf32>
    %cst_162 = arith.constant 1.000000e+00 : f32
    %638 = vector.broadcast %cst_162 : f32 to vector<2x32xf32>
    %639 = arith.addf %638, %637 : vector<2x32xf32>
    %640 = arith.divf %638, %639 : vector<2x32xf32>
    %641 = vector.extract_strided_slice %444 {offsets = [14, 0], sizes = [2, 32], strides = [1, 1]} : vector<16x32xf32> to vector<2x32xf32>
    %642 = arith.addf %641, %632 : vector<2x32xf32>
    %643 = arith.negf %642 : vector<2x32xf32>
    %644 = math.exp %643 : vector<2x32xf32>
    %cst_163 = arith.constant 1.000000e+00 : f32
    %645 = vector.broadcast %cst_163 : f32 to vector<2x32xf32>
    %646 = arith.addf %645, %644 : vector<2x32xf32>
    %647 = arith.divf %645, %646 : vector<2x32xf32>
    %648 = vector.extract_strided_slice %445 {offsets = [14, 0], sizes = [2, 32], strides = [1, 1]} : vector<16x32xf32> to vector<2x32xf32>
    %649 = arith.addf %633, %454 : vector<2x32xf32>
    %650 = arith.mulf %640, %649 : vector<2x32xf32>
    %651 = arith.addf %648, %650 : vector<2x32xf32>
    %652 = math.tanh %651 : vector<2x32xf32>
    %653 = arith.subf %630, %652 : vector<2x32xf32>
    %654 = arith.mulf %647, %653 : vector<2x32xf32>
    %655 = arith.addf %652, %654 : vector<2x32xf32>
    %656 = vector.extract_strided_slice %441 {offsets = [0, 128], sizes = [16, 96], strides = [1, 1]} : vector<16x256xf32> to vector<16x96xf32>
    %657 = vector.extract_strided_slice %656 {offsets = [0, 0], sizes = [16, 32], strides = [1, 1]} : vector<16x96xf32> to vector<16x32xf32>
    %658 = vector.extract_strided_slice %656 {offsets = [0, 32], sizes = [16, 32], strides = [1, 1]} : vector<16x96xf32> to vector<16x32xf32>
    %659 = vector.extract_strided_slice %656 {offsets = [0, 64], sizes = [16, 32], strides = [1, 1]} : vector<16x96xf32> to vector<16x32xf32>
    %c0_164 = arith.constant 0 : index
    %c0_165 = arith.constant 0 : index
    %c0_166 = arith.constant 0 : index
    %660 = vector.load %arg11[%c0_164, %c0_165, %c0_166] : memref<3x32x32xf32, #tpu.memory_space<vmem>>, vector<1x32x32xf32>
    %661 = vector.shape_cast %660 : vector<1x32x32xf32> to vector<32x32xf32>
    %c1_167 = arith.constant 1 : index
    %c0_168 = arith.constant 0 : index
    %c0_169 = arith.constant 0 : index
    %662 = vector.load %arg11[%c1_167, %c0_168, %c0_169] : memref<3x32x32xf32, #tpu.memory_space<vmem>>, vector<1x32x32xf32>
    %663 = vector.shape_cast %662 : vector<1x32x32xf32> to vector<32x32xf32>
    %c2_170 = arith.constant 2 : index
    %c0_171 = arith.constant 0 : index
    %c0_172 = arith.constant 0 : index
    %664 = vector.load %arg11[%c2_170, %c0_171, %c0_172] : memref<3x32x32xf32, #tpu.memory_space<vmem>>, vector<1x32x32xf32>
    %665 = vector.shape_cast %664 : vector<1x32x32xf32> to vector<32x32xf32>
    %c0_173 = arith.constant 0 : index
    %c0_174 = arith.constant 0 : index
    %666 = vector.load %arg12[%c0_173, %c0_174] : memref<1x32xf32, #tpu.memory_space<vmem>>, vector<1x32xf32>
    %667 = vector.shape_cast %666 : vector<1x32xf32> to vector<1x32xf32>
    %668 = vector.broadcast %667 : vector<1x32xf32> to vector<2x32xf32>
    %cst_175 = arith.constant 0.000000e+00 : f32
    %669 = vector.broadcast %cst_175 : f32 to vector<2x32xf32>
    %cst_176 = arith.constant dense<0.000000e+00> : vector<2x32xf32>
    %670 = tpu.matmul %669, %661, %cst_176 {dimension_numbers = #tpu.dot_dimension_numbers<[1], [0], [0], [1], [0, 0, 1, 1], [], []>} : vector<2x32xf32>, vector<32x32xf32>, vector<2x32xf32> -> vector<2x32xf32>
    %cst_177 = arith.constant dense<0.000000e+00> : vector<2x32xf32>
    %671 = tpu.matmul %669, %663, %cst_177 {dimension_numbers = #tpu.dot_dimension_numbers<[1], [0], [0], [1], [0, 0, 1, 1], [], []>} : vector<2x32xf32>, vector<32x32xf32>, vector<2x32xf32> -> vector<2x32xf32>
    %cst_178 = arith.constant dense<0.000000e+00> : vector<2x32xf32>
    %672 = tpu.matmul %669, %665, %cst_178 {dimension_numbers = #tpu.dot_dimension_numbers<[1], [0], [0], [1], [0, 0, 1, 1], [], []>} : vector<2x32xf32>, vector<32x32xf32>, vector<2x32xf32> -> vector<2x32xf32>
    %673 = vector.extract_strided_slice %657 {offsets = [14, 0], sizes = [2, 32], strides = [1, 1]} : vector<16x32xf32> to vector<2x32xf32>
    %674 = arith.addf %673, %670 : vector<2x32xf32>
    %675 = arith.negf %674 : vector<2x32xf32>
    %676 = math.exp %675 : vector<2x32xf32>
    %cst_179 = arith.constant 1.000000e+00 : f32
    %677 = vector.broadcast %cst_179 : f32 to vector<2x32xf32>
    %678 = arith.addf %677, %676 : vector<2x32xf32>
    %679 = arith.divf %677, %678 : vector<2x32xf32>
    %680 = vector.extract_strided_slice %658 {offsets = [14, 0], sizes = [2, 32], strides = [1, 1]} : vector<16x32xf32> to vector<2x32xf32>
    %681 = arith.addf %680, %671 : vector<2x32xf32>
    %682 = arith.negf %681 : vector<2x32xf32>
    %683 = math.exp %682 : vector<2x32xf32>
    %cst_180 = arith.constant 1.000000e+00 : f32
    %684 = vector.broadcast %cst_180 : f32 to vector<2x32xf32>
    %685 = arith.addf %684, %683 : vector<2x32xf32>
    %686 = arith.divf %684, %685 : vector<2x32xf32>
    %687 = vector.extract_strided_slice %659 {offsets = [14, 0], sizes = [2, 32], strides = [1, 1]} : vector<16x32xf32> to vector<2x32xf32>
    %688 = arith.addf %672, %668 : vector<2x32xf32>
    %689 = arith.mulf %679, %688 : vector<2x32xf32>
    %690 = arith.addf %687, %689 : vector<2x32xf32>
    %691 = math.tanh %690 : vector<2x32xf32>
    %692 = arith.subf %669, %691 : vector<2x32xf32>
    %693 = arith.mulf %686, %692 : vector<2x32xf32>
    %694 = arith.addf %691, %693 : vector<2x32xf32>
    %cst_181 = arith.constant dense<0.000000e+00> : vector<2x32xf32>
    %695 = tpu.matmul %694, %661, %cst_181 {dimension_numbers = #tpu.dot_dimension_numbers<[1], [0], [0], [1], [0, 0, 1, 1], [], []>} : vector<2x32xf32>, vector<32x32xf32>, vector<2x32xf32> -> vector<2x32xf32>
    %cst_182 = arith.constant dense<0.000000e+00> : vector<2x32xf32>
    %696 = tpu.matmul %694, %663, %cst_182 {dimension_numbers = #tpu.dot_dimension_numbers<[1], [0], [0], [1], [0, 0, 1, 1], [], []>} : vector<2x32xf32>, vector<32x32xf32>, vector<2x32xf32> -> vector<2x32xf32>
    %cst_183 = arith.constant dense<0.000000e+00> : vector<2x32xf32>
    %697 = tpu.matmul %694, %665, %cst_183 {dimension_numbers = #tpu.dot_dimension_numbers<[1], [0], [0], [1], [0, 0, 1, 1], [], []>} : vector<2x32xf32>, vector<32x32xf32>, vector<2x32xf32> -> vector<2x32xf32>
    %698 = vector.extract_strided_slice %657 {offsets = [12, 0], sizes = [2, 32], strides = [1, 1]} : vector<16x32xf32> to vector<2x32xf32>
    %699 = arith.addf %698, %695 : vector<2x32xf32>
    %700 = arith.negf %699 : vector<2x32xf32>
    %701 = math.exp %700 : vector<2x32xf32>
    %cst_184 = arith.constant 1.000000e+00 : f32
    %702 = vector.broadcast %cst_184 : f32 to vector<2x32xf32>
    %703 = arith.addf %702, %701 : vector<2x32xf32>
    %704 = arith.divf %702, %703 : vector<2x32xf32>
    %705 = vector.extract_strided_slice %658 {offsets = [12, 0], sizes = [2, 32], strides = [1, 1]} : vector<16x32xf32> to vector<2x32xf32>
    %706 = arith.addf %705, %696 : vector<2x32xf32>
    %707 = arith.negf %706 : vector<2x32xf32>
    %708 = math.exp %707 : vector<2x32xf32>
    %cst_185 = arith.constant 1.000000e+00 : f32
    %709 = vector.broadcast %cst_185 : f32 to vector<2x32xf32>
    %710 = arith.addf %709, %708 : vector<2x32xf32>
    %711 = arith.divf %709, %710 : vector<2x32xf32>
    %712 = vector.extract_strided_slice %659 {offsets = [12, 0], sizes = [2, 32], strides = [1, 1]} : vector<16x32xf32> to vector<2x32xf32>
    %713 = arith.addf %697, %668 : vector<2x32xf32>
    %714 = arith.mulf %704, %713 : vector<2x32xf32>
    %715 = arith.addf %712, %714 : vector<2x32xf32>
    %716 = math.tanh %715 : vector<2x32xf32>
    %717 = arith.subf %694, %716 : vector<2x32xf32>
    %718 = arith.mulf %711, %717 : vector<2x32xf32>
    %719 = arith.addf %716, %718 : vector<2x32xf32>
    %cst_186 = arith.constant dense<0.000000e+00> : vector<2x32xf32>
    %720 = tpu.matmul %719, %661, %cst_186 {dimension_numbers = #tpu.dot_dimension_numbers<[1], [0], [0], [1], [0, 0, 1, 1], [], []>} : vector<2x32xf32>, vector<32x32xf32>, vector<2x32xf32> -> vector<2x32xf32>
    %cst_187 = arith.constant dense<0.000000e+00> : vector<2x32xf32>
    %721 = tpu.matmul %719, %663, %cst_187 {dimension_numbers = #tpu.dot_dimension_numbers<[1], [0], [0], [1], [0, 0, 1, 1], [], []>} : vector<2x32xf32>, vector<32x32xf32>, vector<2x32xf32> -> vector<2x32xf32>
    %cst_188 = arith.constant dense<0.000000e+00> : vector<2x32xf32>
    %722 = tpu.matmul %719, %665, %cst_188 {dimension_numbers = #tpu.dot_dimension_numbers<[1], [0], [0], [1], [0, 0, 1, 1], [], []>} : vector<2x32xf32>, vector<32x32xf32>, vector<2x32xf32> -> vector<2x32xf32>
    %723 = vector.extract_strided_slice %657 {offsets = [10, 0], sizes = [2, 32], strides = [1, 1]} : vector<16x32xf32> to vector<2x32xf32>
    %724 = arith.addf %723, %720 : vector<2x32xf32>
    %725 = arith.negf %724 : vector<2x32xf32>
    %726 = math.exp %725 : vector<2x32xf32>
    %cst_189 = arith.constant 1.000000e+00 : f32
    %727 = vector.broadcast %cst_189 : f32 to vector<2x32xf32>
    %728 = arith.addf %727, %726 : vector<2x32xf32>
    %729 = arith.divf %727, %728 : vector<2x32xf32>
    %730 = vector.extract_strided_slice %658 {offsets = [10, 0], sizes = [2, 32], strides = [1, 1]} : vector<16x32xf32> to vector<2x32xf32>
    %731 = arith.addf %730, %721 : vector<2x32xf32>
    %732 = arith.negf %731 : vector<2x32xf32>
    %733 = math.exp %732 : vector<2x32xf32>
    %cst_190 = arith.constant 1.000000e+00 : f32
    %734 = vector.broadcast %cst_190 : f32 to vector<2x32xf32>
    %735 = arith.addf %734, %733 : vector<2x32xf32>
    %736 = arith.divf %734, %735 : vector<2x32xf32>
    %737 = vector.extract_strided_slice %659 {offsets = [10, 0], sizes = [2, 32], strides = [1, 1]} : vector<16x32xf32> to vector<2x32xf32>
    %738 = arith.addf %722, %668 : vector<2x32xf32>
    %739 = arith.mulf %729, %738 : vector<2x32xf32>
    %740 = arith.addf %737, %739 : vector<2x32xf32>
    %741 = math.tanh %740 : vector<2x32xf32>
    %742 = arith.subf %719, %741 : vector<2x32xf32>
    %743 = arith.mulf %736, %742 : vector<2x32xf32>
    %744 = arith.addf %741, %743 : vector<2x32xf32>
    %cst_191 = arith.constant dense<0.000000e+00> : vector<2x32xf32>
    %745 = tpu.matmul %744, %661, %cst_191 {dimension_numbers = #tpu.dot_dimension_numbers<[1], [0], [0], [1], [0, 0, 1, 1], [], []>} : vector<2x32xf32>, vector<32x32xf32>, vector<2x32xf32> -> vector<2x32xf32>
    %cst_192 = arith.constant dense<0.000000e+00> : vector<2x32xf32>
    %746 = tpu.matmul %744, %663, %cst_192 {dimension_numbers = #tpu.dot_dimension_numbers<[1], [0], [0], [1], [0, 0, 1, 1], [], []>} : vector<2x32xf32>, vector<32x32xf32>, vector<2x32xf32> -> vector<2x32xf32>
    %cst_193 = arith.constant dense<0.000000e+00> : vector<2x32xf32>
    %747 = tpu.matmul %744, %665, %cst_193 {dimension_numbers = #tpu.dot_dimension_numbers<[1], [0], [0], [1], [0, 0, 1, 1], [], []>} : vector<2x32xf32>, vector<32x32xf32>, vector<2x32xf32> -> vector<2x32xf32>
    %748 = vector.extract_strided_slice %657 {offsets = [8, 0], sizes = [2, 32], strides = [1, 1]} : vector<16x32xf32> to vector<2x32xf32>
    %749 = arith.addf %748, %745 : vector<2x32xf32>
    %750 = arith.negf %749 : vector<2x32xf32>
    %751 = math.exp %750 : vector<2x32xf32>
    %cst_194 = arith.constant 1.000000e+00 : f32
    %752 = vector.broadcast %cst_194 : f32 to vector<2x32xf32>
    %753 = arith.addf %752, %751 : vector<2x32xf32>
    %754 = arith.divf %752, %753 : vector<2x32xf32>
    %755 = vector.extract_strided_slice %658 {offsets = [8, 0], sizes = [2, 32], strides = [1, 1]} : vector<16x32xf32> to vector<2x32xf32>
    %756 = arith.addf %755, %746 : vector<2x32xf32>
    %757 = arith.negf %756 : vector<2x32xf32>
    %758 = math.exp %757 : vector<2x32xf32>
    %cst_195 = arith.constant 1.000000e+00 : f32
    %759 = vector.broadcast %cst_195 : f32 to vector<2x32xf32>
    %760 = arith.addf %759, %758 : vector<2x32xf32>
    %761 = arith.divf %759, %760 : vector<2x32xf32>
    %762 = vector.extract_strided_slice %659 {offsets = [8, 0], sizes = [2, 32], strides = [1, 1]} : vector<16x32xf32> to vector<2x32xf32>
    %763 = arith.addf %747, %668 : vector<2x32xf32>
    %764 = arith.mulf %754, %763 : vector<2x32xf32>
    %765 = arith.addf %762, %764 : vector<2x32xf32>
    %766 = math.tanh %765 : vector<2x32xf32>
    %767 = arith.subf %744, %766 : vector<2x32xf32>
    %768 = arith.mulf %761, %767 : vector<2x32xf32>
    %769 = arith.addf %766, %768 : vector<2x32xf32>
    %cst_196 = arith.constant dense<0.000000e+00> : vector<2x32xf32>
    %770 = tpu.matmul %769, %661, %cst_196 {dimension_numbers = #tpu.dot_dimension_numbers<[1], [0], [0], [1], [0, 0, 1, 1], [], []>} : vector<2x32xf32>, vector<32x32xf32>, vector<2x32xf32> -> vector<2x32xf32>
    %cst_197 = arith.constant dense<0.000000e+00> : vector<2x32xf32>
    %771 = tpu.matmul %769, %663, %cst_197 {dimension_numbers = #tpu.dot_dimension_numbers<[1], [0], [0], [1], [0, 0, 1, 1], [], []>} : vector<2x32xf32>, vector<32x32xf32>, vector<2x32xf32> -> vector<2x32xf32>
    %cst_198 = arith.constant dense<0.000000e+00> : vector<2x32xf32>
    %772 = tpu.matmul %769, %665, %cst_198 {dimension_numbers = #tpu.dot_dimension_numbers<[1], [0], [0], [1], [0, 0, 1, 1], [], []>} : vector<2x32xf32>, vector<32x32xf32>, vector<2x32xf32> -> vector<2x32xf32>
    %773 = vector.extract_strided_slice %657 {offsets = [6, 0], sizes = [2, 32], strides = [1, 1]} : vector<16x32xf32> to vector<2x32xf32>
    %774 = arith.addf %773, %770 : vector<2x32xf32>
    %775 = arith.negf %774 : vector<2x32xf32>
    %776 = math.exp %775 : vector<2x32xf32>
    %cst_199 = arith.constant 1.000000e+00 : f32
    %777 = vector.broadcast %cst_199 : f32 to vector<2x32xf32>
    %778 = arith.addf %777, %776 : vector<2x32xf32>
    %779 = arith.divf %777, %778 : vector<2x32xf32>
    %780 = vector.extract_strided_slice %658 {offsets = [6, 0], sizes = [2, 32], strides = [1, 1]} : vector<16x32xf32> to vector<2x32xf32>
    %781 = arith.addf %780, %771 : vector<2x32xf32>
    %782 = arith.negf %781 : vector<2x32xf32>
    %783 = math.exp %782 : vector<2x32xf32>
    %cst_200 = arith.constant 1.000000e+00 : f32
    %784 = vector.broadcast %cst_200 : f32 to vector<2x32xf32>
    %785 = arith.addf %784, %783 : vector<2x32xf32>
    %786 = arith.divf %784, %785 : vector<2x32xf32>
    %787 = vector.extract_strided_slice %659 {offsets = [6, 0], sizes = [2, 32], strides = [1, 1]} : vector<16x32xf32> to vector<2x32xf32>
    %788 = arith.addf %772, %668 : vector<2x32xf32>
    %789 = arith.mulf %779, %788 : vector<2x32xf32>
    %790 = arith.addf %787, %789 : vector<2x32xf32>
    %791 = math.tanh %790 : vector<2x32xf32>
    %792 = arith.subf %769, %791 : vector<2x32xf32>
    %793 = arith.mulf %786, %792 : vector<2x32xf32>
    %794 = arith.addf %791, %793 : vector<2x32xf32>
    %cst_201 = arith.constant dense<0.000000e+00> : vector<2x32xf32>
    %795 = tpu.matmul %794, %661, %cst_201 {dimension_numbers = #tpu.dot_dimension_numbers<[1], [0], [0], [1], [0, 0, 1, 1], [], []>} : vector<2x32xf32>, vector<32x32xf32>, vector<2x32xf32> -> vector<2x32xf32>
    %cst_202 = arith.constant dense<0.000000e+00> : vector<2x32xf32>
    %796 = tpu.matmul %794, %663, %cst_202 {dimension_numbers = #tpu.dot_dimension_numbers<[1], [0], [0], [1], [0, 0, 1, 1], [], []>} : vector<2x32xf32>, vector<32x32xf32>, vector<2x32xf32> -> vector<2x32xf32>
    %cst_203 = arith.constant dense<0.000000e+00> : vector<2x32xf32>
    %797 = tpu.matmul %794, %665, %cst_203 {dimension_numbers = #tpu.dot_dimension_numbers<[1], [0], [0], [1], [0, 0, 1, 1], [], []>} : vector<2x32xf32>, vector<32x32xf32>, vector<2x32xf32> -> vector<2x32xf32>
    %798 = vector.extract_strided_slice %657 {offsets = [4, 0], sizes = [2, 32], strides = [1, 1]} : vector<16x32xf32> to vector<2x32xf32>
    %799 = arith.addf %798, %795 : vector<2x32xf32>
    %800 = arith.negf %799 : vector<2x32xf32>
    %801 = math.exp %800 : vector<2x32xf32>
    %cst_204 = arith.constant 1.000000e+00 : f32
    %802 = vector.broadcast %cst_204 : f32 to vector<2x32xf32>
    %803 = arith.addf %802, %801 : vector<2x32xf32>
    %804 = arith.divf %802, %803 : vector<2x32xf32>
    %805 = vector.extract_strided_slice %658 {offsets = [4, 0], sizes = [2, 32], strides = [1, 1]} : vector<16x32xf32> to vector<2x32xf32>
    %806 = arith.addf %805, %796 : vector<2x32xf32>
    %807 = arith.negf %806 : vector<2x32xf32>
    %808 = math.exp %807 : vector<2x32xf32>
    %cst_205 = arith.constant 1.000000e+00 : f32
    %809 = vector.broadcast %cst_205 : f32 to vector<2x32xf32>
    %810 = arith.addf %809, %808 : vector<2x32xf32>
    %811 = arith.divf %809, %810 : vector<2x32xf32>
    %812 = vector.extract_strided_slice %659 {offsets = [4, 0], sizes = [2, 32], strides = [1, 1]} : vector<16x32xf32> to vector<2x32xf32>
    %813 = arith.addf %797, %668 : vector<2x32xf32>
    %814 = arith.mulf %804, %813 : vector<2x32xf32>
    %815 = arith.addf %812, %814 : vector<2x32xf32>
    %816 = math.tanh %815 : vector<2x32xf32>
    %817 = arith.subf %794, %816 : vector<2x32xf32>
    %818 = arith.mulf %811, %817 : vector<2x32xf32>
    %819 = arith.addf %816, %818 : vector<2x32xf32>
    %cst_206 = arith.constant dense<0.000000e+00> : vector<2x32xf32>
    %820 = tpu.matmul %819, %661, %cst_206 {dimension_numbers = #tpu.dot_dimension_numbers<[1], [0], [0], [1], [0, 0, 1, 1], [], []>} : vector<2x32xf32>, vector<32x32xf32>, vector<2x32xf32> -> vector<2x32xf32>
    %cst_207 = arith.constant dense<0.000000e+00> : vector<2x32xf32>
    %821 = tpu.matmul %819, %663, %cst_207 {dimension_numbers = #tpu.dot_dimension_numbers<[1], [0], [0], [1], [0, 0, 1, 1], [], []>} : vector<2x32xf32>, vector<32x32xf32>, vector<2x32xf32> -> vector<2x32xf32>
    %cst_208 = arith.constant dense<0.000000e+00> : vector<2x32xf32>
    %822 = tpu.matmul %819, %665, %cst_208 {dimension_numbers = #tpu.dot_dimension_numbers<[1], [0], [0], [1], [0, 0, 1, 1], [], []>} : vector<2x32xf32>, vector<32x32xf32>, vector<2x32xf32> -> vector<2x32xf32>
    %823 = vector.extract_strided_slice %657 {offsets = [2, 0], sizes = [2, 32], strides = [1, 1]} : vector<16x32xf32> to vector<2x32xf32>
    %824 = arith.addf %823, %820 : vector<2x32xf32>
    %825 = arith.negf %824 : vector<2x32xf32>
    %826 = math.exp %825 : vector<2x32xf32>
    %cst_209 = arith.constant 1.000000e+00 : f32
    %827 = vector.broadcast %cst_209 : f32 to vector<2x32xf32>
    %828 = arith.addf %827, %826 : vector<2x32xf32>
    %829 = arith.divf %827, %828 : vector<2x32xf32>
    %830 = vector.extract_strided_slice %658 {offsets = [2, 0], sizes = [2, 32], strides = [1, 1]} : vector<16x32xf32> to vector<2x32xf32>
    %831 = arith.addf %830, %821 : vector<2x32xf32>
    %832 = arith.negf %831 : vector<2x32xf32>
    %833 = math.exp %832 : vector<2x32xf32>
    %cst_210 = arith.constant 1.000000e+00 : f32
    %834 = vector.broadcast %cst_210 : f32 to vector<2x32xf32>
    %835 = arith.addf %834, %833 : vector<2x32xf32>
    %836 = arith.divf %834, %835 : vector<2x32xf32>
    %837 = vector.extract_strided_slice %659 {offsets = [2, 0], sizes = [2, 32], strides = [1, 1]} : vector<16x32xf32> to vector<2x32xf32>
    %838 = arith.addf %822, %668 : vector<2x32xf32>
    %839 = arith.mulf %829, %838 : vector<2x32xf32>
    %840 = arith.addf %837, %839 : vector<2x32xf32>
    %841 = math.tanh %840 : vector<2x32xf32>
    %842 = arith.subf %819, %841 : vector<2x32xf32>
    %843 = arith.mulf %836, %842 : vector<2x32xf32>
    %844 = arith.addf %841, %843 : vector<2x32xf32>
    %cst_211 = arith.constant dense<0.000000e+00> : vector<2x32xf32>
    %845 = tpu.matmul %844, %661, %cst_211 {dimension_numbers = #tpu.dot_dimension_numbers<[1], [0], [0], [1], [0, 0, 1, 1], [], []>} : vector<2x32xf32>, vector<32x32xf32>, vector<2x32xf32> -> vector<2x32xf32>
    %cst_212 = arith.constant dense<0.000000e+00> : vector<2x32xf32>
    %846 = tpu.matmul %844, %663, %cst_212 {dimension_numbers = #tpu.dot_dimension_numbers<[1], [0], [0], [1], [0, 0, 1, 1], [], []>} : vector<2x32xf32>, vector<32x32xf32>, vector<2x32xf32> -> vector<2x32xf32>
    %cst_213 = arith.constant dense<0.000000e+00> : vector<2x32xf32>
    %847 = tpu.matmul %844, %665, %cst_213 {dimension_numbers = #tpu.dot_dimension_numbers<[1], [0], [0], [1], [0, 0, 1, 1], [], []>} : vector<2x32xf32>, vector<32x32xf32>, vector<2x32xf32> -> vector<2x32xf32>
    %848 = vector.extract_strided_slice %657 {offsets = [0, 0], sizes = [2, 32], strides = [1, 1]} : vector<16x32xf32> to vector<2x32xf32>
    %849 = arith.addf %848, %845 : vector<2x32xf32>
    %850 = arith.negf %849 : vector<2x32xf32>
    %851 = math.exp %850 : vector<2x32xf32>
    %cst_214 = arith.constant 1.000000e+00 : f32
    %852 = vector.broadcast %cst_214 : f32 to vector<2x32xf32>
    %853 = arith.addf %852, %851 : vector<2x32xf32>
    %854 = arith.divf %852, %853 : vector<2x32xf32>
    %855 = vector.extract_strided_slice %658 {offsets = [0, 0], sizes = [2, 32], strides = [1, 1]} : vector<16x32xf32> to vector<2x32xf32>
    %856 = arith.addf %855, %846 : vector<2x32xf32>
    %857 = arith.negf %856 : vector<2x32xf32>
    %858 = math.exp %857 : vector<2x32xf32>
    %cst_215 = arith.constant 1.000000e+00 : f32
    %859 = vector.broadcast %cst_215 : f32 to vector<2x32xf32>
    %860 = arith.addf %859, %858 : vector<2x32xf32>
    %861 = arith.divf %859, %860 : vector<2x32xf32>
    %862 = vector.extract_strided_slice %659 {offsets = [0, 0], sizes = [2, 32], strides = [1, 1]} : vector<16x32xf32> to vector<2x32xf32>
    %863 = arith.addf %847, %668 : vector<2x32xf32>
    %864 = arith.mulf %854, %863 : vector<2x32xf32>
    %865 = arith.addf %862, %864 : vector<2x32xf32>
    %866 = math.tanh %865 : vector<2x32xf32>
    %867 = arith.subf %844, %866 : vector<2x32xf32>
    %868 = arith.mulf %861, %867 : vector<2x32xf32>
    %869 = arith.addf %866, %868 : vector<2x32xf32>
    %870 = tpu.concatenate %655, %869 in 1 : vector<2x32xf32>, vector<2x32xf32> -> vector<2x64xf32>
    %c0_216 = arith.constant 0 : index
    %c0_217 = arith.constant 0 : index
    %871 = vector.load %arg13[%c0_216, %c0_217] : memref<64x64xf32, #tpu.memory_space<vmem>>, vector<64x64xf32>
    %cst_218 = arith.constant dense<0.000000e+00> : vector<2x64xf32>
    %872 = tpu.matmul %870, %871, %cst_218 {dimension_numbers = #tpu.dot_dimension_numbers<[1], [0], [0], [1], [0, 0, 1, 1], [], []>} : vector<2x64xf32>, vector<64x64xf32>, vector<2x64xf32> -> vector<2x64xf32>
    %c0_219 = arith.constant 0 : index
    %c0_220 = arith.constant 0 : index
    %873 = vector.load %arg14[%c0_219, %c0_220] : memref<1x64xf32, #tpu.memory_space<vmem>>, vector<1x64xf32>
    %874 = vector.broadcast %873 : vector<1x64xf32> to vector<2x64xf32>
    %875 = arith.addf %872, %874 : vector<2x64xf32>
    %cst_221 = arith.constant 0.000000e+00 : f32
    %876 = vector.broadcast %cst_221 : f32 to vector<2x64xf32>
    %877 = arith.maximumf %875, %876 : vector<2x64xf32>
    %c0_222 = arith.constant 0 : index
    %c0_223 = arith.constant 0 : index
    %878 = vector.load %arg15[%c0_222, %c0_223] : memref<64x2xf32, #tpu.memory_space<vmem>>, vector<64x2xf32>
    %cst_224 = arith.constant dense<0.000000e+00> : vector<2x2xf32>
    %879 = tpu.matmul %877, %878, %cst_224 {dimension_numbers = #tpu.dot_dimension_numbers<[1], [0], [0], [1], [0, 0, 1, 1], [], []>} : vector<2x64xf32>, vector<64x2xf32>, vector<2x2xf32> -> vector<2x2xf32>
    %c0_225 = arith.constant 0 : index
    %c0_226 = arith.constant 0 : index
    %880 = vector.load %arg16[%c0_225, %c0_226] : memref<1x2xf32, #tpu.memory_space<vmem>>, vector<1x2xf32>
    %881 = vector.broadcast %880 : vector<1x2xf32> to vector<2x2xf32>
    %882 = arith.addf %879, %881 : vector<2x2xf32>
    %c0_227 = arith.constant 0 : index
    %c0_228 = arith.constant 0 : index
    %883 = vector.load %arg17[%c0_227, %c0_228] : memref<2x2xf32, #tpu.memory_space<vmem>>, vector<2x2xf32>
    tpu.vector_store %arg17[%c0_227, %c0_228], %882 {strides = array<i32>} : memref<2x2xf32, #tpu.memory_space<vmem>>, vector<2x2xf32>,
    return
  }
}

</mosaic_0001>

<bundles_post_ra>
// kernel: bert_gru_sentiment_forward.1
= control target key start
LH: loop header
LB: loop body
LE: loop exit
PB: predicated region body
PF: predicated region fallthrough
CT: control target
= control target key end

     0   :  { %s14446_s0 = inlined_call_operand.vmem [shape: bf16[16,768], index: 0, kind: input, shape index: {}]   ;;  %s14447_s1 = inlined_call_operand.vmem [shape: bf16[768,256], index: 1, kind: input, shape index: {}]   ;;  %s14448_s2 = inlined_call_operand.vmem [shape: f32[1,256], index: 2, kind: input, shape index: {}]   ;;  %s14449_s3 = inlined_call_operand.vmem [shape: f32[3,32,32], index: 3, kind: input, shape index: {}]   ;;  %s14450_s4 = inlined_call_operand.vmem [shape: f32[1,32], index: 4, kind: input, shape index: {}]   ;;  %s14451_s5 = inlined_call_operand.vmem [shape: f32[3,32,32], index: 5, kind: input, shape index: {}]   ;;  %s14452_s6 = inlined_call_operand.vmem [shape: f32[1,32], index: 6, kind: input, shape index: {}]   ;;  %s14453_s7 = inlined_call_operand.vmem [shape: f32[64,256], index: 7, kind: input, shape index: {}]   ;;  %s14454_s8 = inlined_call_operand.vmem [shape: f32[1,256], index: 8, kind: input, shape index: {}]   ;;  %s14455_s9 = inlined_call_operand.vmem [shape: f32[3,32,32], index: 9, kind: input, shape index: {}]   ;;  %s14456_s10 = inlined_call_operand.vmem [shape: f32[1,32], index: 10, kind: input, shape index: {}]   ;;  %s14457_s11 = inlined_call_operand.vmem [shape: f32[3,32,32], index: 11, kind: input, shape index: {}]   ;;  %s14458_s12 = inlined_call_operand.vmem [shape: f32[1,32], index: 12, kind: input, shape index: {}]   ;;  %s14459_s13 = inlined_call_operand.vmem [shape: f32[64,64], index: 13, kind: input, shape index: {}]   ;;  %s14460_s14 = inlined_call_operand.vmem [shape: f32[1,64], index: 14, kind: input, shape index: {}]   ;;  %s14461_s15 = inlined_call_operand.vmem [shape: f32[64,2], index: 15, kind: input, shape index: {}]   ;;  %s14462_s16 = inlined_call_operand.vmem [shape: f32[1,2], index: 16, kind: input, shape index: {}]   ;;  %s14463_s17 = inlined_call_operand.hbm [shape: f32[2,2], index: 17, kind: output, shape index: {}]  }
   0x1   :  { %14466 = sst [smem:[#allocation5_spill]] %s14446_s0 }
   0x2   :  { %14467 = sst [smem:[#allocation6_spill]] %s14447_s1 }
   0x3   :  { %s14468_s26 = sld [smem:[#allocation6_spill]]  ;;  %s14469_s24 = sld [smem:[#allocation5_spill]]  ;;  %v12578_v33 = vmov 0.0|0.0   ;;  %v810_v39 = vld [vmem:[%s14449_s3] sm:$0xff]  ;;  %v811_v40 = vld [vmem:[%s14449_s3 + $0x8] sm:$0xff]  ;;  %vm12579_vm0 = vmmov 0  }
   0x4   :  { %11445 = vmatprep.subr.bf16.mxu1 %v12578_v33  ;;  %v12796_v41 = vpack.c.bf16 %v811_v40, %v810_v39  ;;  %v12580_v42 = vmov 0.0   ;;  %v812_v44 = vld [vmem:[%s14449_s3 + $0x10] sm:$0xff]  ;;  %v813_v45 = vld [vmem:[%s14449_s3 + $0x18] sm:$0xff] }
   0x5   :  { %10359 = vmatprep.mubr.msk.f32.mxu1 %vm12579_vm0, %v12580_v42  ;;  %v12813_v47 = vpack.c.bf16 %v813_v45, %v812_v44 }
   0x6   :  { %11447 = vmatpush3.bf16.msra.mxu1 %v12796_v41 }
   0x7   :  { %11448 = vmatprep.subr.bf16.mxu1 %v12578_v33 }
   0x9   :  { %v12080_v0 = vld [vmem:[%s14468_s26 + $0x4] ss:$8 sps:$4 sm:$0xff]   ;;  %v12082_v1 = vld [vmem:[%s14468_s26] ss:$8 sps:$4 sm:$0xff]   ;;  %v12083_v2 = vld [vmem:[%s14468_s26 + $0x14] ss:$8 sps:$4 sm:$0xff]  }
   0xa   :  { %681 = vmatprep.subr.bf16.mxu0 %v12080_v0  ;;  %v12085_v3 = vld [vmem:[%s14468_s26 + $0x10] ss:$8 sps:$4 sm:$0xff]   ;;  %v12086_v4 = vld [vmem:[%s14468_s26 + $0x24] ss:$8 sps:$4 sm:$0xff]   ;;  %v12088_v5 = vld [vmem:[%s14468_s26 + $0x20] ss:$8 sps:$4 sm:$0xff]  }
   0xb   :  { %682 = vmatpush1.bf16.msra.mxu0 %v12082_v1  ;;  %v12089_v6 = vld [vmem:[%s14468_s26 + $0x34] ss:$8 sps:$4 sm:$0xff]   ;;  %v12091_v7 = vld [vmem:[%s14468_s26 + $0x30] ss:$8 sps:$4 sm:$0xff]   ;;  %v12092_v8 = vld [vmem:[%s14468_s26 + $0x44] ss:$8 sps:$4 sm:$0xff]  }
   0xc   :  { %683 = vmatprep.subr.bf16.mxu0 %v12083_v2  ;;  %v12094_v9 = vld [vmem:[%s14468_s26 + $0x40] ss:$8 sps:$4 sm:$0xff]   ;;  %v12095_v10 = vld [vmem:[%s14468_s26 + $0x54] ss:$8 sps:$4 sm:$0xff]   ;;  %v12097_v11 = vld [vmem:[%s14468_s26 + $0x50] ss:$8 sps:$4 sm:$0xff]  }
   0xd   :  { %v12098_v12 = vld [vmem:[%s14468_s26 + $0x64] ss:$8 sps:$4 sm:$0xff]   ;;  %v12100_v14 = vld [vmem:[%s14468_s26 + $0x60] ss:$8 sps:$4 sm:$0xff]   ;;  %v12101_v15 = vld [vmem:[%s14468_s26 + $0x74] ss:$8 sps:$4 sm:$0xff]  }
   0xe   :  { %v12130_v13 = vld [vmem:[%s14469_s24 + $0x4] ss:$24 sps:$4 sm:$0xff]   ;;  %v12103_v16 = vld [vmem:[%s14468_s26 + $0x70] ss:$8 sps:$4 sm:$0xff]   ;;  %v12106_v18 = vld [vmem:[%s14468_s26 + $0x80] ss:$8 sps:$4 sm:$0xff]  }
   0xf   :  { %684 = vmatpush1.bf16.msra.mxu0 %v12085_v3  ;;  %713 = vmatprep.mubr.bf16.mxu0 %v12130_v13  ;;  %v12104_v17 = vld [vmem:[%s14468_s26 + $0x84] ss:$8 sps:$4 sm:$0xff]   ;;  %v12107_v19 = vld [vmem:[%s14468_s26 + $0x94] ss:$8 sps:$4 sm:$0xff]   ;;  %v12109_v20 = vld [vmem:[%s14468_s26 + $0x90] ss:$8 sps:$4 sm:$0xff]  }
  0x10   :  { %685 = vmatprep.subr.bf16.mxu0 %v12086_v4  ;;  %v12110_v21 = vld [vmem:[%s14468_s26 + $0xa4] ss:$8 sps:$4 sm:$0xff]   ;;  %v12112_v22 = vld [vmem:[%s14468_s26 + $0xa0] ss:$8 sps:$4 sm:$0xff]   ;;  %v12113_v23 = vld [vmem:[%s14468_s26 + $0xb4] ss:$8 sps:$4 sm:$0xff]  }
  0x11   :  { %v12115_v24 = vld [vmem:[%s14468_s26 + $0xb0] ss:$8 sps:$4 sm:$0xff]   ;;  %v12116_v25 = vld [vmem:[%s14468_s26 + $0xc4] ss:$8 sps:$4 sm:$0xff]   ;;  %v12118_v26 = vld [vmem:[%s14468_s26 + $0xc0] ss:$8 sps:$4 sm:$0xff]  }
  0x12   :  { %v12119_v27 = vld [vmem:[%s14468_s26 + $0xd4] ss:$8 sps:$4 sm:$0xff]   ;;  %v12121_v28 = vld [vmem:[%s14468_s26 + $0xd0] ss:$8 sps:$4 sm:$0xff]   ;;  %v12122_v29 = vld [vmem:[%s14468_s26 + $0xe4] ss:$8 sps:$4 sm:$0xff]  }
  0x13   :  { %686 = vmatpush1.bf16.msra.mxu0 %v12088_v5  ;;  %v12124_v30 = vld [vmem:[%s14468_s26 + $0xe0] ss:$8 sps:$4 sm:$0xff]   ;;  %v12125_v31 = vld [vmem:[%s14468_s26 + $0xf4] ss:$8 sps:$4 sm:$0xff]   ;;  %v12127_v32 = vld [vmem:[%s14468_s26 + $0xf0] ss:$8 sps:$4 sm:$0xff]  }
  0x14   :  { %687 = vmatprep.subr.bf16.mxu0 %v12089_v6  ;;  %v12133_v34 = vld [vmem:[%s14468_s26 + $0x104] ss:$8 sps:$4 sm:$0xff]   ;;  %v12128_v35 = vld [vmem:[%s14469_s24] ss:$24 sps:$4 sm:$0xff]   ;;  %v12136_v38 = vld [vmem:[%s14468_s26 + $0x114] ss:$8 sps:$4 sm:$0xff]  }
  0x15   :  { %v12131_v36 = vld [vmem:[%s14468_s26 + $0x100] ss:$8 sps:$4 sm:$0xff]   ;;  %v12181_v37 = vld [vmem:[%s14469_s24 + $0xc] ss:$24 sps:$4 sm:$0xff]   ;;  %v12134_v43 = vld [vmem:[%s14468_s26 + $0x110] ss:$8 sps:$4 sm:$0xff]  }
  0x16   :  { %v12139_v46 = vld [vmem:[%s14468_s26 + $0x124] ss:$8 sps:$4 sm:$0xff]  }
  0x17   :  { %688 = vmatpush1.bf16.msra.mxu0 %v12091_v7 }
  0x18   :  { %689 = vmatprep.subr.bf16.mxu0 %v12092_v8 }
  0x1b   :  { %690 = vmatpush1.bf16.msra.mxu0 %v12094_v9 }
  0x1c   :  { %691 = vmatprep.subr.bf16.mxu0 %v12095_v10 }
  0x1f   :  { %692 = vmatpush1.bf16.msra.mxu0 %v12097_v11 }
  0x20   :  { %693 = vmatprep.subr.bf16.mxu0 %v12098_v12 }
  0x23   :  { %694 = vmatpush1.bf16.msra.mxu0 %v12100_v14 }
  0x24   :  { %695 = vmatprep.subr.bf16.mxu0 %v12101_v15 }
  0x27   :  { %696 = vmatpush1.bf16.msra.mxu0 %v12103_v16 }
  0x28   :  { %697 = vmatprep.subr.bf16.mxu0 %v12104_v17 }
  0x2b   :  { %698 = vmatpush1.bf16.msra.mxu0 %v12106_v18 }
  0x2c   :  { %699 = vmatprep.subr.bf16.mxu0 %v12107_v19 }
  0x2f   :  { %700 = vmatpush1.bf16.msra.mxu0 %v12109_v20 }
  0x30   :  { %701 = vmatprep.subr.bf16.mxu0 %v12110_v21 }
  0x33   :  { %702 = vmatpush1.bf16.msra.mxu0 %v12112_v22 }
  0x34   :  { %703 = vmatprep.subr.bf16.mxu0 %v12113_v23 }
  0x37   :  { %704 = vmatpush1.bf16.msra.mxu0 %v12115_v24 }
  0x38   :  { %705 = vmatprep.subr.bf16.mxu0 %v12116_v25 }
  0x3b   :  { %706 = vmatpush1.bf16.msra.mxu0 %v12118_v26 }
  0x3c   :  { %707 = vmatprep.subr.bf16.mxu0 %v12119_v27 }
  0x3f   :  { %708 = vmatpush1.bf16.msra.mxu0 %v12121_v28 }
  0x40   :  { %709 = vmatprep.subr.bf16.mxu0 %v12122_v29 }
  0x43   :  { %710 = vmatpush1.bf16.msra.mxu0 %v12124_v30 }
  0x44   :  { %711 = vmatprep.subr.bf16.mxu0 %v12125_v31 }
  0x47   :  { %712 = vmatpush1.bf16.msra.mxu0 %v12127_v32 }
  0x48   :  { %724 = vmatprep.subr.bf16.mxu0 %v12133_v34 }
  0x4a   :  { %714 = vmatmul.mubr.bf16.vlgmr.msra.gmra.mrb[0].mxu0 %v12128_v35 }
  0x4b   :  { %725 = vmatpush1.bf16.msra.mxu0 %v12131_v36  ;;  %756 = vmatprep.mubr.bf16.mxu0 %v12181_v37 }
  0x4c   :  { %726 = vmatprep.subr.bf16.mxu0 %v12136_v38 }
  0x4d   :  { %22 = vsyncpa [#allocation3], 0  ;;  %v12137_v48 = vld [vmem:[%s14468_s26 + $0x120] ss:$8 sps:$4 sm:$0xff]   ;;  %v12142_v49 = vld [vmem:[%s14468_s26 + $0x134] ss:$8 sps:$4 sm:$0xff]   ;;  %11450 = vmatpush3.bf16.msra.mxu1 %v12813_v47 }
  0x4e   :  { %11451 = vmatprep.subr.bf16.mxu1 %v12578_v33  ;;  %v9663_v50 = vld [vmem:[%s14449_s3 + $0x20] sm:$0xff]  ;;  %v9664_v51 = vld [vmem:[%s14449_s3 + $0x28] sm:$0xff]  ;;  %v9665_v52 = vld [vmem:[%s14449_s3 + $0x30] sm:$0xff]  ;;  %s12582_s27 = smov 32   ;;  %vm831_vm1 = vcmask 261120   ;;  %vm5013_vm2 = vcmask 1041408  }
  0x4f   :  { %727 = vmatpush1.bf16.msra.mxu0 %v12134_v43  ;;  %v12140_v53 = vld [vmem:[%s14468_s26 + $0x130] ss:$8 sps:$4 sm:$0xff]   ;;  %v12837_v54 = vpack.c.bf16 %v9664_v51, %v9663_v50  ;;  %v12145_v56 = vld [vmem:[%s14468_s26 + $0x144] ss:$8 sps:$4 sm:$0xff]   ;;  %v12143_v60 = vld [vmem:[%s14468_s26 + $0x140] ss:$8 sps:$4 sm:$0xff]  }
  0x50   :  { %728 = vmatprep.subr.bf16.mxu0 %v12139_v46  ;;  %10360 = vmatmul.mubr.f32.vlgmr.msra.gmra.mrb[0].mxu1 %v12580_v42  ;;  %v9666_v55 = vld [vmem:[%s14449_s3 + $0x38] sm:$0xff]  ;;  %v9667_v58 = vld [vmem:[%s14449_s3 + $0x40] sm:$0xff]  ;;  %v9668_v59 = vld [vmem:[%s14449_s3 + $0x48] sm:$0xff]  ;;  %vm5015_vm3 = vcmask 1043456   ;;  %vm5017_vm4 = vcmask 1045504   ;;  %vm5074_vm5 = vcmask 523264  }
  0x51   :  { %10370 = vmatprep.mubr.msk.f32.mxu1 %vm12579_vm0, %v12580_v42  ;;  %11453 = vmatpush3.bf16.msra.mxu1 %v12837_v54  ;;  %v12848_v57 = vpack.c.bf16 %v9666_v55, %v9665_v52  ;;  %v12148_v61 = vld [vmem:[%s14468_s26 + $0x154] ss:$8 sps:$4 sm:$0xff]   ;;  %v12864_v62 = vpack.c.bf16 %v9668_v59, %v9667_v58  ;;  %v12146_v1 = vld [vmem:[%s14468_s26 + $0x150] ss:$8 sps:$4 sm:$0xff]   ;;  %v12151_v2 = vld [vmem:[%s14468_s26 + $0x164] ss:$8 sps:$4 sm:$0xff]  }
  0x52   :  { %11454 = vmatprep.subr.bf16.mxu1 %v12578_v33  ;;  %v9669_v63 = vld [vmem:[%s14449_s3 + $0x50] sm:$0xff]  ;;  %v9670_v0 = vld [vmem:[%s14449_s3 + $0x58] sm:$0xff]  ;;  %v12149_v4 = vld [vmem:[%s14468_s26 + $0x160] ss:$8 sps:$4 sm:$0xff]   ;;  %s12584_s20 = smov [#allocation2]   ;;  %vm9545_vm6 = vcmask 9216  }
  0x53   :  { %729 = vmatpush1.bf16.msra.mxu0 %v12137_v48  ;;  %v12881_v3 = vpack.c.bf16 %v9670_v0, %v9669_v63  ;;  %v12154_v5 = vld [vmem:[%s14468_s26 + $0x174] ss:$8 sps:$4 sm:$0xff]   ;;  %v12152_v6 = vld [vmem:[%s14468_s26 + $0x170] ss:$8 sps:$4 sm:$0xff]   ;;  %v12157_v7 = vld [vmem:[%s14468_s26 + $0x184] ss:$8 sps:$4 sm:$0xff]  }
  0x54   :  { %730 = vmatprep.subr.bf16.mxu0 %v12142_v49  ;;  %v12155_v8 = vld [vmem:[%s14468_s26 + $0x180] ss:$8 sps:$4 sm:$0xff]   ;;  %v12160_v9 = vld [vmem:[%s14468_s26 + $0x194] ss:$8 sps:$4 sm:$0xff]   ;;  %v12158_v10 = vld [vmem:[%s14468_s26 + $0x190] ss:$8 sps:$4 sm:$0xff]  }
  0x55   :  { %11456 = vmatpush3.bf16.msra.mxu1 %v12848_v57  ;;  %v12163_v11 = vld [vmem:[%s14468_s26 + $0x1a4] ss:$8 sps:$4 sm:$0xff]   ;;  %v12161_v12 = vld [vmem:[%s14468_s26 + $0x1a0] ss:$8 sps:$4 sm:$0xff]   ;;  %v12166_v13 = vld [vmem:[%s14468_s26 + $0x1b4] ss:$8 sps:$4 sm:$0xff]  }
  0x56   :  { %11457 = vmatprep.subr.bf16.mxu1 %v12578_v33  ;;  %v12164_v14 = vld [vmem:[%s14468_s26 + $0x1b0] ss:$8 sps:$4 sm:$0xff]   ;;  %v12169_v15 = vld [vmem:[%s14468_s26 + $0x1c4] ss:$8 sps:$4 sm:$0xff]   ;;  %v12167_v16 = vld [vmem:[%s14468_s26 + $0x1c0] ss:$8 sps:$4 sm:$0xff]  }
  0x57   :  { %731 = vmatpush1.bf16.msra.mxu0 %v12140_v53  ;;  %v12172_v17 = vld [vmem:[%s14468_s26 + $0x1d4] ss:$8 sps:$4 sm:$0xff]   ;;  %v12170_v18 = vld [vmem:[%s14468_s26 + $0x1d0] ss:$8 sps:$4 sm:$0xff]   ;;  %v12175_v19 = vld [vmem:[%s14468_s26 + $0x1e4] ss:$8 sps:$4 sm:$0xff]  }
  0x58   :  { %732 = vmatprep.subr.bf16.mxu0 %v12145_v56  ;;  %10371 = vmatmul.mubr.f32.vlgmr.msra.gmra.mrb[2].mxu1 %v12580_v42  ;;  %v12173_v20 = vld [vmem:[%s14468_s26 + $0x1e0] ss:$8 sps:$4 sm:$0xff]   ;;  %v12178_v21 = vld [vmem:[%s14468_s26 + $0x1f4] ss:$8 sps:$4 sm:$0xff]   ;;  %v12176_v22 = vld [vmem:[%s14468_s26 + $0x1f0] ss:$8 sps:$4 sm:$0xff]  }
  0x59   :  { %11459 = vmatpush3.bf16.msra.mxu1 %v12864_v62  ;;  %10381 = vmatprep.mubr.msk.f32.mxu1 %vm12579_vm0, %v12580_v42  ;;  %v12184_v23 = vld [vmem:[%s14468_s26 + $0x204] ss:$8 sps:$4 sm:$0xff]   ;;  %v12179_v24 = vld [vmem:[%s14469_s24 + $0x8] ss:$24 sps:$4 sm:$0xff]   ;;  %v12187_v27 = vld [vmem:[%s14468_s26 + $0x214] ss:$8 sps:$4 sm:$0xff]  }
  0x5a   :  { %11460 = vmatprep.subr.bf16.mxu1 %v12578_v33  ;;  %v12182_v25 = vld [vmem:[%s14468_s26 + $0x200] ss:$8 sps:$4 sm:$0xff]   ;;  %v12232_v26 = vld [vmem:[%s14469_s24 + $0x14] ss:$24 sps:$4 sm:$0xff]   ;;  %v12185_v28 = vld [vmem:[%s14468_s26 + $0x210] ss:$8 sps:$4 sm:$0xff]  }
  0x5b   :  { %733 = vmatpush1.bf16.msra.mxu0 %v12143_v60  ;;  %v12190_v29 = vld [vmem:[%s14468_s26 + $0x224] ss:$8 sps:$4 sm:$0xff]   ;;  %v12188_v30 = vld [vmem:[%s14468_s26 + $0x220] ss:$8 sps:$4 sm:$0xff]   ;;  %v12193_v31 = vld [vmem:[%s14468_s26 + $0x234] ss:$8 sps:$4 sm:$0xff]  }
  0x5c   :  { %734 = vmatprep.subr.bf16.mxu0 %v12148_v61  ;;  %v12191_v32 = vld [vmem:[%s14468_s26 + $0x230] ss:$8 sps:$4 sm:$0xff]   ;;  %v12196_v34 = vld [vmem:[%s14468_s26 + $0x244] ss:$8 sps:$4 sm:$0xff]   ;;  %v12194_v35 = vld [vmem:[%s14468_s26 + $0x240] ss:$8 sps:$4 sm:$0xff]  }
  0x5d   :  { %11462 = vmatpush3.bf16.msra.mxu1 %v12881_v3  ;;  %v12199_v36 = vld [vmem:[%s14468_s26 + $0x254] ss:$8 sps:$4 sm:$0xff]   ;;  %v12197_v37 = vld [vmem:[%s14468_s26 + $0x250] ss:$8 sps:$4 sm:$0xff]   ;;  %v12202_v38 = vld [vmem:[%s14468_s26 + $0x264] ss:$8 sps:$4 sm:$0xff]  }
  0x5e   :  { %11463 = vmatprep.subr.bf16.mxu1 %v12578_v33  ;;  %v12200_v39 = vld [vmem:[%s14468_s26 + $0x260] ss:$8 sps:$4 sm:$0xff]   ;;  %v12205_v40 = vld [vmem:[%s14468_s26 + $0x274] ss:$8 sps:$4 sm:$0xff]   ;;  %v12203_v43 = vld [vmem:[%s14468_s26 + $0x270] ss:$8 sps:$4 sm:$0xff]  }
  0x5f   :  { %735 = vmatpush1.bf16.msra.mxu0 %v12146_v1  ;;  %v12208_v44 = vld [vmem:[%s14468_s26 + $0x284] ss:$8 sps:$4 sm:$0xff]   ;;  %v12206_v45 = vld [vmem:[%s14468_s26 + $0x280] ss:$8 sps:$4 sm:$0xff]   ;;  %v12211_v46 = vld [vmem:[%s14468_s26 + $0x294] ss:$8 sps:$4 sm:$0xff]  }
  0x60   :  { %736 = vmatprep.subr.bf16.mxu0 %v12151_v2  ;;  %10382 = vmatmul.mubr.f32.vlgmr.msra.gmra.mrb[4].mxu1 %v12580_v42  ;;  %v12209_v48 = vld [vmem:[%s14468_s26 + $0x290] ss:$8 sps:$4 sm:$0xff]   ;;  %v12214_v49 = vld [vmem:[%s14468_s26 + $0x2a4] ss:$8 sps:$4 sm:$0xff]   ;;  %v12212_v50 = vld [vmem:[%s14468_s26 + $0x2a0] ss:$8 sps:$4 sm:$0xff]  }
  0x61   :  { %11465 = vmatpush3.bf16.msra.mxu1 %v12796_v41  ;;  %10392 = vmatprep.mubr.msk.f32.mxu1 %vm12579_vm0, %v12580_v42  ;;  %v12217_v51 = vld [vmem:[%s14468_s26 + $0x2b4] ss:$8 sps:$4 sm:$0xff]   ;;  %v12215_v52 = vld [vmem:[%s14468_s26 + $0x2b0] ss:$8 sps:$4 sm:$0xff]   ;;  %v12220_v53 = vld [vmem:[%s14468_s26 + $0x2c4] ss:$8 sps:$4 sm:$0xff]  }
  0x62   :  { %11466 = vmatprep.subr.bf16.mxu1 %v12578_v33  ;;  %v12218_v55 = vld [vmem:[%s14468_s26 + $0x2c0] ss:$8 sps:$4 sm:$0xff]   ;;  %v12223_v56 = vld [vmem:[%s14468_s26 + $0x2d4] ss:$8 sps:$4 sm:$0xff]   ;;  %v12221_v58 = vld [vmem:[%s14468_s26 + $0x2d0] ss:$8 sps:$4 sm:$0xff]  }
  0x63   :  { %737 = vmatpush1.bf16.msra.mxu0 %v12149_v4  ;;  %v12226_v59 = vld [vmem:[%s14468_s26 + $0x2e4] ss:$8 sps:$4 sm:$0xff]   ;;  %v12224_v60 = vld [vmem:[%s14468_s26 + $0x2e0] ss:$8 sps:$4 sm:$0xff]   ;;  %v12229_v61 = vld [vmem:[%s14468_s26 + $0x2f4] ss:$8 sps:$4 sm:$0xff]  }
  0x64   :  { %738 = vmatprep.subr.bf16.mxu0 %v12154_v5  ;;  %v12227_v63 = vld [vmem:[%s14468_s26 + $0x2f0] ss:$8 sps:$4 sm:$0xff]   ;;  %v2913_v0 = vld [vmem:[%s14451_s5] sm:$0xff]  ;;  %v2914_v1 = vld [vmem:[%s14451_s5 + $0x8] sm:$0xff]  ;;  %s12581_s26 = smov 64  }
  0x65   :  { %11468 = vmatpush3.bf16.msra.mxu1 %v12813_v47  ;;  %v12230_v2 = vld [vmem:[%s14469_s24 + $0x10] ss:$24 sps:$4 sm:$0xff]   ;;  %v13063_v4 = vpack.c.bf16 %v2914_v1, %v2913_v0 }
  0x66   :  { %11469 = vmatprep.subr.bf16.mxu1 %v12578_v33  ;;  %v2915_v5 = vld [vmem:[%s14451_s5 + $0x10] sm:$0xff] }
  0x67   :  { %739 = vmatpush1.bf16.msra.mxu0 %v12152_v6  ;;  %v2916_v6 = vld [vmem:[%s14451_s5 + $0x18] sm:$0xff] }
  0x68   :  { %740 = vmatprep.subr.bf16.mxu0 %v12157_v7  ;;  %v13073_v7 = vpack.c.bf16 %v2916_v6, %v2915_v5 }
  0x6b   :  { %741 = vmatpush1.bf16.msra.mxu0 %v12155_v8  ;;  %v9713_v8 = vld [vmem:[%s14451_s5 + $0x40] sm:$0xff] }
  0x6c   :  { %742 = vmatprep.subr.bf16.mxu0 %v12160_v9  ;;  %v9714_v9 = vld [vmem:[%s14451_s5 + $0x48] sm:$0xff] }
  0x6f   :  { %743 = vmatpush1.bf16.msra.mxu0 %v12158_v10  ;;  %v13085_v10 = vpack.c.bf16 %v9714_v9, %v9713_v8 }
  0x70   :  { %744 = vmatprep.subr.bf16.mxu0 %v12163_v11  ;;  %v9715_v11 = vld [vmem:[%s14451_s5 + $0x50] sm:$0xff] }
  0x73   :  { %745 = vmatpush1.bf16.msra.mxu0 %v12161_v12  ;;  %v9716_v12 = vld [vmem:[%s14451_s5 + $0x58] sm:$0xff] }
  0x74   :  { %746 = vmatprep.subr.bf16.mxu0 %v12166_v13  ;;  %v13096_v13 = vpack.c.bf16 %v9716_v12, %v9715_v11 }
  0x77   :  { %747 = vmatpush1.bf16.msra.mxu0 %v12164_v14 }
  0x78   :  { %748 = vmatprep.subr.bf16.mxu0 %v12169_v15 }
  0x7b   :  { %749 = vmatpush1.bf16.msra.mxu0 %v12167_v16 }
  0x7c   :  { %750 = vmatprep.subr.bf16.mxu0 %v12172_v17 }
  0x7f   :  { %751 = vmatpush1.bf16.msra.mxu0 %v12170_v18 }
  0x80   :  { %752 = vmatprep.subr.bf16.mxu0 %v12175_v19 }
  0x83   :  { %753 = vmatpush1.bf16.msra.mxu0 %v12173_v20  ;;  %v161_v20 = vlaneseq }
  0x84   :  { %754 = vmatprep.subr.bf16.mxu0 %v12178_v21 }
  0x85   :  { %v13106_v21 = vshrl.u32 %v161_v20, 7 }
  0x87   :  { %755 = vmatpush1.bf16.msra.mxu0 %v12176_v22  ;;  %v163_v22 = vsub.s32 0, %v13106_v21 }
  0x88   :  { %767 = vmatprep.subr.bf16.mxu0 %v12184_v23  ;;  %v159_v23 = vld [vmem:[%s14448_s2] sm:$0x3] }
  0x8a   :  { %757 = vmatmul.mubr.bf16.vlgmr.msra.gmra.mrb[0].mxu0 %v12179_v24  ;;  %v167_v24 = vsub.s32 1, %v13106_v21 }
  0x8b   :  { %768 = vmatpush1.bf16.msra.mxu0 %v12182_v25  ;;  %799 = vmatprep.mubr.bf16.mxu0 %v12232_v26  ;;  %v164_v25 = vrot.slane %v159_v23, %v163_v22 }
  0x8c   :  { %769 = vmatprep.subr.bf16.mxu0 %v12187_v27  ;;  %v168_v26 = vrot.slane %v159_v23, %v167_v24 }
  0x8f   :  { %770 = vmatpush1.bf16.msra.mxu0 %v12185_v28 }
  0x90   :  { %771 = vmatprep.subr.bf16.mxu0 %v12190_v29 }
  0x93   :  { %772 = vmatpush1.bf16.msra.mxu0 %v12188_v30 }
  0x94   :  { %773 = vmatprep.subr.bf16.mxu0 %v12193_v31 }
  0x97   :  { %774 = vmatpush1.bf16.msra.mxu0 %v12191_v32 }
  0x98   :  { %775 = vmatprep.subr.bf16.mxu0 %v12196_v34 }
  0x9b   :  { %776 = vmatpush1.bf16.msra.mxu0 %v12194_v35 }
  0x9c   :  { %777 = vmatprep.subr.bf16.mxu0 %v12199_v36 }
  0x9f   :  { %778 = vmatpush1.bf16.msra.mxu0 %v12197_v37 }
  0xa0   :  { %779 = vmatprep.subr.bf16.mxu0 %v12202_v38 }
  0xa3   :  { %780 = vmatpush1.bf16.msra.mxu0 %v12200_v39 }
  0xa4   :  { %781 = vmatprep.subr.bf16.mxu0 %v12205_v40 }
  0xa7   :  { %782 = vmatpush1.bf16.msra.mxu0 %v12203_v43 }
  0xa8   :  { %783 = vmatprep.subr.bf16.mxu0 %v12208_v44 }
  0xab   :  { %784 = vmatpush1.bf16.msra.mxu0 %v12206_v45 }
  0xac   :  { %785 = vmatprep.subr.bf16.mxu0 %v12211_v46 }
  0xaf   :  { %786 = vmatpush1.bf16.msra.mxu0 %v12209_v48 }
  0xb0   :  { %787 = vmatprep.subr.bf16.mxu0 %v12214_v49 }
  0xb3   :  { %788 = vmatpush1.bf16.msra.mxu0 %v12212_v50  ;;  %v13130_v50 = vld [vmem:[%s14450_s4] ss:$0 sm:$0xff]  ;;  %s12583_s4 = smov 96  }
  0xb4   :  { %789 = vmatprep.subr.bf16.mxu0 %v12217_v51 }
  0xb7   :  { %790 = vmatpush1.bf16.msra.mxu0 %v12215_v52 }
  0xb8   :  { %791 = vmatprep.subr.bf16.mxu0 %v12220_v53 }
  0xbb   :  { %792 = vmatpush1.bf16.msra.mxu0 %v12218_v55  ;;  %v9717_v55 = vld [vmem:[%s14452_s6] ss:$0 sm:$0xff] }
  0xbc   :  { %793 = vmatprep.subr.bf16.mxu0 %v12223_v56 }
  0xbf   :  { %794 = vmatpush1.bf16.msra.mxu0 %v12221_v58 }
  0xc0   :  { %795 = vmatprep.subr.bf16.mxu0 %v12226_v59 }
  0xc3   :  { %796 = vmatpush1.bf16.msra.mxu0 %v12224_v60 }
  0xc4   :  { %797 = vmatprep.subr.bf16.mxu0 %v12229_v61 }
  0xc7   :  { %798 = vmatpush1.bf16.msra.mxu0 %v12227_v63 }
  0xc8   :  { %11589 = vmatprep.subr.bf16.mxu0 %v12578_v33 }
  0xca   :  { %800 = vmatmul.mubr.bf16.vlgmr.msra.gmra.mrb[0].mxu0 %v12230_v2 }
  0xcb   :  { %11591 = vmatpush3.bf16.msra.mxu0 %v13063_v4  ;;  %10623 = vmatprep.mubr.msk.f32.mxu0 %vm12579_vm0, %v12580_v42 }
  0xcc   :  { %11592 = vmatprep.subr.bf16.mxu0 %v12578_v33 }
  0xcf   :  { %11594 = vmatpush3.bf16.msra.mxu0 %v13073_v7 }
  0xd0   :  { %11601 = vmatprep.subr.bf16.mxu0 %v12578_v33 }
  0xd2   :  { %10624 = vmatmul.mubr.f32.vlgmr.msra.gmra.mrb[4].mxu0 %v12580_v42 }
  0xd3   :  { %11603 = vmatpush3.bf16.msra.mxu0 %v13085_v10  ;;  %10645 = vmatprep.mubr.msk.f32.mxu0 %vm12579_vm0, %v12580_v42 }
  0xd4   :  { %11604 = vmatprep.subr.bf16.mxu0 %v12578_v33 }
  0xd7   :  { %11606 = vmatpush3.bf16.msra.mxu0 %v13096_v13 }
  0xd8   :  { %11613 = vmatprep.subr.bf16.mxu0 %v12578_v33 }
  0xda   :  { %10646 = vmatmul.mubr.f32.vlgmr.msra.gmra.mrb[6].mxu0 %v12580_v42 }
  0xdb   :  { %10667 = vmatprep.mubr.msk.f32.mxu0 %vm12579_vm0, %v12580_v42 }
 0x123   :  { %v901_v14 = vpop.f32.mrb[0].mxu1 }
 0x124   :  { %v10361_v15 = vpop.f32.mrb[1].mxu1 }
 0x12b   :  { %v971_v16 = vpop.f32.mrb[2].mxu1 }
 0x12c   :  { %v10372_v17 = vpop.f32.mrb[3].mxu1 }
 0x133   :  { %v1059_v18 = vpop.f32.mrb[4].mxu1 }
 0x134   :  { %v10383_v19 = vpop.f32.mrb[5].mxu1  ;;  %v1060_v53 = vadd.f32 %v13130_v50, %v1059_v18 }
 0x19d   :  { %v801_v27 = vpop.f32.mrb[0].mxu0 }
 0x19e   :  { %v13117_v28 = vadd.f32 %v801_v27, %v164_v25  ;;  %v803_v29 = vpop.f32.mrb[1].mxu0 }
 0x19f   :  { %v13119_v30 = vadd.f32 %v803_v29, %v168_v26  ;;  %v805_v31 = vpop.f32.mrb[2].mxu0 }
 0x1a0   :  { %v975_v32 = vadd.f32 %v13117_v28, %v901_v14  ;;  %v13122_v34 = vadd.f32 %v805_v31, %v164_v25  ;;  %v807_v35 = vpop.f32.mrb[3].mxu0 }
 0x1a1   :  { %v13124_v38 = vadd.f32 %v807_v35, %v168_v26 }
 0x1a2   :  { %v9672_v36 = vmul.f32 -1.442695, %v975_v32 }
 0x1a4   :  { %12233 = vpow2.f32 %v9672_v36 }
 0x1a5   :  { %v3000_v37 = vpop.f32.mrb[4].mxu0 }
 0x1a6   :  { %v3075_v39 = vrot.slane %v3000_v37, 2  ;;  %v10625_v40 = vpop.f32.mrb[5].mxu0 }
 0x1a8   :  { %v3077_v43 = vadd.f32 %v13124_v38, %v3075_v39 }
 0x1aa   :  { %v9718_v44 = vmul.f32 -1.442695, %v3077_v43 }
 0x1ac   :  { %12235 = vpow2.f32 %v9718_v44 }
 0x1ad   :  { %v3162_v45 = vpop.f32.mrb[6].mxu0 }
 0x1ae   :  { %v12234_v46 = vpop.eup %12233  ;;  %v10647_v48 = vpop.f32.mrb[7].mxu0  ;;  %v3163_v59 = vadd.f32 %v9717_v55, %v3162_v45 }
 0x1af   :  { %v979_v49 = vadd.f32 1.0, %v12234_v46 }
 0x1b0   :  { %v3167_v60 = vrot.slane %v3163_v59, 2 }
 0x1b1   :  { %12237 = vrcp.f32 %v979_v49 }
 0x1b6   :  { %v12236_v51 = vpop.eup %12235 }
 0x1b7   :  { %v3081_v52 = vadd.f32 1.0, %v12236_v51 }
 0x1b9   :  { %12239 = vrcp.f32 %v3081_v52 }
 0x1bb   :  { %v12238_v56 = vpop.eup %12237 }
 0x1bc   :  { %v1063_v58 = vmul.f32 %v12238_v56, %v1060_v53 }
 0x1be   :  { %1065 = vrot.lane.b32.xlu0 %v1063_v58, %s12581_s26 }
 0x1c2   :  { %983 = vrot.lane.b32.xlu0 %v971_v16, %s12582_s27 }
 0x1c3   :  { %v12240_v61 = vpop.eup %12239 }
 0x1c4   :  { %v13138_v63 = vmul.f32 %v12240_v61, %v3167_v60 }
 0x230   :  { %v1066_v0 = vpop.permute.xlu0 %1065 }
 0x231   :  { %v1068_v1 = vadd.f32 %v13117_v28, %v1066_v0 }
 0x233   :  { %12241 = vtanh.f32 %v1068_v1 }
 0x234   :  { %v984_v6 = vpop.permute.xlu0 %983 }
 0x235   :  { %v986_v8 = vadd.f32 %v13117_v28, %v984_v6 }
 0x237   :  { %v9673_v9 = vmul.f32 -1.442695, %v986_v8 }
 0x239   :  { %12243 = vpow2.f32 %v9673_v9 }
 0x23d   :  { %v12242_v2 = vpop.eup %12241 }
 0x23e   :  { %v1070_v5 = vsub.f32 0.0, %v12242_v2 }
 0x240   :  { %1072 = vrot.lane.b32.xlu1 %v1070_v5, %s12583_s4 }
 0x243   :  { %v12244_v11 = vpop.eup %12243 }
 0x244   :  { %v990_v12 = vadd.f32 1.0, %v12244_v11 }
 0x246   :  { %12245 = vrcp.f32 %v990_v12 }
 0x250   :  { %v12246_v14 = vpop.eup %12245 }
 0x2b2   :  { %v1073_v15 = vpop.permute.xlu1 %1072 }
 0x2b3   :  { %v1075_v16 = vmul.f32 %v12246_v14, %v1073_v15 }
 0x2b5   :  { %1077 = vrot.lane.b32.xlu1 %v1075_v16, %s12582_s27 }
 0x327   :  { %v1078_v17 = vpop.permute.xlu1 %1077 }
 0x328   :  { %v13144_v18 = vadd.f32 %v12242_v2, %v1078_v17 }
 0x32a   :  { %1082 = vrot.lane.b32.xlu0 %v13144_v18, %s12581_s26 }
 0x39c   :  { %v1083_v19 = vpop.permute.xlu0 %1082 }
 0x39d   :  { %10393 = vmatmul.mubr.msk.f32.vlgmr.msra.gmra.mrb[6].mxu1 %vm831_vm1, %v1083_v19 }
 0x39e   :  { %11471 = vmatpush3.bf16.msra.mxu1 %v12837_v54  ;;  %10403 = vmatprep.mubr.msk.f32.mxu1 %vm12579_vm0, %v12580_v42 }
 0x39f   :  { %11472 = vmatprep.subr.bf16.mxu1 %v12578_v33 }
 0x3a2   :  { %11474 = vmatpush3.bf16.msra.mxu1 %v12848_v57 }
 0x3a3   :  { %11475 = vmatprep.subr.bf16.mxu1 %v12578_v33 }
 0x3a5   :  { %10404 = vmatmul.mubr.msk.f32.vlgmr.msra.gmra.mrb[8].mxu1 %vm831_vm1, %v1083_v19 }
 0x3a6   :  { %11477 = vmatpush3.bf16.msra.mxu1 %v12864_v62  ;;  %10414 = vmatprep.mubr.msk.f32.mxu1 %vm12579_vm0, %v12580_v42 }
 0x3a7   :  { %11478 = vmatprep.subr.bf16.mxu1 %v12578_v33 }
 0x3aa   :  { %11480 = vmatpush3.bf16.msra.mxu1 %v12881_v3 }
 0x3ab   :  { %11481 = vmatprep.subr.bf16.mxu1 %v12578_v33 }
 0x3ad   :  { %10415 = vmatmul.mubr.msk.f32.vlgmr.msra.gmra.mrb[10].mxu1 %vm831_vm1, %v1083_v19 }
 0x3ae   :  { %11483 = vmatpush3.bf16.msra.mxu1 %v12796_v41  ;;  %10425 = vmatprep.mubr.msk.f32.mxu1 %vm12579_vm0, %v12580_v42 }
 0x3af   :  { %11484 = vmatprep.subr.bf16.mxu1 %v12578_v33 }
 0x3b2   :  { %11486 = vmatpush3.bf16.msra.mxu1 %v12813_v47 }
 0x3b3   :  { %11487 = vmatprep.subr.bf16.mxu1 %v12578_v33 }
 0x470   :  { %v1152_v20 = vpop.f32.mrb[6].mxu1 }
 0x471   :  { %v1227_v23 = vrot.slane %v1152_v20, 6  ;;  %v10394_v25 = vpop.f32.mrb[7].mxu1 }
 0x473   :  { %v1229_v26 = vadd.f32 %v13117_v28, %v1227_v23 }
 0x475   :  { %v9676_v27 = vmul.f32 -1.442695, %v1229_v26 }
 0x477   :  { %12247 = vpow2.f32 %v9676_v27 }
 0x478   :  { %v1222_v29 = vpop.f32.mrb[8].mxu1 }
 0x479   :  { %v1237_v31 = vrot.slane %v1222_v29, 6  ;;  %v10405_v32 = vpop.f32.mrb[9].mxu1 }
 0x47b   :  { %1238 = vrot.lane.b32.xlu0 %v1237_v31, %s12582_s27 }
 0x480   :  { %v1314_v35 = vpop.f32.mrb[10].mxu1 }
 0x481   :  { %v12248_v36 = vpop.eup %12247  ;;  %v10416_v37 = vpop.f32.mrb[11].mxu1  ;;  %v1315_v40 = vadd.f32 %v13130_v50, %v1314_v35 }
 0x482   :  { %v1233_v39 = vadd.f32 1.0, %v12248_v36 }
 0x483   :  { %v1319_v43 = vrot.slane %v1315_v40, 6 }
 0x484   :  { %12249 = vrcp.f32 %v1233_v39 }
 0x48e   :  { %v12250_v44 = vpop.eup %12249 }
 0x48f   :  { %v1321_v45 = vmul.f32 %v12250_v44, %v1319_v43 }
 0x491   :  { %1323 = vrot.lane.b32.xlu1 %v1321_v45, %s12581_s26 }
 0x4ed   :  { %v1239_v55 = vpop.permute.xlu0 %1238 }
 0x4ee   :  { %v1241_v56 = vadd.f32 %v13117_v28, %v1239_v55 }
 0x4f0   :  { %v9677_v58 = vmul.f32 -1.442695, %v1241_v56 }
 0x503   :  { %v1324_v46 = vpop.permute.xlu1 %1323 }
 0x504   :  { %v1326_v48 = vadd.f32 %v13117_v28, %v1324_v46 }
 0x506   :  { %12251 = vtanh.f32 %v1326_v48 }
 0x507   :  { %12253 = vpow2.f32 %v9677_v58 }
 0x510   :  { %v12252_v49 = vpop.eup %12251 }
 0x511   :  { %v1329_v51 = vrot.slane %v12252_v49, 2  ;;  %v12254_v59 = vpop.eup %12253 }
 0x512   :  { %v1245_v60 = vadd.f32 1.0, %v12254_v59 }
 0x513   :  { %v1331_v52 = vsub.f32 %v13144_v18, %v1329_v51 }
 0x514   :  { %12255 = vrcp.f32 %v1245_v60 }
 0x515   :  { %v1333_v53 = vrot.slane %v1331_v52, 6 }
 0x517   :  { %1334 = vrot.lane.b32.xlu1 %v1333_v53, %s12583_s4 }
 0x51e   :  { %v12256_v61 = vpop.eup %12255 }
 0x589   :  { %v1335_v0 = vpop.permute.xlu1 %1334 }
 0x58a   :  { %v1337_v1 = vmul.f32 %v12256_v61, %v1335_v0 }
 0x58c   :  { %1339 = vrot.lane.b32.xlu0 %v1337_v1, %s12582_s27 }
 0x5fe   :  { %v1340_v2 = vpop.permute.xlu0 %1339 }
 0x5ff   :  { %v13178_v5 = vadd.f32 %v12252_v49, %v1340_v2 }
 0x601   :  { %v1344_v6 = vrot.slane %v13178_v5, 2 }
 0x603   :  { %1345 = vrot.lane.b32.xlu1 %v1344_v6, %s12581_s26 }
 0x675   :  { %v1346_v8 = vpop.permute.xlu1 %1345 }
 0x676   :  { %10426 = vmatmul.mubr.msk.f32.vlgmr.msra.gmra.mrb[12].mxu1 %vm831_vm1, %v1346_v8 }
 0x677   :  { %11489 = vmatpush3.bf16.msra.mxu1 %v12837_v54  ;;  %10436 = vmatprep.mubr.msk.f32.mxu1 %vm12579_vm0, %v12580_v42 }
 0x678   :  { %11490 = vmatprep.subr.bf16.mxu1 %v12578_v33 }
 0x67b   :  { %11492 = vmatpush3.bf16.msra.mxu1 %v12848_v57 }
 0x67c   :  { %11493 = vmatprep.subr.bf16.mxu1 %v12578_v33 }
 0x67e   :  { %10437 = vmatmul.mubr.msk.f32.vlgmr.msra.gmra.mrb[14].mxu1 %vm831_vm1, %v1346_v8 }
 0x67f   :  { %11495 = vmatpush3.bf16.msra.mxu1 %v12864_v62  ;;  %10447 = vmatprep.mubr.msk.f32.mxu1 %vm12579_vm0, %v12580_v42 }
 0x680   :  { %11496 = vmatprep.subr.bf16.mxu1 %v12578_v33 }
 0x683   :  { %11498 = vmatpush3.bf16.msra.mxu1 %v12881_v3 }
 0x684   :  { %11499 = vmatprep.subr.bf16.mxu1 %v12578_v33 }
 0x686   :  { %10448 = vmatmul.mubr.msk.f32.vlgmr.msra.gmra.mrb[16].mxu1 %vm831_vm1, %v1346_v8 }
 0x687   :  { %11501 = vmatpush3.bf16.msra.mxu1 %v12796_v41  ;;  %10458 = vmatprep.mubr.msk.f32.mxu1 %vm12579_vm0, %v12580_v42 }
 0x688   :  { %11502 = vmatprep.subr.bf16.mxu1 %v12578_v33 }
 0x68b   :  { %11504 = vmatpush3.bf16.msra.mxu1 %v12813_v47 }
 0x68c   :  { %11505 = vmatprep.subr.bf16.mxu1 %v12578_v33 }
 0x749   :  { %v1415_v9 = vpop.f32.mrb[12].mxu1 }
 0x74a   :  { %v1490_v11 = vrot.slane %v1415_v9, 4  ;;  %v10427_v12 = vpop.f32.mrb[13].mxu1 }
 0x74c   :  { %v1492_v14 = vadd.f32 %v13117_v28, %v1490_v11 }
 0x74e   :  { %v9681_v15 = vmul.f32 -1.442695, %v1492_v14 }
 0x750   :  { %12257 = vpow2.f32 %v9681_v15 }
 0x751   :  { %v1485_v16 = vpop.f32.mrb[14].mxu1 }
 0x752   :  { %v1500_v17 = vrot.slane %v1485_v16, 4  ;;  %v10438_v19 = vpop.f32.mrb[15].mxu1 }
 0x754   :  { %1501 = vrot.lane.b32.xlu1 %v1500_v17, %s12582_s27 }
 0x759   :  { %v1577_v20 = vpop.f32.mrb[16].mxu1 }
 0x75a   :  { %v12258_v23 = vpop.eup %12257  ;;  %v10449_v25 = vpop.f32.mrb[17].mxu1  ;;  %v1578_v27 = vadd.f32 %v13130_v50, %v1577_v20 }
 0x75b   :  { %v1496_v26 = vadd.f32 1.0, %v12258_v23 }
 0x75c   :  { %v1582_v29 = vrot.slane %v1578_v27, 4 }
 0x75d   :  { %12259 = vrcp.f32 %v1496_v26 }
 0x767   :  { %v12260_v31 = vpop.eup %12259 }
 0x768   :  { %v1584_v32 = vmul.f32 %v12260_v31, %v1582_v29 }
 0x76a   :  { %1586 = vrot.lane.b32.xlu0 %v1584_v32, %s12581_s26 }
 0x7c6   :  { %v1502_v44 = vpop.permute.xlu1 %1501 }
 0x7c7   :  { %v1504_v45 = vadd.f32 %v13117_v28, %v1502_v44 }
 0x7c9   :  { %v9682_v46 = vmul.f32 -1.442695, %v1504_v45 }
 0x7dc   :  { %v1587_v35 = vpop.permute.xlu0 %1586 }
 0x7dd   :  { %v1589_v36 = vadd.f32 %v13117_v28, %v1587_v35 }
 0x7df   :  { %12261 = vtanh.f32 %v1589_v36 }
 0x7e0   :  { %12263 = vpow2.f32 %v9682_v46 }
 0x7e9   :  { %v12262_v37 = vpop.eup %12261 }
 0x7ea   :  { %v1592_v39 = vrot.slane %v12262_v37, 2  ;;  %v12264_v48 = vpop.eup %12263 }
 0x7eb   :  { %v1508_v49 = vadd.f32 1.0, %v12264_v48 }
 0x7ec   :  { %v1594_v40 = vsub.f32 %v13178_v5, %v1592_v39 }
 0x7ed   :  { %12265 = vrcp.f32 %v1508_v49 }
 0x7ee   :  { %v1596_v43 = vrot.slane %v1594_v40, 6 }
 0x7f0   :  { %1597 = vrot.lane.b32.xlu0 %v1596_v43, %s12583_s4 }
 0x7f7   :  { %v12266_v51 = vpop.eup %12265 }
 0x862   :  { %v1598_v52 = vpop.permute.xlu0 %1597 }
 0x863   :  { %v1600_v53 = vmul.f32 %v12266_v51, %v1598_v52 }
 0x865   :  { %1602 = vrot.lane.b32.xlu1 %v1600_v53, %s12582_s27 }
 0x8d7   :  { %v1603_v55 = vpop.permute.xlu1 %1602 }
 0x8d8   :  { %v13212_v56 = vadd.f32 %v12262_v37, %v1603_v55 }
 0x8da   :  { %v1607_v58 = vrot.slane %v13212_v56, 4 }
 0x8dc   :  { %1608 = vrot.lane.b32.xlu0 %v1607_v58, %s12581_s26 }
 0x94e   :  { %v1609_v59 = vpop.permute.xlu0 %1608 }
 0x94f   :  { %10459 = vmatmul.mubr.msk.f32.vlgmr.msra.gmra.mrb[18].mxu1 %vm831_vm1, %v1609_v59 }
 0x950   :  { %11507 = vmatpush3.bf16.msra.mxu1 %v12837_v54  ;;  %10469 = vmatprep.mubr.msk.f32.mxu1 %vm12579_vm0, %v12580_v42 }
 0x951   :  { %11508 = vmatprep.subr.bf16.mxu1 %v12578_v33 }
 0x954   :  { %11510 = vmatpush3.bf16.msra.mxu1 %v12848_v57 }
 0x955   :  { %11511 = vmatprep.subr.bf16.mxu1 %v12578_v33 }
 0x957   :  { %10470 = vmatmul.mubr.msk.f32.vlgmr.msra.gmra.mrb[20].mxu1 %vm831_vm1, %v1609_v59 }
 0x958   :  { %11513 = vmatpush3.bf16.msra.mxu1 %v12864_v62  ;;  %10480 = vmatprep.mubr.msk.f32.mxu1 %vm12579_vm0, %v12580_v42 }
 0x959   :  { %11514 = vmatprep.subr.bf16.mxu1 %v12578_v33 }
 0x95c   :  { %11516 = vmatpush3.bf16.msra.mxu1 %v12881_v3 }
 0x95d   :  { %11517 = vmatprep.subr.bf16.mxu1 %v12578_v33 }
 0x95f   :  { %10481 = vmatmul.mubr.msk.f32.vlgmr.msra.gmra.mrb[22].mxu1 %vm831_vm1, %v1609_v59 }
 0x960   :  { %11519 = vmatpush3.bf16.msra.mxu1 %v12796_v41  ;;  %10491 = vmatprep.mubr.msk.f32.mxu1 %vm12579_vm0, %v12580_v42 }
 0x961   :  { %11520 = vmatprep.subr.bf16.mxu1 %v12578_v33 }
 0x964   :  { %11522 = vmatpush3.bf16.msra.mxu1 %v12813_v47 }
 0x965   :  { %11523 = vmatprep.subr.bf16.mxu1 %v12578_v33 }
 0xa22   :  { %v1678_v60 = vpop.f32.mrb[18].mxu1 }
 0xa23   :  { %v1753_v61 = vrot.slane %v1678_v60, 2  ;;  %v10460_v0 = vpop.f32.mrb[19].mxu1 }
 0xa25   :  { %v1755_v1 = vadd.f32 %v13117_v28, %v1753_v61 }
 0xa27   :  { %v9686_v2 = vmul.f32 -1.442695, %v1755_v1 }
 0xa29   :  { %12267 = vpow2.f32 %v9686_v2 }
 0xa2a   :  { %v1748_v6 = vpop.f32.mrb[20].mxu1 }
 0xa2b   :  { %v1763_v8 = vrot.slane %v1748_v6, 2  ;;  %v10471_v9 = vpop.f32.mrb[21].mxu1 }
 0xa2d   :  { %1764 = vrot.lane.b32.xlu0 %v1763_v8, %s12582_s27 }
 0xa32   :  { %v1840_v11 = vpop.f32.mrb[22].mxu1 }
 0xa33   :  { %v12268_v12 = vpop.eup %12267  ;;  %v10482_v14 = vpop.f32.mrb[23].mxu1  ;;  %v1841_v16 = vadd.f32 %v13130_v50, %v1840_v11 }
 0xa34   :  { %v1759_v15 = vadd.f32 1.0, %v12268_v12 }
 0xa35   :  { %v1845_v17 = vrot.slane %v1841_v16, 2 }
 0xa36   :  { %12269 = vrcp.f32 %v1759_v15 }
 0xa40   :  { %v12270_v19 = vpop.eup %12269 }
 0xa41   :  { %v1847_v20 = vmul.f32 %v12270_v19, %v1845_v17 }
 0xa43   :  { %1849 = vrot.lane.b32.xlu1 %v1847_v20, %s12581_s26 }
 0xa9f   :  { %v1765_v32 = vpop.permute.xlu0 %1764 }
 0xaa0   :  { %v1767_v35 = vadd.f32 %v13117_v28, %v1765_v32 }
 0xaa2   :  { %v9687_v36 = vmul.f32 -1.442695, %v1767_v35 }
 0xab5   :  { %v1850_v23 = vpop.permute.xlu1 %1849 }
 0xab6   :  { %v1852_v25 = vadd.f32 %v13117_v28, %v1850_v23 }
 0xab8   :  { %12271 = vtanh.f32 %v1852_v25 }
 0xab9   :  { %12273 = vpow2.f32 %v9687_v36 }
 0xac2   :  { %v12272_v26 = vpop.eup %12271 }
 0xac3   :  { %v1855_v27 = vrot.slane %v12272_v26, 2  ;;  %v12274_v37 = vpop.eup %12273 }
 0xac4   :  { %v1771_v39 = vadd.f32 1.0, %v12274_v37 }
 0xac5   :  { %v1857_v29 = vsub.f32 %v13212_v56, %v1855_v27 }
 0xac6   :  { %12275 = vrcp.f32 %v1771_v39 }
 0xac7   :  { %v1859_v31 = vrot.slane %v1857_v29, 6 }
 0xac9   :  { %1860 = vrot.lane.b32.xlu1 %v1859_v31, %s12583_s4 }
 0xad0   :  { %v12276_v40 = vpop.eup %12275 }
 0xb3b   :  { %v1861_v43 = vpop.permute.xlu1 %1860 }
 0xb3c   :  { %v1863_v44 = vmul.f32 %v12276_v40, %v1861_v43 }
 0xb3e   :  { %1865 = vrot.lane.b32.xlu0 %v1863_v44, %s12582_s27 }
 0xbb0   :  { %v1866_v45 = vpop.permute.xlu0 %1865 }
 0xbb1   :  { %v13246_v46 = vadd.f32 %v12272_v26, %v1866_v45 }
 0xbb3   :  { %v1870_v48 = vrot.slane %v13246_v46, 6 }
 0xbb5   :  { %1871 = vrot.lane.b32.xlu1 %v1870_v48, %s12581_s26 }
 0xc27   :  { %v1872_v49 = vpop.permute.xlu1 %1871 }
 0xc28   :  { %10492 = vmatmul.mubr.msk.f32.vlgmr.msra.gmra.mrb[24].mxu1 %vm831_vm1, %v1872_v49 }
 0xc29   :  { %11525 = vmatpush3.bf16.msra.mxu1 %v12837_v54  ;;  %10502 = vmatprep.mubr.msk.f32.mxu1 %vm12579_vm0, %v12580_v42 }
 0xc2a   :  { %11526 = vmatprep.subr.bf16.mxu1 %v12578_v33 }
 0xc2d   :  { %11528 = vmatpush3.bf16.msra.mxu1 %v12848_v57 }
 0xc2e   :  { %11529 = vmatprep.subr.bf16.mxu1 %v12578_v33 }
 0xc30   :  { %10503 = vmatmul.mubr.msk.f32.vlgmr.msra.gmra.mrb[26].mxu1 %vm831_vm1, %v1872_v49 }
 0xc31   :  { %11531 = vmatpush3.bf16.msra.mxu1 %v12864_v62  ;;  %10513 = vmatprep.mubr.msk.f32.mxu1 %vm12579_vm0, %v12580_v42 }
 0xc32   :  { %11532 = vmatprep.subr.bf16.mxu1 %v12578_v33 }
 0xc35   :  { %11534 = vmatpush3.bf16.msra.mxu1 %v12881_v3 }
 0xc36   :  { %11535 = vmatprep.subr.bf16.mxu1 %v12578_v33 }
 0xc38   :  { %10514 = vmatmul.mubr.msk.f32.vlgmr.msra.gmra.mrb[28].mxu1 %vm831_vm1, %v1872_v49 }
 0xc39   :  { %11537 = vmatpush3.bf16.msra.mxu1 %v12796_v41  ;;  %10524 = vmatprep.mubr.msk.f32.mxu1 %vm12579_vm0, %v12580_v42 }
 0xc3a   :  { %11538 = vmatprep.subr.bf16.mxu1 %v12578_v33 }
 0xc3d   :  { %11540 = vmatpush3.bf16.msra.mxu1 %v12813_v47 }
 0xc3e   :  { %11541 = vmatprep.subr.bf16.mxu1 %v12578_v33 }
 0xcfb   :  { %v1941_v28 = vpop.f32.mrb[24].mxu1 }
 0xcfc   :  { %v2015_v51 = vadd.f32 %v13122_v34, %v1941_v28  ;;  %v10493_v52 = vpop.f32.mrb[25].mxu1 }
 0xcfe   :  { %v9691_v53 = vmul.f32 -1.442695, %v2015_v51 }
 0xd00   :  { %12277 = vpow2.f32 %v9691_v53 }
 0xd03   :  { %v2011_v55 = vpop.f32.mrb[26].mxu1 }
 0xd04   :  { %2023 = vrot.lane.b32.xlu1 %v2011_v55, %s12582_s27  ;;  %v10504_v58 = vpop.f32.mrb[27].mxu1 }
 0xd0a   :  { %v12278_v59 = vpop.eup %12277 }
 0xd0b   :  { %v2019_v60 = vadd.f32 1.0, %v12278_v59  ;;  %v2099_v61 = vpop.f32.mrb[28].mxu1 }
 0xd0c   :  { %v10515_v0 = vpop.f32.mrb[29].mxu1  ;;  %v2100_v1 = vadd.f32 %v13130_v50, %v2099_v61 }
 0xd0d   :  { %12279 = vrcp.f32 %v2019_v60 }
 0xd17   :  { %v12280_v2 = vpop.eup %12279 }
 0xd18   :  { %v2103_v6 = vmul.f32 %v12280_v2, %v2100_v1 }
 0xd1a   :  { %2105 = vrot.lane.b32.xlu0 %v2103_v6, %s12581_s26 }
 0xd76   :  { %v2024_v16 = vpop.permute.xlu1 %2023 }
 0xd77   :  { %v2026_v17 = vadd.f32 %v13122_v34, %v2024_v16 }
 0xd79   :  { %v9692_v19 = vmul.f32 -1.442695, %v2026_v17 }
 0xd8c   :  { %v2106_v8 = vpop.permute.xlu0 %2105 }
 0xd8d   :  { %v2108_v9 = vadd.f32 %v13122_v34, %v2106_v8 }
 0xd8f   :  { %12281 = vtanh.f32 %v2108_v9 }
 0xd90   :  { %12283 = vpow2.f32 %v9692_v19 }
 0xd99   :  { %v12282_v11 = vpop.eup %12281 }
 0xd9a   :  { %v2111_v12 = vrot.slane %v12282_v11, 2  ;;  %v12284_v20 = vpop.eup %12283 }
 0xd9b   :  { %v2030_v23 = vadd.f32 1.0, %v12284_v20 }
 0xd9c   :  { %v2113_v14 = vsub.f32 %v13246_v46, %v2111_v12 }
 0xd9d   :  { %12285 = vrcp.f32 %v2030_v23 }
 0xd9e   :  { %v2115_v15 = vrot.slane %v2113_v14, 6 }
 0xda0   :  { %2116 = vrot.lane.b32.xlu0 %v2115_v15, %s12583_s4 }
 0xda7   :  { %v12286_v25 = vpop.eup %12285 }
 0xe12   :  { %v2117_v26 = vpop.permute.xlu0 %2116 }
 0xe13   :  { %v2119_v27 = vmul.f32 %v12286_v25, %v2117_v26 }
 0xe15   :  { %2121 = vrot.lane.b32.xlu1 %v2119_v27, %s12582_s27 }
 0xe87   :  { %v2122_v29 = vpop.permute.xlu1 %2121 }
 0xe88   :  { %v13280_v31 = vadd.f32 %v12282_v11, %v2122_v29 }
 0xe8a   :  { %2126 = vrot.lane.b32.xlu0 %v13280_v31, %s12581_s26 }
 0xefc   :  { %v2127_v32 = vpop.permute.xlu0 %2126 }
 0xefd   :  { %10525 = vmatmul.mubr.msk.f32.vlgmr.msra.gmra.mrb[30].mxu1 %vm831_vm1, %v2127_v32 }
 0xefe   :  { %11543 = vmatpush3.bf16.msra.mxu1 %v12837_v54  ;;  %10535 = vmatprep.mubr.msk.f32.mxu1 %vm12579_vm0, %v12580_v42 }
 0xeff   :  { %11544 = vmatprep.subr.bf16.mxu1 %v12578_v33 }
 0xf02   :  { %11546 = vmatpush3.bf16.msra.mxu1 %v12848_v57 }
 0xf03   :  { %11547 = vmatprep.subr.bf16.mxu1 %v12578_v33 }
 0xf05   :  { %10536 = vmatmul.mubr.msk.f32.vlgmr.msra.gmra.mrb[32].mxu1 %vm831_vm1, %v2127_v32 }
 0xf06   :  { %11549 = vmatpush3.bf16.msra.mxu1 %v12864_v62  ;;  %10546 = vmatprep.mubr.msk.f32.mxu1 %vm12579_vm0, %v12580_v42 }
 0xf07   :  { %11550 = vmatprep.subr.bf16.mxu1 %v12578_v33 }
 0xf0a   :  { %11552 = vmatpush3.bf16.msra.mxu1 %v12881_v3 }
 0xf0b   :  { %11553 = vmatprep.subr.bf16.mxu1 %v12578_v33 }
 0xf0d   :  { %10547 = vmatmul.mubr.msk.f32.vlgmr.msra.gmra.mrb[34].mxu1 %vm831_vm1, %v2127_v32 }
 0xf0e   :  { %11555 = vmatpush3.bf16.msra.mxu1 %v12796_v41  ;;  %10557 = vmatprep.mubr.msk.f32.mxu1 %vm12579_vm0, %v12580_v42 }
 0xf0f   :  { %11556 = vmatprep.subr.bf16.mxu1 %v12578_v33 }
 0xf12   :  { %11558 = vmatpush3.bf16.msra.mxu1 %v12813_v47 }
 0xf13   :  { %11559 = vmatprep.subr.bf16.mxu1 %v12578_v33 }
 0xfd0   :  { %v2196_v35 = vpop.f32.mrb[30].mxu1 }
 0xfd1   :  { %v2271_v36 = vrot.slane %v2196_v35, 6  ;;  %v10526_v37 = vpop.f32.mrb[31].mxu1 }
 0xfd3   :  { %v2273_v39 = vadd.f32 %v13122_v34, %v2271_v36 }
 0xfd5   :  { %v9696_v40 = vmul.f32 -1.442695, %v2273_v39 }
 0xfd7   :  { %12287 = vpow2.f32 %v9696_v40 }
 0xfd8   :  { %v2266_v43 = vpop.f32.mrb[32].mxu1 }
 0xfd9   :  { %v2281_v44 = vrot.slane %v2266_v43, 6  ;;  %v10537_v45 = vpop.f32.mrb[33].mxu1 }
 0xfdb   :  { %2282 = vrot.lane.b32.xlu0 %v2281_v44, %s12582_s27 }
 0xfe0   :  { %v2358_v48 = vpop.f32.mrb[34].mxu1 }
 0xfe1   :  { %v12288_v49 = vpop.eup %12287  ;;  %v10548_v28 = vpop.f32.mrb[35].mxu1  ;;  %v2359_v52 = vadd.f32 %v13130_v50, %v2358_v48 }
 0xfe2   :  { %v2277_v51 = vadd.f32 1.0, %v12288_v49 }
 0xfe3   :  { %v2363_v53 = vrot.slane %v2359_v52, 6 }
 0xfe4   :  { %12289 = vrcp.f32 %v2277_v51 }
 0xfee   :  { %v12290_v55 = vpop.eup %12289 }
 0xfef   :  { %v2365_v58 = vmul.f32 %v12290_v55, %v2363_v53 }
 0xff1   :  { %2367 = vrot.lane.b32.xlu1 %v2365_v58, %s12581_s26 }
0x104d   :  { %v2283_v6 = vpop.permute.xlu0 %2282 }
0x104e   :  { %v2285_v8 = vadd.f32 %v13122_v34, %v2283_v6 }
0x1050   :  { %v9697_v9 = vmul.f32 -1.442695, %v2285_v8 }
0x1063   :  { %v2368_v59 = vpop.permute.xlu1 %2367 }
0x1064   :  { %v2370_v60 = vadd.f32 %v13122_v34, %v2368_v59 }
0x1066   :  { %12291 = vtanh.f32 %v2370_v60 }
0x1067   :  { %12293 = vpow2.f32 %v9697_v9 }
0x1070   :  { %v12292_v61 = vpop.eup %12291 }
0x1071   :  { %v2373_v0 = vrot.slane %v12292_v61, 2  ;;  %v12294_v11 = vpop.eup %12293 }
0x1072   :  { %v2289_v12 = vadd.f32 1.0, %v12294_v11 }
0x1073   :  { %v2375_v1 = vsub.f32 %v13280_v31, %v2373_v0 }
0x1074   :  { %12295 = vrcp.f32 %v2289_v12 }
0x1075   :  { %v2377_v2 = vrot.slane %v2375_v1, 6 }
0x1077   :  { %2378 = vrot.lane.b32.xlu1 %v2377_v2, %s12583_s4 }
0x107e   :  { %v12296_v14 = vpop.eup %12295 }
0x10e9   :  { %v2379_v15 = vpop.permute.xlu1 %2378 }
0x10ea   :  { %v2381_v16 = vmul.f32 %v12296_v14, %v2379_v15  ;;  %v9709_v15 = vld [vmem:[%s14451_s5 + $0x20] sm:$0xff] }
0x10ec   :  { %2383 = vrot.lane.b32.xlu0 %v2381_v16, %s12582_s27  ;;  %v9710_v16 = vld [vmem:[%s14451_s5 + $0x28] sm:$0xff] }
0x115e   :  { %v2384_v17 = vpop.permute.xlu0 %2383 }
0x115f   :  { %v13314_v19 = vadd.f32 %v12292_v61, %v2384_v17  ;;  %v9711_v17 = vld [vmem:[%s14451_s5 + $0x30] sm:$0xff] }
0x1161   :  { %v2388_v20 = vrot.slane %v13314_v19, 2 }
0x1163   :  { %2389 = vrot.lane.b32.xlu1 %v2388_v20, %s12581_s26  ;;  %v9712_v20 = vld [vmem:[%s14451_s5 + $0x38] sm:$0xff] }
0x11d5   :  { %v2390_v23 = vpop.permute.xlu1 %2389 }
0x11d6   :  { %10558 = vmatmul.mubr.msk.f32.vlgmr.msra.gmra.mrb[36].mxu1 %vm831_vm1, %v2390_v23 }
0x11d7   :  { %11561 = vmatpush3.bf16.msra.mxu1 %v12837_v54  ;;  %10568 = vmatprep.mubr.msk.f32.mxu1 %vm12579_vm0, %v12580_v42 }
0x11d8   :  { %11562 = vmatprep.subr.bf16.mxu1 %v12578_v33 }
0x11db   :  { %11564 = vmatpush3.bf16.msra.mxu1 %v12848_v57 }
0x11dc   :  { %11565 = vmatprep.subr.bf16.mxu1 %v12578_v33 }
0x11de   :  { %10569 = vmatmul.mubr.msk.f32.vlgmr.msra.gmra.mrb[38].mxu1 %vm831_vm1, %v2390_v23 }
0x11df   :  { %11567 = vmatpush3.bf16.msra.mxu1 %v12864_v62  ;;  %10579 = vmatprep.mubr.msk.f32.mxu1 %vm12579_vm0, %v12580_v42 }
0x11e0   :  { %11568 = vmatprep.subr.bf16.mxu1 %v12578_v33 }
0x11e3   :  { %11570 = vmatpush3.bf16.msra.mxu1 %v12881_v3 }
0x11e4   :  { %11571 = vmatprep.subr.bf16.mxu1 %v12578_v33 }
0x11e6   :  { %10580 = vmatmul.mubr.msk.f32.vlgmr.msra.gmra.mrb[40].mxu1 %vm831_vm1, %v2390_v23  ;;  %v13371_v23 = vpack.c.bf16 %v9712_v20, %v9711_v17 }
0x11e7   :  { %11573 = vmatpush3.bf16.msra.mxu1 %v12796_v41  ;;  %10590 = vmatprep.mubr.msk.f32.mxu1 %vm12579_vm0, %v12580_v42 }
0x11e8   :  { %11574 = vmatprep.subr.bf16.mxu1 %v12578_v33 }
0x11eb   :  { %11576 = vmatpush3.bf16.msra.mxu1 %v12813_v47 }
0x11ec   :  { %11577 = vmatprep.subr.bf16.mxu1 %v12578_v33 }
0x12a9   :  { %v2459_v25 = vpop.f32.mrb[36].mxu1 }
0x12aa   :  { %v2534_v26 = vrot.slane %v2459_v25, 4  ;;  %v10559_v27 = vpop.f32.mrb[37].mxu1 }
0x12ac   :  { %v2536_v29 = vadd.f32 %v13122_v34, %v2534_v26 }
0x12ae   :  { %v9701_v32 = vmul.f32 -1.442695, %v2536_v29 }
0x12b0   :  { %12297 = vpow2.f32 %v9701_v32 }
0x12b1   :  { %v2529_v35 = vpop.f32.mrb[38].mxu1 }
0x12b2   :  { %v2544_v36 = vrot.slane %v2529_v35, 4  ;;  %v10570_v37 = vpop.f32.mrb[39].mxu1 }
0x12b4   :  { %2545 = vrot.lane.b32.xlu1 %v2544_v36, %s12582_s27 }
0x12b9   :  { %v2621_v41 = vpop.f32.mrb[40].mxu1 }
0x12ba   :  { %v12298_v39 = vpop.eup %12297  ;;  %v10581_v40 = vpop.f32.mrb[41].mxu1  ;;  %v2622_v47 = vadd.f32 %v13130_v50, %v2621_v41 }
0x12bb   :  { %v2540_v43 = vadd.f32 1.0, %v12298_v39 }
0x12bc   :  { %v2626_v44 = vrot.slane %v2622_v47, 4 }
0x12bd   :  { %12299 = vrcp.f32 %v2540_v43 }
0x12c7   :  { %v12300_v45 = vpop.eup %12299 }
0x12c8   :  { %v2628_v48 = vmul.f32 %v12300_v45, %v2626_v44 }
0x12ca   :  { %2630 = vrot.lane.b32.xlu0 %v2628_v48, %s12581_s26 }
0x1326   :  { %v2546_v58 = vpop.permute.xlu1 %2545 }
0x1327   :  { %v2548_v59 = vadd.f32 %v13122_v34, %v2546_v58 }
0x1329   :  { %v9702_v60 = vmul.f32 -1.442695, %v2548_v59 }
0x133c   :  { %v2631_v49 = vpop.permute.xlu0 %2630 }
0x133d   :  { %v2633_v28 = vadd.f32 %v13122_v34, %v2631_v49 }
0x133f   :  { %12301 = vtanh.f32 %v2633_v28 }
0x1340   :  { %12303 = vpow2.f32 %v9702_v60 }
0x1349   :  { %v12302_v51 = vpop.eup %12301 }
0x134a   :  { %v2636_v52 = vrot.slane %v12302_v51, 2  ;;  %v12304_v61 = vpop.eup %12303 }
0x134b   :  { %v2552_v0 = vadd.f32 1.0, %v12304_v61 }
0x134c   :  { %v2638_v53 = vsub.f32 %v13314_v19, %v2636_v52 }
0x134d   :  { %12305 = vrcp.f32 %v2552_v0 }
0x134e   :  { %v2640_v55 = vrot.slane %v2638_v53, 6 }
0x1350   :  { %2641 = vrot.lane.b32.xlu0 %v2640_v55, %s12583_s4 }
0x1357   :  { %v12306_v1 = vpop.eup %12305 }
0x13c2   :  { %v2642_v2 = vpop.permute.xlu0 %2641 }
0x13c3   :  { %v2644_v6 = vmul.f32 %v12306_v1, %v2642_v2 }
0x13c5   :  { %2646 = vrot.lane.b32.xlu1 %v2644_v6, %s12582_s27 }
0x13c9   :  { %3171 = vrot.lane.b32.xlu1 %v13138_v63, %s12581_s26  ;;  %v13361_v63 = vpack.c.bf16 %v9710_v16, %v9709_v15 }
0x13cb   :  { %11615 = vmatpush3.bf16.msra.mxu0 %v13361_v63 }
0x13cc   :  { %11616 = vmatprep.subr.bf16.mxu0 %v12578_v33 }
0x13cf   :  { %11618 = vmatpush3.bf16.msra.mxu0 %v13371_v23 }
0x13d0   :  { %11625 = vmatprep.subr.bf16.mxu0 %v12578_v33 }
0x1437   :  { %v2647_v8 = vpop.permute.xlu1 %2646 }
0x1438   :  { %v13350_v9 = vadd.f32 %v12302_v51, %v2647_v8 }
0x143a   :  { %v2651_v11 = vrot.slane %v13350_v9, 4 }
0x143b   :  { %v3172_v12 = vpop.permute.xlu1 %3171 }
0x143c   :  { %v3174_v14 = vadd.f32 %v13124_v38, %v3172_v12  ;;  %2652 = vrot.lane.b32.xlu0 %v2651_v11, %s12581_s26 }
0x143e   :  { %12307 = vtanh.f32 %v3174_v14 }
0x1448   :  { %v12308_v25 = vpop.eup %12307 }
0x1449   :  { %v3176_v26 = vsub.f32 0.0, %v12308_v25 }
0x144b   :  { %3178 = vrot.lane.b32.xlu1 %v3176_v26, %s12583_s4 }
0x14ae   :  { %v2653_v27 = vpop.permute.xlu0 %2652 }
0x14af   :  { %10591 = vmatmul.mubr.msk.f32.vlgmr.msra.gmra.mrb[42].mxu1 %vm831_vm1, %v2653_v27 }
0x14b0   :  { %11579 = vmatpush3.bf16.msra.mxu1 %v12837_v54  ;;  %10601 = vmatprep.mubr.msk.f32.mxu1 %vm12579_vm0, %v12580_v42 }
0x14b1   :  { %11580 = vmatprep.subr.bf16.mxu1 %v12578_v33 }
0x14b4   :  { %11582 = vmatpush3.bf16.msra.mxu1 %v12848_v57 }
0x14b5   :  { %11583 = vmatprep.subr.bf16.mxu1 %v12578_v33 }
0x14b7   :  { %10602 = vmatmul.mubr.msk.f32.vlgmr.msra.gmra.mrb[44].mxu1 %vm831_vm1, %v2653_v27 }
0x14b8   :  { %11585 = vmatpush3.bf16.msra.mxu1 %v12864_v62  ;;  %10612 = vmatprep.mubr.msk.f32.mxu1 %vm12579_vm0, %v12580_v42 }
0x14b9   :  { %11586 = vmatprep.subr.bf16.mxu1 %v12578_v33 }
0x14bc   :  { %11588 = vmatpush3.bf16.msra.mxu1 %v12881_v3 }
0x14bd   :  { %11595 = vmatprep.subr.bf16.mxu1 %v12578_v33  ;;  %v3179_v59 = vpop.permute.xlu1 %3178 }
0x14bf   :  { %10613 = vmatmul.mubr.msk.f32.vlgmr.msra.gmra.mrb[46].mxu1 %vm831_vm1, %v2653_v27  ;;  %v13443_v27 = vld [vmem:[%s14452_s6] ss:$0 sm:$0xff]  ;;  %s9553_s6 = sshll.u32 %s12584_s20, 4  ;;  %s9554_s6 = int_to_ptr.vmem [resolvable:$true] %s9553_s6 }
0x14c0   :  { %11597 = vmatpush3.bf16.msra.mxu1 %v13361_v63  ;;  %10634 = vmatprep.mubr.msk.f32.mxu1 %vm12579_vm0, %v12580_v42  ;;  %p12559_p1 = scmp.lt.s32.totalorder %s9554_s6, %s9554_s6 }
0x14c1   :  { %11598 = vmatprep.subr.bf16.mxu1 %v12578_v33 }
0x14c4   :  { %11600 = vmatpush3.bf16.msra.mxu1 %v13371_v23 }
0x14c5   :  { %11607 = vmatprep.subr.bf16.mxu1 %v12578_v33 }
0x14c7   :  { %10635 = vmatmul.mubr.f32.vlgmr.msra.gmra.mrb[48].mxu1 %v12580_v42 }
0x14c8   :  { %11609 = vmatpush3.bf16.msra.mxu1 %v13063_v4  ;;  %10656 = vmatprep.mubr.msk.f32.mxu1 %vm12579_vm0, %v12580_v42 }
0x14c9   :  { %11610 = vmatprep.subr.bf16.mxu1 %v12578_v33 }
0x14cc   :  { %11612 = vmatpush3.bf16.msra.mxu1 %v13073_v7 }
0x14cd   :  { %11619 = vmatprep.subr.bf16.mxu1 %v12578_v33 }
0x1582   :  { %v2722_v54 = vpop.f32.mrb[42].mxu1 }
0x1583   :  { %v2797_v57 = vrot.slane %v2722_v54, 2  ;;  %v10592_v62 = vpop.f32.mrb[43].mxu1 }
0x1585   :  { %v2799_v3 = vadd.f32 %v13122_v34, %v2797_v57 }
0x1587   :  { %v9706_v29 = vmul.f32 -1.442695, %v2799_v3 }
0x1589   :  { %12309 = vpow2.f32 %v9706_v29 }
0x158a   :  { %v13405_v32 = vpop.f32.mrb[44].mxu1 }
0x158b   :  { %v10603_v35 = vpop.f32.mrb[45].mxu1 }
0x1592   :  { %v2884_v36 = vpop.f32.mrb[46].mxu1 }
0x1593   :  { %v12310_v37 = vpop.eup %12309  ;;  %v10614_v41 = vpop.f32.mrb[47].mxu1  ;;  %v2885_v43 = vadd.f32 %v13130_v50, %v2884_v36 }
0x1594   :  { %v2803_v39 = vadd.f32 1.0, %v12310_v37 }
0x1595   :  { %v2889_v45 = vrot.slane %v2885_v43, 2 }
0x1596   :  { %12311 = vrcp.f32 %v2803_v39 }
0x159a   :  { %v3070_v40 = vpop.f32.mrb[48].mxu1 }
0x159b   :  { %v3085_v47 = vrot.slane %v3070_v40, 2  ;;  %v10636_v44 = vpop.f32.mrb[49].mxu1 }
0x159d   :  { %3086 = vrot.lane.b32.xlu0 %v3085_v47, %s12582_s27 }
0x15a0   :  { %v12312_v48 = vpop.eup %12311 }
0x15a1   :  { %v13409_v49 = vmul.f32 %v12312_v48, %v2889_v45 }
0x160f   :  { %v3087_v28 = vpop.permute.xlu0 %3086 }
0x1610   :  { %v3089_v51 = vadd.f32 %v13124_v38, %v3087_v28 }
0x1612   :  { %v9719_v52 = vmul.f32 -1.442695, %v3089_v51 }
0x1614   :  { %12313 = vpow2.f32 %v9719_v52 }
0x161e   :  { %v12314_v53 = vpop.eup %12313 }
0x161f   :  { %v3093_v55 = vadd.f32 1.0, %v12314_v53 }
0x1621   :  { %12315 = vrcp.f32 %v3093_v55 }
0x162b   :  { %v12316_v58 = vpop.eup %12315 }
0x162c   :  { %v3181_v60 = vmul.f32 %v12316_v58, %v3179_v59 }
0x162e   :  { %3183 = vrot.lane.b32.xlu0 %v3181_v60, %s12582_s27 }
0x16a0   :  { %v3184_v50 = vpop.permute.xlu0 %3183 }
0x16a1   :  { %v13413_v61 = vadd.f32 %v12308_v25, %v3184_v50 }
0x16a3   :  { %v3188_v0 = vrot.slane %v13413_v61, 6 }
0x16a5   :  { %3189 = vrot.lane.b32.xlu1 %v3188_v0, %s12581_s26 }
0x1717   :  { %v3190_v1 = vpop.permute.xlu1 %3189 }
0x1718   :  { %10657 = vmatmul.mubr.msk.f32.vlgmr.msra.gmra.mrb[50].mxu1 %vm831_vm1, %v3190_v1  ;;  %10668 = vmatmul.mubr.msk.f32.vlgmr.msra.gmra.mrb[8].mxu0 %vm831_vm1, %v3190_v1 }
0x1719   :  { %11621 = vmatpush3.bf16.msra.mxu1 %v13085_v10  ;;  %10678 = vmatprep.mubr.msk.f32.mxu1 %vm12579_vm0, %v12580_v42 }
0x171a   :  { %11622 = vmatprep.subr.bf16.mxu1 %v12578_v33  ;;  %11627 = vmatpush3.bf16.msra.mxu0 %v13063_v4 }
0x171b   :  { %11628 = vmatprep.subr.bf16.mxu0 %v12578_v33  ;;  %10689 = vmatprep.mubr.msk.f32.mxu0 %vm12579_vm0, %v12580_v42 }
0x171d   :  { %11624 = vmatpush3.bf16.msra.mxu1 %v13096_v13 }
0x171e   :  { %11631 = vmatprep.subr.bf16.mxu1 %v12578_v33  ;;  %11630 = vmatpush3.bf16.msra.mxu0 %v13073_v7 }
0x171f   :  { %11637 = vmatprep.subr.bf16.mxu0 %v12578_v33 }
0x1720   :  { %10679 = vmatmul.mubr.msk.f32.vlgmr.msra.gmra.mrb[52].mxu1 %vm831_vm1, %v3190_v1 }
0x1721   :  { %11633 = vmatpush3.bf16.msra.mxu1 %v13361_v63  ;;  %10700 = vmatprep.mubr.msk.f32.mxu1 %vm12579_vm0, %v12580_v42 }
0x1722   :  { %11634 = vmatprep.subr.bf16.mxu1 %v12578_v33 }
0x1725   :  { %11636 = vmatpush3.bf16.msra.mxu1 %v13371_v23 }
0x1726   :  { %11643 = vmatprep.subr.bf16.mxu1 %v12578_v33 }
0x17eb   :  { %v3259_v2 = vpop.f32.mrb[50].mxu1  ;;  %v3329_v6 = vpop.f32.mrb[8].mxu0 }
0x17ec   :  { %v3334_v8 = vrot.slane %v3259_v2, 4  ;;  %v3344_v11 = vrot.slane %v3329_v6, 4  ;;  %v10658_v12 = vpop.f32.mrb[51].mxu1  ;;  %v10669_v14 = vpop.f32.mrb[9].mxu0 }
0x17ee   :  { %v3336_v15 = vadd.f32 %v13124_v38, %v3334_v8  ;;  %3345 = vrot.lane.b32.xlu1 %v3344_v11, %s12582_s27 }
0x17f0   :  { %v9722_v16 = vmul.f32 -1.442695, %v3336_v15 }
0x17f2   :  { %12317 = vpow2.f32 %v9722_v16 }
0x17f3   :  { %v3421_v17 = vpop.f32.mrb[52].mxu1 }
0x17f4   :  { %v10680_v20 = vpop.f32.mrb[53].mxu1  ;;  %v3422_v54 = vadd.f32 %v13443_v27, %v3421_v17 }
0x17f6   :  { %v3426_v57 = vrot.slane %v3422_v54, 4 }
0x17fc   :  { %v12318_v25 = vpop.eup %12317 }
0x17fd   :  { %v3340_v26 = vadd.f32 1.0, %v12318_v25 }
0x17ff   :  { %12319 = vrcp.f32 %v3340_v26 }
0x1809   :  { %v12320_v62 = vpop.eup %12319 }
0x180a   :  { %v3428_v3 = vmul.f32 %v12320_v62, %v3426_v57 }
0x180c   :  { %3430 = vrot.lane.b32.xlu0 %v3428_v3, %s12581_s26 }
0x1860   :  { %v3346_v40 = vpop.permute.xlu1 %3345 }
0x1861   :  { %v3348_v43 = vadd.f32 %v13124_v38, %v3346_v40 }
0x1863   :  { %v9723_v47 = vmul.f32 -1.442695, %v3348_v43 }
0x187e   :  { %v3431_v29 = vpop.permute.xlu0 %3430 }
0x187f   :  { %v3433_v35 = vadd.f32 %v13124_v38, %v3431_v29 }
0x1881   :  { %12321 = vtanh.f32 %v3433_v35 }
0x1882   :  { %12323 = vpow2.f32 %v9723_v47 }
0x188b   :  { %v12322_v36 = vpop.eup %12321 }
0x188c   :  { %v3436_v37 = vrot.slane %v12322_v36, 6  ;;  %v12324_v44 = vpop.eup %12323 }
0x188d   :  { %v3352_v45 = vadd.f32 1.0, %v12324_v44 }
0x188e   :  { %v3438_v41 = vsub.f32 %v13413_v61, %v3436_v37 }
0x188f   :  { %12325 = vrcp.f32 %v3352_v45 }
0x1890   :  { %v3440_v39 = vrot.slane %v3438_v41, 2 }
0x1892   :  { %3441 = vrot.lane.b32.xlu0 %v3440_v39, %s12583_s4 }
0x1899   :  { %v12326_v48 = vpop.eup %12325 }
0x1904   :  { %v3442_v28 = vpop.permute.xlu0 %3441 }
0x1905   :  { %v3444_v51 = vmul.f32 %v12326_v48, %v3442_v28 }
0x1907   :  { %3446 = vrot.lane.b32.xlu1 %v3444_v51, %s12582_s27 }
0x1979   :  { %v3447_v52 = vpop.permute.xlu1 %3446 }
0x197a   :  { %v13452_v53 = vadd.f32 %v12322_v36, %v3447_v52 }
0x197c   :  { %v3451_v55 = vrot.slane %v13452_v53, 4 }
0x197e   :  { %3452 = vrot.lane.b32.xlu0 %v3451_v55, %s12581_s26 }
0x19f0   :  { %v3453_v58 = vpop.permute.xlu0 %3452 }
0x19f1   :  { %10690 = vmatmul.mubr.msk.f32.vlgmr.msra.gmra.mrb[10].mxu0 %vm831_vm1, %v3453_v58  ;;  %10701 = vmatmul.mubr.msk.f32.vlgmr.msra.gmra.mrb[54].mxu1 %vm831_vm1, %v3453_v58 }
0x19f2   :  { %11639 = vmatpush3.bf16.msra.mxu0 %v13085_v10  ;;  %10711 = vmatprep.mubr.msk.f32.mxu0 %vm12579_vm0, %v12580_v42 }
0x19f3   :  { %11640 = vmatprep.subr.bf16.mxu0 %v12578_v33  ;;  %11645 = vmatpush3.bf16.msra.mxu1 %v13063_v4 }
0x19f4   :  { %11646 = vmatprep.subr.bf16.mxu1 %v12578_v33  ;;  %10722 = vmatprep.mubr.msk.f32.mxu1 %vm12579_vm0, %v12580_v42 }
0x19f6   :  { %11642 = vmatpush3.bf16.msra.mxu0 %v13096_v13 }
0x19f7   :  { %11649 = vmatprep.subr.bf16.mxu0 %v12578_v33  ;;  %11648 = vmatpush3.bf16.msra.mxu1 %v13073_v7 }
0x19f8   :  { %11655 = vmatprep.subr.bf16.mxu1 %v12578_v33 }
0x19f9   :  { %10712 = vmatmul.mubr.msk.f32.vlgmr.msra.gmra.mrb[12].mxu0 %vm831_vm1, %v3453_v58 }
0x19fa   :  { %11651 = vmatpush3.bf16.msra.mxu0 %v13361_v63  ;;  %10733 = vmatprep.mubr.msk.f32.mxu0 %vm12579_vm0, %v12580_v42 }
0x19fb   :  { %11652 = vmatprep.subr.bf16.mxu0 %v12578_v33 }
0x19fe   :  { %11654 = vmatpush3.bf16.msra.mxu0 %v13371_v23 }
0x19ff   :  { %11661 = vmatprep.subr.bf16.mxu0 %v12578_v33 }
0x1ac4   :  { %v3522_v59 = vpop.f32.mrb[10].mxu0  ;;  %v3592_v60 = vpop.f32.mrb[54].mxu1 }
0x1ac5   :  { %v3597_v50 = vrot.slane %v3522_v59, 6  ;;  %v3607_v0 = vrot.slane %v3592_v60, 6  ;;  %v10691_v1 = vpop.f32.mrb[11].mxu0  ;;  %v10702_v2 = vpop.f32.mrb[55].mxu1 }
0x1ac7   :  { %v3599_v6 = vadd.f32 %v13124_v38, %v3597_v50  ;;  %3608 = vrot.lane.b32.xlu0 %v3607_v0, %s12582_s27 }
0x1ac9   :  { %v9727_v8 = vmul.f32 -1.442695, %v3599_v6 }
0x1acb   :  { %12327 = vpow2.f32 %v9727_v8 }
0x1acc   :  { %v3684_v11 = vpop.f32.mrb[12].mxu0 }
0x1acd   :  { %v10713_v12 = vpop.f32.mrb[13].mxu0  ;;  %v3685_v16 = vadd.f32 %v13443_v27, %v3684_v11 }
0x1acf   :  { %v3689_v17 = vrot.slane %v3685_v16, 6 }
0x1ad5   :  { %v12328_v14 = vpop.eup %12327 }
0x1ad6   :  { %v3603_v15 = vadd.f32 1.0, %v12328_v14 }
0x1ad8   :  { %12329 = vrcp.f32 %v3603_v15 }
0x1ae2   :  { %v12330_v20 = vpop.eup %12329 }
0x1ae3   :  { %v3691_v25 = vmul.f32 %v12330_v20, %v3689_v17 }
0x1ae5   :  { %3693 = vrot.lane.b32.xlu1 %v3691_v25, %s12581_s26 }
0x1b39   :  { %v3609_v35 = vpop.permute.xlu0 %3608 }
0x1b3a   :  { %v3611_v36 = vadd.f32 %v13124_v38, %v3609_v35 }
0x1b3c   :  { %v9728_v37 = vmul.f32 -1.442695, %v3611_v36 }
0x1b57   :  { %v3694_v26 = vpop.permute.xlu1 %3693 }
0x1b58   :  { %v3696_v54 = vadd.f32 %v13124_v38, %v3694_v26 }
0x1b5a   :  { %12331 = vtanh.f32 %v3696_v54 }
0x1b5b   :  { %12333 = vpow2.f32 %v9728_v37 }
0x1b64   :  { %v12332_v57 = vpop.eup %12331 }
0x1b65   :  { %v3699_v62 = vrot.slane %v12332_v57, 6  ;;  %v12334_v41 = vpop.eup %12333 }
0x1b66   :  { %v3615_v39 = vadd.f32 1.0, %v12334_v41 }
0x1b67   :  { %v3701_v3 = vsub.f32 %v13452_v53, %v3699_v62 }
0x1b68   :  { %12335 = vrcp.f32 %v3615_v39 }
0x1b69   :  { %v3703_v29 = vrot.slane %v3701_v3, 2 }
0x1b6b   :  { %3704 = vrot.lane.b32.xlu1 %v3703_v29, %s12583_s4 }
0x1b72   :  { %v12336_v40 = vpop.eup %12335 }
0x1bdd   :  { %v3705_v43 = vpop.permute.xlu1 %3704 }
0x1bde   :  { %v3707_v47 = vmul.f32 %v12336_v40, %v3705_v43 }
0x1be0   :  { %3709 = vrot.lane.b32.xlu0 %v3707_v47, %s12582_s27 }
0x1c52   :  { %v3710_v44 = vpop.permute.xlu0 %3709 }
0x1c53   :  { %v13486_v45 = vadd.f32 %v12332_v57, %v3710_v44 }
0x1c55   :  { %v3714_v48 = vrot.slane %v13486_v45, 2 }
0x1c57   :  { %3715 = vrot.lane.b32.xlu1 %v3714_v48, %s12581_s26 }
0x1cc9   :  { %v3716_v28 = vpop.permute.xlu1 %3715 }
0x1cca   :  { %10723 = vmatmul.mubr.msk.f32.vlgmr.msra.gmra.mrb[56].mxu1 %vm831_vm1, %v3716_v28  ;;  %10734 = vmatmul.mubr.msk.f32.vlgmr.msra.gmra.mrb[14].mxu0 %vm831_vm1, %v3716_v28 }
0x1ccb   :  { %11657 = vmatpush3.bf16.msra.mxu1 %v13085_v10  ;;  %10744 = vmatprep.mubr.msk.f32.mxu1 %vm12579_vm0, %v12580_v42 }
0x1ccc   :  { %11658 = vmatprep.subr.bf16.mxu1 %v12578_v33  ;;  %11663 = vmatpush3.bf16.msra.mxu0 %v13063_v4 }
0x1ccd   :  { %11664 = vmatprep.subr.bf16.mxu0 %v12578_v33  ;;  %10755 = vmatprep.mubr.msk.f32.mxu0 %vm12579_vm0, %v12580_v42 }
0x1ccf   :  { %11660 = vmatpush3.bf16.msra.mxu1 %v13096_v13 }
0x1cd0   :  { %11667 = vmatprep.subr.bf16.mxu1 %v12578_v33  ;;  %11666 = vmatpush3.bf16.msra.mxu0 %v13073_v7 }
0x1cd1   :  { %11673 = vmatprep.subr.bf16.mxu0 %v12578_v33 }
0x1cd2   :  { %10745 = vmatmul.mubr.msk.f32.vlgmr.msra.gmra.mrb[58].mxu1 %vm831_vm1, %v3716_v28 }
0x1cd3   :  { %11669 = vmatpush3.bf16.msra.mxu1 %v13361_v63  ;;  %10766 = vmatprep.mubr.msk.f32.mxu1 %vm12579_vm0, %v12580_v42 }
0x1cd4   :  { %11670 = vmatprep.subr.bf16.mxu1 %v12578_v33 }
0x1cd7   :  { %11672 = vmatpush3.bf16.msra.mxu1 %v13371_v23 }
0x1cd8   :  { %11679 = vmatprep.subr.bf16.mxu1 %v12578_v33 }
0x1d9d   :  { %v3785_v51 = vpop.f32.mrb[56].mxu1  ;;  %v3855_v52 = vpop.f32.mrb[14].mxu0 }
0x1d9e   :  { %v3859_v55 = vadd.f32 %v13124_v38, %v3785_v51  ;;  %3867 = vrot.lane.b32.xlu1 %v3855_v52, %s12582_s27  ;;  %v10724_v58 = vpop.f32.mrb[57].mxu1  ;;  %v10735_v59 = vpop.f32.mrb[15].mxu0 }
0x1da0   :  { %v9732_v60 = vmul.f32 -1.442695, %v3859_v55 }
0x1da2   :  { %12337 = vpow2.f32 %v9732_v60 }
0x1da5   :  { %v3943_v50 = vpop.f32.mrb[58].mxu1 }
0x1da6   :  { %v10746_v0 = vpop.f32.mrb[59].mxu1  ;;  %v3944_v6 = vadd.f32 %v13443_v27, %v3943_v50 }
0x1dac   :  { %v12338_v1 = vpop.eup %12337 }
0x1dad   :  { %v3863_v2 = vadd.f32 1.0, %v12338_v1 }
0x1daf   :  { %12339 = vrcp.f32 %v3863_v2 }
0x1db9   :  { %v12340_v8 = vpop.eup %12339 }
0x1dba   :  { %v3947_v11 = vmul.f32 %v12340_v8, %v3944_v6 }
0x1dbc   :  { %3949 = vrot.lane.b32.xlu0 %v3947_v11, %s12581_s26 }
0x1e10   :  { %v3868_v25 = vpop.permute.xlu1 %3867 }
0x1e11   :  { %v3870_v26 = vadd.f32 %v13124_v38, %v3868_v25 }
0x1e13   :  { %v9733_v54 = vmul.f32 -1.442695, %v3870_v26 }
0x1e2e   :  { %v3950_v12 = vpop.permute.xlu0 %3949 }
0x1e2f   :  { %v3952_v14 = vadd.f32 %v13124_v38, %v3950_v12 }
0x1e31   :  { %12341 = vtanh.f32 %v3952_v14 }
0x1e32   :  { %12343 = vpow2.f32 %v9733_v54 }
0x1e3b   :  { %v12342_v15 = vpop.eup %12341 }
0x1e3c   :  { %v3955_v16 = vrot.slane %v12342_v15, 6  ;;  %v12344_v57 = vpop.eup %12343 }
0x1e3d   :  { %v3874_v62 = vadd.f32 1.0, %v12344_v57 }
0x1e3e   :  { %v3957_v17 = vsub.f32 %v13486_v45, %v3955_v16 }
0x1e3f   :  { %12345 = vrcp.f32 %v3874_v62 }
0x1e40   :  { %v3959_v20 = vrot.slane %v3957_v17, 2 }
0x1e42   :  { %3960 = vrot.lane.b32.xlu0 %v3959_v20, %s12583_s4 }
0x1e49   :  { %v12346_v3 = vpop.eup %12345 }
0x1eb4   :  { %v3961_v29 = vpop.permute.xlu0 %3960 }
0x1eb5   :  { %v3963_v35 = vmul.f32 %v12346_v3, %v3961_v29 }
0x1eb7   :  { %3965 = vrot.lane.b32.xlu1 %v3963_v35, %s12582_s27 }
0x1f29   :  { %v3966_v36 = vpop.permute.xlu1 %3965 }
0x1f2a   :  { %v13520_v37 = vadd.f32 %v12342_v15, %v3966_v36 }
0x1f2c   :  { %3970 = vrot.lane.b32.xlu0 %v13520_v37, %s12581_s26 }
0x1f9e   :  { %v3971_v41 = vpop.permute.xlu0 %3970 }
0x1f9f   :  { %10756 = vmatmul.mubr.msk.f32.vlgmr.msra.gmra.mrb[16].mxu0 %vm831_vm1, %v3971_v41  ;;  %10767 = vmatmul.mubr.msk.f32.vlgmr.msra.gmra.mrb[60].mxu1 %vm831_vm1, %v3971_v41 }
0x1fa0   :  { %11675 = vmatpush3.bf16.msra.mxu0 %v13085_v10  ;;  %10777 = vmatprep.mubr.msk.f32.mxu0 %vm12579_vm0, %v12580_v42 }
0x1fa1   :  { %11676 = vmatprep.subr.bf16.mxu0 %v12578_v33  ;;  %11681 = vmatpush3.bf16.msra.mxu1 %v13063_v4 }
0x1fa2   :  { %11682 = vmatprep.subr.bf16.mxu1 %v12578_v33  ;;  %10788 = vmatprep.mubr.msk.f32.mxu1 %vm12579_vm0, %v12580_v42 }
0x1fa4   :  { %11678 = vmatpush3.bf16.msra.mxu0 %v13096_v13 }
0x1fa5   :  { %11685 = vmatprep.subr.bf16.mxu0 %v12578_v33  ;;  %11684 = vmatpush3.bf16.msra.mxu1 %v13073_v7 }
0x1fa6   :  { %11691 = vmatprep.subr.bf16.mxu1 %v12578_v33 }
0x1fa7   :  { %10778 = vmatmul.mubr.msk.f32.vlgmr.msra.gmra.mrb[18].mxu0 %vm831_vm1, %v3971_v41 }
0x1fa8   :  { %11687 = vmatpush3.bf16.msra.mxu0 %v13361_v63  ;;  %10799 = vmatprep.mubr.msk.f32.mxu0 %vm12579_vm0, %v12580_v42 }
0x1fa9   :  { %11688 = vmatprep.subr.bf16.mxu0 %v12578_v33 }
0x1fac   :  { %11690 = vmatpush3.bf16.msra.mxu0 %v13371_v23 }
0x1fad   :  { %11697 = vmatprep.subr.bf16.mxu0 %v12578_v33 }
0x2072   :  { %v4040_v38 = vpop.f32.mrb[16].mxu0  ;;  %v4110_v39 = vpop.f32.mrb[60].mxu1 }
0x2073   :  { %v4115_v40 = vrot.slane %v4040_v38, 2  ;;  %v4125_v43 = vrot.slane %v4110_v39, 2  ;;  %v10757_v47 = vpop.f32.mrb[17].mxu0  ;;  %v10768_v44 = vpop.f32.mrb[61].mxu1 }
0x2075   :  { %v4117_v48 = vadd.f32 %v13119_v30, %v4115_v40  ;;  %4126 = vrot.lane.b32.xlu0 %v4125_v43, %s12582_s27 }
0x2077   :  { %v9737_v28 = vmul.f32 -1.442695, %v4117_v48 }
0x2079   :  { %12347 = vpow2.f32 %v9737_v28 }
0x207a   :  { %v4202_v51 = vpop.f32.mrb[18].mxu0 }
0x207b   :  { %v10779_v52 = vpop.f32.mrb[19].mxu0  ;;  %v4203_v59 = vadd.f32 %v13443_v27, %v4202_v51 }
0x207d   :  { %v4207_v60 = vrot.slane %v4203_v59, 2 }
0x2083   :  { %v12348_v55 = vpop.eup %12347 }
0x2084   :  { %v4121_v58 = vadd.f32 1.0, %v12348_v55 }
0x2086   :  { %12349 = vrcp.f32 %v4121_v58 }
0x2090   :  { %v12350_v50 = vpop.eup %12349 }
0x2091   :  { %v4209_v0 = vmul.f32 %v12350_v50, %v4207_v60 }
0x2093   :  { %4211 = vrot.lane.b32.xlu1 %v4209_v0, %s12581_s26 }
0x20e7   :  { %v4127_v14 = vpop.permute.xlu0 %4126 }
0x20e8   :  { %v4129_v15 = vadd.f32 %v13119_v30, %v4127_v14 }
0x20ea   :  { %v9738_v16 = vmul.f32 -1.442695, %v4129_v15 }
0x2105   :  { %v4212_v1 = vpop.permute.xlu1 %4211 }
0x2106   :  { %v4214_v2 = vadd.f32 %v13119_v30, %v4212_v1 }
0x2108   :  { %12351 = vtanh.f32 %v4214_v2 }
0x2109   :  { %12353 = vpow2.f32 %v9738_v16 }
0x2112   :  { %v12352_v6 = vpop.eup %12351 }
0x2113   :  { %v4217_v8 = vrot.slane %v12352_v6, 6  ;;  %v12354_v17 = vpop.eup %12353 }
0x2114   :  { %v4133_v20 = vadd.f32 1.0, %v12354_v17 }
0x2115   :  { %v4219_v11 = vsub.f32 %v13520_v37, %v4217_v8 }
0x2116   :  { %12355 = vrcp.f32 %v4133_v20 }
0x2117   :  { %v4221_v12 = vrot.slane %v4219_v11, 2 }
0x2119   :  { %4222 = vrot.lane.b32.xlu1 %v4221_v12, %s12583_s4 }
0x2120   :  { %v12356_v25 = vpop.eup %12355 }
0x218b   :  { %v4223_v26 = vpop.permute.xlu1 %4222 }
0x218c   :  { %v4225_v54 = vmul.f32 %v12356_v25, %v4223_v26 }
0x218e   :  { %4227 = vrot.lane.b32.xlu0 %v4225_v54, %s12582_s27 }
0x2200   :  { %v4228_v57 = vpop.permute.xlu0 %4227 }
0x2201   :  { %v13554_v62 = vadd.f32 %v12352_v6, %v4228_v57 }
0x2203   :  { %v4232_v3 = vrot.slane %v13554_v62, 6 }
0x2205   :  { %4233 = vrot.lane.b32.xlu1 %v4232_v3, %s12581_s26 }
0x2277   :  { %v4234_v29 = vpop.permute.xlu1 %4233 }
0x2278   :  { %10789 = vmatmul.mubr.msk.f32.vlgmr.msra.gmra.mrb[62].mxu1 %vm831_vm1, %v4234_v29  ;;  %10800 = vmatmul.mubr.msk.f32.vlgmr.msra.gmra.mrb[20].mxu0 %vm831_vm1, %v4234_v29 }
0x2279   :  { %11693 = vmatpush3.bf16.msra.mxu1 %v13085_v10  ;;  %10810 = vmatprep.mubr.msk.f32.mxu1 %vm12579_vm0, %v12580_v42 }
0x227a   :  { %11694 = vmatprep.subr.bf16.mxu1 %v12578_v33  ;;  %11699 = vmatpush3.bf16.msra.mxu0 %v13063_v4 }
0x227b   :  { %11700 = vmatprep.subr.bf16.mxu0 %v12578_v33  ;;  %10821 = vmatprep.mubr.msk.f32.mxu0 %vm12579_vm0, %v12580_v42 }
0x227d   :  { %11696 = vmatpush3.bf16.msra.mxu1 %v13096_v13 }
0x227e   :  { %11703 = vmatprep.subr.bf16.mxu1 %v12578_v33  ;;  %11702 = vmatpush3.bf16.msra.mxu0 %v13073_v7 }
0x227f   :  { %11709 = vmatprep.subr.bf16.mxu0 %v12578_v33 }
0x2280   :  { %10811 = vmatmul.mubr.msk.f32.vlgmr.msra.gmra.mrb[64].mxu1 %vm831_vm1, %v4234_v29 }
0x2281   :  { %11705 = vmatpush3.bf16.msra.mxu1 %v13361_v63  ;;  %10832 = vmatprep.mubr.msk.f32.mxu1 %vm12579_vm0, %v12580_v42 }
0x2282   :  { %11706 = vmatprep.subr.bf16.mxu1 %v12578_v33 }
0x2285   :  { %11708 = vmatpush3.bf16.msra.mxu1 %v13371_v23 }
0x2286   :  { %11715 = vmatprep.subr.bf16.mxu1 %v12578_v33 }
0x234b   :  { %v4303_v35 = vpop.f32.mrb[62].mxu1  ;;  %v4373_v36 = vpop.f32.mrb[20].mxu0 }
0x234c   :  { %v4378_v41 = vrot.slane %v4303_v35, 4  ;;  %v4388_v38 = vrot.slane %v4373_v36, 4  ;;  %v10790_v39 = vpop.f32.mrb[63].mxu1  ;;  %v10801_v40 = vpop.f32.mrb[21].mxu0 }
0x234e   :  { %v4380_v43 = vadd.f32 %v13119_v30, %v4378_v41  ;;  %4389 = vrot.lane.b32.xlu1 %v4388_v38, %s12582_s27 }
0x2350   :  { %v9742_v47 = vmul.f32 -1.442695, %v4380_v43 }
0x2352   :  { %12357 = vpow2.f32 %v9742_v47 }
0x2353   :  { %v4465_v44 = vpop.f32.mrb[64].mxu1 }
0x2354   :  { %v10812_v48 = vpop.f32.mrb[65].mxu1  ;;  %v4466_v52 = vadd.f32 %v13443_v27, %v4465_v44 }
0x2356   :  { %v4470_v55 = vrot.slane %v4466_v52, 4 }
0x235c   :  { %v12358_v28 = vpop.eup %12357 }
0x235d   :  { %v4384_v51 = vadd.f32 1.0, %v12358_v28 }
0x235f   :  { %12359 = vrcp.f32 %v4384_v51 }
0x2369   :  { %v12360_v58 = vpop.eup %12359 }
0x236a   :  { %v4472_v59 = vmul.f32 %v12360_v58, %v4470_v55 }
0x236c   :  { %4474 = vrot.lane.b32.xlu0 %v4472_v59, %s12581_s26 }
0x23c0   :  { %v4390_v8 = vpop.permute.xlu1 %4389 }
0x23c1   :  { %v4392_v11 = vadd.f32 %v13119_v30, %v4390_v8 }
0x23c3   :  { %v9743_v12 = vmul.f32 -1.442695, %v4392_v11 }
0x23de   :  { %v4475_v60 = vpop.permute.xlu0 %4474 }
0x23df   :  { %v4477_v50 = vadd.f32 %v13119_v30, %v4475_v60 }
0x23e1   :  { %12361 = vtanh.f32 %v4477_v50 }
0x23e2   :  { %12363 = vpow2.f32 %v9743_v12 }
0x23eb   :  { %v12362_v0 = vpop.eup %12361 }
0x23ec   :  { %v4480_v1 = vrot.slane %v12362_v0, 6  ;;  %v12364_v14 = vpop.eup %12363 }
0x23ed   :  { %v4396_v15 = vadd.f32 1.0, %v12364_v14 }
0x23ee   :  { %v4482_v2 = vsub.f32 %v13554_v62, %v4480_v1 }
0x23ef   :  { %12365 = vrcp.f32 %v4396_v15 }
0x23f0   :  { %v4484_v6 = vrot.slane %v4482_v2, 2 }
0x23f2   :  { %4485 = vrot.lane.b32.xlu0 %v4484_v6, %s12583_s4 }
0x23f9   :  { %v12366_v16 = vpop.eup %12365 }
0x2464   :  { %v4486_v17 = vpop.permute.xlu0 %4485 }
0x2465   :  { %v4488_v20 = vmul.f32 %v12366_v16, %v4486_v17  ;;  %v2807_v16 = vrot.slane %v13405_v32, 2 }
0x2467   :  { %4490 = vrot.lane.b32.xlu1 %v4488_v20, %s12582_s27 }
0x24d9   :  { %v4491_v25 = vpop.permute.xlu1 %4490 }
0x24da   :  { %v13588_v26 = vadd.f32 %v12362_v0, %v4491_v25 }
0x24dc   :  { %v4495_v54 = vrot.slane %v13588_v26, 4 }
0x24de   :  { %4496 = vrot.lane.b32.xlu0 %v4495_v54, %s12581_s26 }
0x2550   :  { %v4497_v57 = vpop.permute.xlu0 %4496 }
0x2551   :  { %10822 = vmatmul.mubr.msk.f32.vlgmr.msra.gmra.mrb[22].mxu0 %vm831_vm1, %v4497_v57  ;;  %10833 = vmatmul.mubr.msk.f32.vlgmr.msra.gmra.mrb[66].mxu1 %vm831_vm1, %v4497_v57 }
0x2552   :  { %11711 = vmatpush3.bf16.msra.mxu0 %v13085_v10  ;;  %10843 = vmatprep.mubr.msk.f32.mxu0 %vm12579_vm0, %v12580_v42 }
0x2553   :  { %11712 = vmatprep.subr.bf16.mxu0 %v12578_v33  ;;  %11717 = vmatpush3.bf16.msra.mxu1 %v13063_v4 }
0x2554   :  { %11718 = vmatprep.subr.bf16.mxu1 %v12578_v33  ;;  %10854 = vmatprep.mubr.msk.f32.mxu1 %vm12579_vm0, %v12580_v42 }
0x2556   :  { %11714 = vmatpush3.bf16.msra.mxu0 %v13096_v13 }
0x2557   :  { %11721 = vmatprep.subr.bf16.mxu0 %v12578_v33  ;;  %11720 = vmatpush3.bf16.msra.mxu1 %v13073_v7 }
0x2558   :  { %11727 = vmatprep.subr.bf16.mxu1 %v12578_v33 }
0x2559   :  { %10844 = vmatmul.mubr.msk.f32.vlgmr.msra.gmra.mrb[24].mxu0 %vm831_vm1, %v4497_v57 }
0x255a   :  { %11723 = vmatpush3.bf16.msra.mxu0 %v13361_v63  ;;  %10865 = vmatprep.mubr.msk.f32.mxu0 %vm12579_vm0, %v12580_v42 }
0x255b   :  { %11724 = vmatprep.subr.bf16.mxu0 %v12578_v33 }
0x255e   :  { %11726 = vmatpush3.bf16.msra.mxu0 %v13371_v23 }
0x2624   :  { %v4566_v4 = vpop.f32.mrb[22].mxu0  ;;  %v4636_v3 = vpop.f32.mrb[66].mxu1 }
0x2625   :  { %v4641_v29 = vrot.slane %v4566_v4, 6  ;;  %v4651_v35 = vrot.slane %v4636_v3, 6  ;;  %v10823_v36 = vpop.f32.mrb[23].mxu0  ;;  %v10834_v41 = vpop.f32.mrb[67].mxu1 }
0x2627   :  { %v4643_v7 = vadd.f32 %v13119_v30, %v4641_v29  ;;  %4652 = vrot.lane.b32.xlu0 %v4651_v35, %s12582_s27 }
0x2629   :  { %v9747_v38 = vmul.f32 -1.442695, %v4643_v7 }
0x262b   :  { %12367 = vpow2.f32 %v9747_v38 }
0x262c   :  { %v4728_v63 = vpop.f32.mrb[24].mxu0 }
0x262d   :  { %v10845_v39 = vpop.f32.mrb[25].mxu0  ;;  %v4729_v47 = vadd.f32 %v13443_v27, %v4728_v63 }
0x262f   :  { %v4733_v23 = vrot.slane %v4729_v47, 6 }
0x2635   :  { %v12368_v40 = vpop.eup %12367 }
0x2636   :  { %v4647_v43 = vadd.f32 1.0, %v12368_v40 }
0x2638   :  { %12369 = vrcp.f32 %v4647_v43 }
0x2642   :  { %v12370_v44 = vpop.eup %12369 }
0x2643   :  { %v4735_v48 = vmul.f32 %v12370_v44, %v4733_v23 }
0x2645   :  { %4737 = vrot.lane.b32.xlu1 %v4735_v48, %s12581_s26 }
0x2699   :  { %v4653_v60 = vpop.permute.xlu0 %4652 }
0x269a   :  { %v4655_v50 = vadd.f32 %v13119_v30, %v4653_v60 }
0x269c   :  { %v9748_v0 = vmul.f32 -1.442695, %v4655_v50  ;;  %v5159_v50 = vld [vmem:[%s14455_s9 + $0x8] sm:$0xff] }
0x26b7   :  { %v4738_v28 = vpop.permute.xlu1 %4737 }
0x26b8   :  { %v4740_v51 = vadd.f32 %v13119_v30, %v4738_v28 }
0x26ba   :  { %12371 = vtanh.f32 %v4740_v51 }
0x26bb   :  { %12373 = vpow2.f32 %v9748_v0  ;;  %v5160_v0 = vld [vmem:[%s14455_s9 + $0x10] sm:$0xff] }
0x26c4   :  { %v12372_v52 = vpop.eup %12371 }
0x26c5   :  { %v4743_v55 = vrot.slane %v12372_v52, 6  ;;  %v12374_v1 = vpop.eup %12373 }
0x26c6   :  { %v4659_v2 = vadd.f32 1.0, %v12374_v1 }
0x26c7   :  { %v4745_v58 = vsub.f32 %v13588_v26, %v4743_v55 }
0x26c8   :  { %12375 = vrcp.f32 %v4659_v2 }
0x26c9   :  { %v4747_v59 = vrot.slane %v4745_v58, 2 }
0x26cb   :  { %4748 = vrot.lane.b32.xlu1 %v4747_v59, %s12583_s4 }
0x26d2   :  { %v12376_v6 = vpop.eup %12375 }
0x273d   :  { %v4749_v8 = vpop.permute.xlu1 %4748 }
0x273e   :  { %v4751_v11 = vmul.f32 %v12376_v6, %v4749_v8  ;;  %v5161_v6 = vld [vmem:[%s14455_s9 + $0x18] sm:$0xff] }
0x273f   :  { %v13674_v8 = vpack.c.bf16 %v5161_v6, %v5160_v0  ;;  %v5058_v0 = vld [vmem:[%s14453_s7 + $0x60] sm:$0xff] }
0x2740   :  { %4753 = vrot.lane.b32.xlu0 %v4751_v11, %s12582_s27 }
0x27b2   :  { %v4754_v12 = vpop.permute.xlu0 %4753 }
0x27b3   :  { %v13621_v14 = vadd.f32 %v12372_v52, %v4754_v12 }
0x27b5   :  { %v4758_v15 = vrot.slane %v13621_v14, 2 }
0x27b7   :  { %4759 = vrot.lane.b32.xlu1 %v4758_v15, %s12581_s26 }
0x27bb   :  { %2893 = vrot.lane.b32.xlu1 %v13409_v49, %s12581_s26 }
0x27bf   :  { %2808 = vrot.lane.b32.xlu1 %v2807_v16, %s12582_s27 }
0x2829   :  { %v4760_v17 = vpop.permute.xlu1 %4759 }
0x282a   :  { %10855 = vmatmul.mubr.msk.f32.vlgmr.msra.gmra.mrb[68].mxu1 %vm831_vm1, %v4760_v17  ;;  %10866 = vmatmul.mubr.msk.f32.vlgmr.msra.gmra.mrb[26].mxu0 %vm831_vm1, %v4760_v17 }
0x282b   :  { %11729 = vmatpush3.bf16.msra.mxu1 %v13085_v10  ;;  %10876 = vmatprep.mubr.msk.f32.mxu1 %vm12579_vm0, %v12580_v42 }
0x282c   :  { %11730 = vmatprep.subr.bf16.mxu1 %v12578_v33  ;;  %5145 = vmatprep.mubr.f32.mxu0 %v12580_v42 }
0x282d   :  { %v2894_v20 = vpop.permute.xlu1 %2893 }
0x282e   :  { %v2896_v49 = vadd.f32 %v13122_v34, %v2894_v20  ;;  %v9757_v20 = vld [vmem:[%s14455_s9 + $0x20] sm:$0xff] }
0x282f   :  { %11732 = vmatpush3.bf16.msra.mxu1 %v13096_v13 }
0x2830   :  { %12377 = vtanh.f32 %v2896_v49  ;;  %11749 = vmatprep.subr.bf16.mxu1 %v12578_v33  ;;  %v9758_v49 = vld [vmem:[%s14455_s9 + $0x28] sm:$0xff] }
0x2831   :  { %v2809_v57 = vpop.permute.xlu1 %2808 }
0x2832   :  { %10877 = vmatmul.mubr.msk.f32.vlgmr.msra.gmra.mrb[70].mxu1 %vm831_vm1, %v4760_v17  ;;  %v2811_v13 = vadd.f32 %v13122_v34, %v2809_v57  ;;  %v5047_v57 = vld [vmem:[%s14453_s7 + $0x8] sm:$0xff] }
0x2833   :  { %10887 = vmatprep.mubr.msk.f32.mxu1 %vm12579_vm0, %v12580_v42 }
0x2834   :  { %v9707_v4 = vmul.f32 -1.442695, %v2811_v13  ;;  %v5049_v13 = vld [vmem:[%s14453_s7 + $0x18] sm:$0xff] }
0x2836   :  { %12379 = vpow2.f32 %v9707_v4  ;;  %v5046_v4 = vld [vmem:[%s14453_s7] sm:$0xff] }
0x283a   :  { %v13642_v10 = vpop.eup %12377 }
0x283b   :  { %v2899_v32 = vrot.slane %v13642_v10, 2 }
0x283d   :  { %v2901_v25 = vsub.f32 %v13350_v9, %v2899_v32  ;;  %v13689_v32 = vpack.c.bf16 %v9758_v49, %v9757_v20 }
0x283f   :  { %v2903_v54 = vrot.slane %v2901_v25, 6  ;;  %v9760_v25 = vld [vmem:[%s14455_s9 + $0x38] sm:$0xff] }
0x2840   :  { %v12380_v3 = vpop.eup %12379 }
0x2841   :  { %2904 = vrot.lane.b32.xlu1 %v2903_v54, %s12583_s4  ;;  %v2815_v29 = vadd.f32 1.0, %v12380_v3 }
0x2843   :  { %12381 = vrcp.f32 %v2815_v29 }
0x284d   :  { %v12382_v35 = vpop.eup %12381 }
0x28b3   :  { %v2905_v36 = vpop.permute.xlu1 %2904 }
0x28b4   :  { %v2907_v41 = vmul.f32 %v12382_v35, %v2905_v36  ;;  %v11733_v35 = vpack.c.bf16 %v5049_v13, %v5047_v57  ;;  %v5048_v36 = vld [vmem:[%s14453_s7 + $0x10] sm:$0xff] }
0x28b6   :  { %2909 = vrot.lane.b32.xlu1 %v2907_v41, %s12582_s27  ;;  %v5051_v41 = vld [vmem:[%s14453_s7 + $0x28] sm:$0xff]  ;;  %11734 = vmatprep.subr.bf16.mxu0 %v11733_v35 }
0x28fd   :  { %v4829_v7 = vpop.f32.mrb[68].mxu1  ;;  %v4899_v38 = vpop.f32.mrb[26].mxu0 }
0x28fe   :  { %v4903_v63 = vadd.f32 %v13119_v30, %v4829_v7  ;;  %v10856_v39 = vpop.f32.mrb[69].mxu1  ;;  %v10867_v40 = vpop.f32.mrb[27].mxu0  ;;  %v5053_v7 = vld [vmem:[%s14453_s7 + $0x38] sm:$0xff] }
0x28ff   :  { %v11737_v39 = vpack.c.bf16 %v5053_v7, %v5051_v41  ;;  %v5050_v40 = vld [vmem:[%s14453_s7 + $0x20] sm:$0xff] }
0x2900   :  { %v9752_v43 = vmul.f32 -1.442695, %v4903_v63  ;;  %v11735_v63 = vpack.c.bf16 %v5048_v36, %v5046_v4 }
0x2902   :  { %12383 = vpow2.f32 %v9752_v43  ;;  %v5052_v43 = vld [vmem:[%s14453_s7 + $0x30] sm:$0xff]  ;;  %11736 = vmatpush1.bf16.msra.mxu0 %v11735_v63 }
0x2903   :  { %11738 = vmatprep.subr.bf16.mxu0 %v11737_v39 }
0x2905   :  { %v4987_v47 = vpop.f32.mrb[70].mxu1 }
0x2906   :  { %v10878_v34 = vpop.f32.mrb[71].mxu1  ;;  %v4988_v48 = vadd.f32 %v13443_v27, %v4987_v47  ;;  %v5158_v27 = vld [vmem:[%s14455_s9] sm:$0xff]  ;;  %v5055_v47 = vld [vmem:[%s14453_s7 + $0x48] sm:$0xff] }
0x2907   :  { %v13667_v2 = vpack.c.bf16 %v5159_v50, %v5158_v27  ;;  %v5057_v34 = vld [vmem:[%s14453_s7 + $0x58] sm:$0xff] }
0x2909   :  { %11751 = vmatpush3.bf16.msra.mxu1 %v13667_v2 }
0x290a   :  { %11752 = vmatprep.subr.bf16.mxu1 %v12578_v33 }
0x290c   :  { %v12384_v23 = vpop.eup %12383 }
0x290d   :  { %v4907_v44 = vadd.f32 1.0, %v12384_v23  ;;  %11754 = vmatpush3.bf16.msra.mxu1 %v13674_v8 }
0x290e   :  { %11755 = vmatprep.subr.bf16.mxu1 %v12578_v33 }
0x290f   :  { %12385 = vrcp.f32 %v4907_v44  ;;  %v11739_v44 = vpack.c.bf16 %v5052_v43, %v5050_v40 }
0x2910   :  { %10888 = vmatmul.mubr.f32.vlgmr.msra.gmra.mrb[72].mxu1 %v12580_v42 }
0x2911   :  { %10898 = vmatprep.mubr.msk.f32.mxu1 %vm12579_vm0, %v12580_v42  ;;  %11757 = vmatpush3.bf16.msra.mxu1 %v13689_v32 }
0x2912   :  { %11758 = vmatprep.subr.bf16.mxu1 %v12578_v33  ;;  %11740 = vmatpush1.bf16.msra.mxu0 %v11739_v44  ;;  %v13849_v44 = vld [vmem:[%s14456_s10] ss:$0 sm:$0xff] }
0x2919   :  { %v12386_v28 = vpop.eup %12385 }
0x291a   :  { %v4991_v51 = vmul.f32 %v12386_v28, %v4988_v48  ;;  %v5014_v48 = vsel %vm5013_vm2, %v13144_v18, %v13178_v5  ;;  %v11741_v28 = vpack.c.bf16 %v5057_v34, %v5055_v47  ;;  %v5061_v18 = vld [vmem:[%s14453_s7 + $0x78] sm:$0xff] }
0x291c   :  { %4993 = vrot.lane.b32.xlu0 %v4991_v51, %s12581_s26  ;;  %v5054_v51 = vld [vmem:[%s14453_s7 + $0x40] sm:$0xff]  ;;  %11742 = vmatprep.subr.bf16.mxu0 %v11741_v28 }
0x2920   :  { %4911 = vrot.lane.b32.xlu0 %v4899_v38, %s12582_s27 }
0x2928   :  { %v2910_v23 = vpop.permute.xlu1 %2909 }
0x2929   :  { %v2912_v5 = vadd.f32 %v13642_v10, %v2910_v23  ;;  %v5060_v10 = vld [vmem:[%s14453_s7 + $0x70] sm:$0xff] }
0x292a   :  { %v11747_v6 = vpack.c.bf16 %v5060_v10, %v5058_v0 }
0x298e   :  { %v4994_v52 = vpop.permute.xlu0 %4993 }
0x298f   :  { %v4996_v55 = vadd.f32 %v13119_v30, %v4994_v52  ;;  %v5056_v52 = vld [vmem:[%s14453_s7 + $0x50] sm:$0xff] }
0x2990   :  { %v11743_v27 = vpack.c.bf16 %v5056_v52, %v5054_v51 }
0x2991   :  { %12387 = vtanh.f32 %v4996_v55  ;;  %v5016_v55 = vsel %vm5015_vm3, %v5014_v48, %v13212_v56  ;;  %v5019_v56 = vsel %vm5013_vm2, %v13280_v31, %v13314_v19 }
0x2992   :  { %v4912_v11 = vpop.permute.xlu0 %4911  ;;  %11744 = vmatpush1.bf16.msra.mxu0 %v11743_v27 }
0x2993   :  { %v4914_v12 = vadd.f32 %v13119_v30, %v4912_v11  ;;  %v9759_v30 = vld [vmem:[%s14455_s9 + $0x30] sm:$0xff] }
0x2994   :  { %v13699_v54 = vpack.c.bf16 %v9760_v25, %v9759_v30  ;;  %v9764_v30 = vld [vmem:[%s14455_s9 + $0x58] sm:$0xff] }
0x2995   :  { %v9753_v15 = vmul.f32 -1.442695, %v4914_v12 }
0x2996   :  { %11760 = vmatpush3.bf16.msra.mxu1 %v13699_v54 }
0x2997   :  { %12389 = vpow2.f32 %v9753_v15  ;;  %11767 = vmatprep.subr.bf16.mxu1 %v12578_v33 }
0x2999   :  { %10899 = vmatmul.mubr.f32.vlgmr.msra.gmra.mrb[74].mxu1 %v12580_v42 }
0x299a   :  { %11769 = vmatpush3.bf16.msra.mxu1 %v13667_v2  ;;  %10920 = vmatprep.mubr.msk.f32.mxu1 %vm12579_vm0, %v12580_v42 }
0x299b   :  { %v13654_v58 = vpop.eup %12387  ;;  %11770 = vmatprep.subr.bf16.mxu1 %v12578_v33 }
0x299c   :  { %v4999_v59 = vrot.slane %v13654_v58, 6 }
0x299e   :  { %v5001_v60 = vsub.f32 %v13621_v14, %v4999_v59  ;;  %11772 = vmatpush3.bf16.msra.mxu1 %v13674_v8  ;;  %v5059_v59 = vld [vmem:[%s14453_s7 + $0x68] sm:$0xff] }
0x299f   :  { %11779 = vmatprep.subr.bf16.mxu1 %v12578_v33  ;;  %v11745_v50 = vpack.c.bf16 %v5061_v18, %v5059_v59 }
0x29a0   :  { %v5003_v1 = vrot.slane %v5001_v60, 2  ;;  %v5018_v60 = vsel %vm5017_vm4, %v5016_v55, %v13246_v46  ;;  %v5020_v46 = vsel %vm5015_vm3, %v5019_v56, %v13350_v9  ;;  %v5025_v9 = vsel %vm5013_vm2, %v13520_v37, %v13486_v45  ;;  %v9761_v37 = vld [vmem:[%s14455_s9 + $0x40] sm:$0xff] }
0x29a1   :  { %v12390_v16 = vpop.eup %12389  ;;  %11746 = vmatprep.subr.bf16.mxu0 %v11745_v50 }
0x29a2   :  { %5004 = vrot.lane.b32.xlu0 %v5003_v1, %s12583_s4  ;;  %v4918_v17 = vadd.f32 1.0, %v12390_v16  ;;  %v5021_v1 = vsel %vm5017_vm4, %v5020_v46, %v2912_v5  ;;  %11748 = vmatpush1.bf16.msra.mxu0 %v11747_v6 }
0x29a3   :  { %11761 = vmatprep.subr.bf16.mxu0 %v12578_v33 }
0x29a4   :  { %12391 = vrcp.f32 %v4918_v17 }
0x29ae   :  { %v12392_v3 = vpop.eup %12391 }
0x29e3   :  { %v5245_v11 = vpop.f32.mrb[72].mxu1 }
0x29e4   :  { %v10889_v15 = vpop.f32.mrb[73].mxu1 }
0x2a14   :  { %v5005_v29 = vpop.permute.xlu0 %5004 }
0x2a15   :  { %v5007_v38 = vmul.f32 %v12392_v3, %v5005_v29  ;;  %v5062_v29 = vld [vmem:[%s14454_s8] sm:$0x3] }
0x2a16   :  { %v5067_v35 = vrot.slane %v5062_v29, %v163_v22  ;;  %v13834_v36 = vrot.slane %v5062_v29, %v167_v24 }
0x2a17   :  { %5009 = vrot.lane.b32.xlu0 %v5007_v38, %s12582_s27 }
0x2a1b   :  { %5030 = vrot.lane.b32.xlu0 %v5018_v60, %s12581_s26 }
0x2a1f   :  { %5032 = vrot.lane.b32.xlu0 %v5021_v1, %s12581_s26 }
0x2a89   :  { %v5010_v31 = vpop.permute.xlu0 %5009 }
0x2a8a   :  { %v5012_v19 = vadd.f32 %v13654_v58, %v5010_v31  ;;  %v5026_v58 = vsel %vm5015_vm3, %v5025_v9, %v13452_v53 }
0x2a8b   :  { %v5027_v20 = vsel %vm5017_vm4, %v5026_v58, %v13413_v61  ;;  %v9763_v61 = vld [vmem:[%s14455_s9 + $0x50] sm:$0xff] }
0x2a8c   :  { %v5022_v12 = vsel %vm5013_vm2, %v5012_v19, %v13621_v14  ;;  %v5315_v14 = vpop.f32.mrb[74].mxu1  ;;  %v13811_v57 = vpack.c.bf16 %v9764_v30, %v9763_v61 }
0x2a8d   :  { %v5023_v16 = vsel %vm5015_vm3, %v5022_v12, %v13588_v26  ;;  %v10900_v45 = vpop.f32.mrb[75].mxu1  ;;  %v5031_v26 = vpop.permute.xlu0 %5030 }
0x2a8e   :  { %v5024_v17 = vsel %vm5017_vm4, %v5023_v16, %v13554_v62  ;;  %v9762_v62 = vld [vmem:[%s14455_s9 + $0x48] sm:$0xff] }
0x2a8f   :  { %5038 = vrot.lane.b32.xlu1 %v5024_v17, %s12583_s4  ;;  %v13799_v53 = vpack.c.bf16 %v9762_v62, %v9761_v37 }
0x2a91   :  { %v5033_v13 = vpop.permute.xlu0 %5032 }
0x2a93   :  { %5040 = vrot.lane.b32.xlu1 %v5027_v20, %s12583_s4 }
0x2a97   :  { %5327 = vrot.lane.b32.xlu1 %v5315_v14, %s12582_s27 }
0x2b01   :  { %v5039_v49 = vpop.permute.xlu1 %5038 }
0x2b02   :  { %v5044_v25 = vsel %vm831_vm1, %v5031_v26, %v5039_v49 }
0x2b03   :  { %9755 = vmatmul.mubr.msk.f32.vlgmr.msra.gmra.mrb[28].mxu0 %vm5074_vm5, %v5044_v25 }
0x2b04   :  { %5151 = vmatprep.mubr.f32.mxu0 %v12580_v42  ;;  %11763 = vmatpush3.bf16.msra.mxu0 %v13799_v53 }
0x2b05   :  { %v5041_v4 = vpop.permute.xlu1 %5040  ;;  %11764 = vmatprep.subr.bf16.mxu0 %v12578_v33 }
0x2b06   :  { %v5045_v3 = vsel %vm831_vm1, %v5033_v13, %v5041_v4 }
0x2b07   :  { %9756 = vmatmul.mubr.msk.f32.gmra.mrb[30].mxu0 %vm5074_vm5, %v5045_v3 }
0x2b08   :  { %11766 = vmatpush3.bf16.msra.mxu0 %v13811_v57  ;;  %10909 = vmatprep.mubr.msk.f32.mxu0 %vm12579_vm0, %v12580_v42 }
0x2b09   :  { %11773 = vmatprep.subr.bf16.mxu0 %v12578_v33  ;;  %v5328_v5 = vpop.permute.xlu1 %5327 }
0x2b0b   :  { %10910 = vmatmul.mubr.f32.vlgmr.msra.gmra.mrb[32].mxu0 %v12580_v42 }
0x2b0c   :  { %11775 = vmatpush3.bf16.msra.mxu0 %v13689_v32  ;;  %10931 = vmatprep.mubr.msk.f32.mxu0 %vm12579_vm0, %v12580_v42 }
0x2b0d   :  { %11776 = vmatprep.subr.bf16.mxu0 %v12578_v33 }
0x2b10   :  { %11778 = vmatpush3.bf16.msra.mxu0 %v13699_v54 }
0x2b11   :  { %11785 = vmatprep.subr.bf16.mxu0 %v12578_v33 }
0x2bd6   :  { %v5147_v41 = vpop.f32.mrb[28].mxu0 }
0x2bd7   :  { %v13836_v7 = vadd.f32 %v5147_v41, %v5067_v35  ;;  %v5149_v38 = vpop.f32.mrb[29].mxu0 }
0x2bd8   :  { %v13839_v63 = vadd.f32 %v5149_v38, %v13834_v36 }
0x2bd9   :  { %v5319_v39 = vadd.f32 %v5245_v11, %v13836_v7  ;;  %v5330_v60 = vadd.f32 %v5328_v5, %v13836_v7 }
0x2bda   :  { %v5153_v40 = vpop.f32.mrb[30].mxu0 }
0x2bdb   :  { %v13842_v43 = vadd.f32 %v5153_v40, %v5067_v35  ;;  %v13844_v47 = vpop.f32.mrb[31].mxu0  ;;  %v9766_v34 = vmul.f32 -1.442695, %v5319_v39  ;;  %v9767_v27 = vmul.f32 -1.442695, %v5330_v60 }
0x2bdd   :  { %12393 = vpow2.f32 %v9766_v34 }
0x2bde   :  { %v5403_v22 = vpop.f32.mrb[32].mxu0 }
0x2bdf   :  { %v10911_v21 = vpop.f32.mrb[33].mxu0  ;;  %v5404_v48 = vadd.f32 %v13849_v44, %v5403_v22 }
0x2be7   :  { %v12394_v24 = vpop.eup %12393 }
0x2be8   :  { %v5323_v23 = vadd.f32 1.0, %v12394_v24 }
0x2bea   :  { %12395 = vrcp.f32 %v5323_v23 }
0x2bf4   :  { %v12396_v28 = vpop.eup %12395 }
0x2bf5   :  { %v5407_v51 = vmul.f32 %v12396_v28, %v5404_v48 }
0x2bf7   :  { %5409 = vrot.lane.b32.xlu0 %v5407_v51, %s12581_s26 }
0x2c69   :  { %v5410_v52 = vpop.permute.xlu0 %5409 }
0x2c6a   :  { %v5412_v55 = vadd.f32 %v5410_v52, %v13836_v7 }
0x2c6c   :  { %12397 = vtanh.f32 %v5412_v55 }
0x2c6d   :  { %12399 = vpow2.f32 %v9767_v27 }
0x2c76   :  { %v12398_v59 = vpop.eup %12397 }
0x2c77   :  { %v5414_v18 = vsub.f32 0.0, %v12398_v59  ;;  %v12400_v56 = vpop.eup %12399 }
0x2c78   :  { %v5334_v50 = vadd.f32 1.0, %v12400_v56 }
0x2c79   :  { %5416 = vrot.lane.b32.xlu0 %v5414_v18, %s12583_s4 }
0x2c7a   :  { %12401 = vrcp.f32 %v5334_v50 }
0x2c84   :  { %v12402_v0 = vpop.eup %12401 }
0x2ceb   :  { %v5417_v10 = vpop.permute.xlu0 %5416 }
0x2cec   :  { %v5419_v46 = vmul.f32 %v12402_v0, %v5417_v10 }
0x2cee   :  { %5421 = vrot.lane.b32.xlu1 %v5419_v46, %s12582_s27 }
0x2d60   :  { %v5422_v1 = vpop.permute.xlu1 %5421 }
0x2d61   :  { %v5424_v6 = vadd.f32 %v12398_v59, %v5422_v1 }
0x2d63   :  { %5426 = vrot.lane.b32.xlu0 %v5424_v6, %s12581_s26 }
0x2dd5   :  { %v5427_v31 = vpop.permute.xlu0 %5426 }
0x2dd6   :  { %10921 = vmatmul.mubr.msk.f32.vlgmr.msra.gmra.mrb[76].mxu1 %vm831_vm1, %v5427_v31  ;;  %10932 = vmatmul.mubr.msk.f32.vlgmr.msra.gmra.mrb[34].mxu0 %vm831_vm1, %v5427_v31 }
0x2dd7   :  { %11781 = vmatpush3.bf16.msra.mxu1 %v13799_v53  ;;  %10942 = vmatprep.mubr.msk.f32.mxu1 %vm12579_vm0, %v12580_v42 }
0x2dd8   :  { %11782 = vmatprep.subr.bf16.mxu1 %v12578_v33  ;;  %11787 = vmatpush3.bf16.msra.mxu0 %v13667_v2 }
0x2dd9   :  { %11788 = vmatprep.subr.bf16.mxu0 %v12578_v33  ;;  %10953 = vmatprep.mubr.msk.f32.mxu0 %vm12579_vm0, %v12580_v42 }
0x2ddb   :  { %11784 = vmatpush3.bf16.msra.mxu1 %v13811_v57 }
0x2ddc   :  { %11791 = vmatprep.subr.bf16.mxu1 %v12578_v33  ;;  %11790 = vmatpush3.bf16.msra.mxu0 %v13674_v8 }
0x2ddd   :  { %11797 = vmatprep.subr.bf16.mxu0 %v12578_v33 }
0x2dde   :  { %10943 = vmatmul.mubr.msk.f32.vlgmr.msra.gmra.mrb[78].mxu1 %vm831_vm1, %v5427_v31 }
0x2ddf   :  { %11793 = vmatpush3.bf16.msra.mxu1 %v13689_v32  ;;  %10964 = vmatprep.mubr.msk.f32.mxu1 %vm12579_vm0, %v12580_v42 }
0x2de0   :  { %11794 = vmatprep.subr.bf16.mxu1 %v12578_v33 }
0x2de3   :  { %11796 = vmatpush3.bf16.msra.mxu1 %v13699_v54 }
0x2de4   :  { %11803 = vmatprep.subr.bf16.mxu1 %v12578_v33 }
0x2ea9   :  { %v5496_v19 = vpop.f32.mrb[76].mxu1  ;;  %v5566_v11 = vpop.f32.mrb[34].mxu0 }
0x2eaa   :  { %v5571_v12 = vrot.slane %v5496_v19, 6  ;;  %v5581_v9 = vrot.slane %v5566_v11, 6  ;;  %v10922_v15 = vpop.f32.mrb[77].mxu1  ;;  %v10933_v16 = vpop.f32.mrb[35].mxu0 }
0x2eac   :  { %v5573_v17 = vadd.f32 %v5571_v12, %v13836_v7  ;;  %5582 = vrot.lane.b32.xlu0 %v5581_v9, %s12582_s27 }
0x2eae   :  { %v9770_v58 = vmul.f32 -1.442695, %v5573_v17 }
0x2eb0   :  { %12403 = vpow2.f32 %v9770_v58 }
0x2eb1   :  { %v5658_v20 = vpop.f32.mrb[78].mxu1 }
0x2eb2   :  { %v10944_v14 = vpop.f32.mrb[79].mxu1  ;;  %v5659_v62 = vadd.f32 %v13849_v44, %v5658_v20 }
0x2eb4   :  { %v5663_v26 = vrot.slane %v5659_v62, 6 }
0x2eba   :  { %v12404_v45 = vpop.eup %12403 }
0x2ebb   :  { %v5577_v37 = vadd.f32 1.0, %v12404_v45 }
0x2ebd   :  { %12405 = vrcp.f32 %v5577_v37 }
0x2ec7   :  { %v12406_v49 = vpop.eup %12405 }
0x2ec8   :  { %v5665_v61 = vmul.f32 %v12406_v49, %v5663_v26 }
0x2eca   :  { %5667 = vrot.lane.b32.xlu1 %v5665_v61, %s12581_s26 }
0x2f1e   :  { %v5583_v35 = vpop.permute.xlu0 %5582 }
0x2f1f   :  { %v5585_v41 = vadd.f32 %v5583_v35, %v13836_v7 }
0x2f21   :  { %v9771_v38 = vmul.f32 -1.442695, %v5585_v41 }
0x2f3c   :  { %v5668_v30 = vpop.permute.xlu1 %5667 }
0x2f3d   :  { %v5670_v25 = vadd.f32 %v5668_v30, %v13836_v7 }
0x2f3f   :  { %12407 = vtanh.f32 %v5670_v25 }
0x2f40   :  { %12409 = vpow2.f32 %v9771_v38 }
0x2f49   :  { %v12408_v13 = vpop.eup %12407 }
0x2f4a   :  { %v5673_v4 = vrot.slane %v12408_v13, 2  ;;  %v12410_v39 = vpop.eup %12409 }
0x2f4b   :  { %v5589_v40 = vadd.f32 1.0, %v12410_v39 }
0x2f4c   :  { %v5675_v3 = vsub.f32 %v5424_v6, %v5673_v4 }
0x2f4d   :  { %12411 = vrcp.f32 %v5589_v40 }
0x2f4e   :  { %v5677_v29 = vrot.slane %v5675_v3, 6 }
0x2f50   :  { %5678 = vrot.lane.b32.xlu1 %v5677_v29, %s12583_s4 }
0x2f57   :  { %v12412_v34 = vpop.eup %12411 }
0x2fc2   :  { %v5679_v22 = vpop.permute.xlu1 %5678 }
0x2fc3   :  { %v5681_v21 = vmul.f32 %v12412_v34, %v5679_v22 }
0x2fc5   :  { %5683 = vrot.lane.b32.xlu0 %v5681_v21, %s12582_s27 }
0x3037   :  { %v5684_v24 = vpop.permute.xlu0 %5683 }
0x3038   :  { %v5686_v23 = vadd.f32 %v12408_v13, %v5684_v24 }
0x303a   :  { %v5688_v48 = vrot.slane %v5686_v23, 2 }
0x303c   :  { %5689 = vrot.lane.b32.xlu1 %v5688_v48, %s12581_s26 }
0x30ae   :  { %v5690_v28 = vpop.permute.xlu1 %5689 }
0x30af   :  { %10954 = vmatmul.mubr.msk.f32.vlgmr.msra.gmra.mrb[36].mxu0 %vm831_vm1, %v5690_v28  ;;  %10965 = vmatmul.mubr.msk.f32.vlgmr.msra.gmra.mrb[80].mxu1 %vm831_vm1, %v5690_v28 }
0x30b0   :  { %11799 = vmatpush3.bf16.msra.mxu0 %v13799_v53  ;;  %10975 = vmatprep.mubr.msk.f32.mxu0 %vm12579_vm0, %v12580_v42 }
0x30b1   :  { %11800 = vmatprep.subr.bf16.mxu0 %v12578_v33  ;;  %11805 = vmatpush3.bf16.msra.mxu1 %v13667_v2 }
0x30b2   :  { %11806 = vmatprep.subr.bf16.mxu1 %v12578_v33  ;;  %10986 = vmatprep.mubr.msk.f32.mxu1 %vm12579_vm0, %v12580_v42 }
0x30b4   :  { %11802 = vmatpush3.bf16.msra.mxu0 %v13811_v57 }
0x30b5   :  { %11809 = vmatprep.subr.bf16.mxu0 %v12578_v33  ;;  %11808 = vmatpush3.bf16.msra.mxu1 %v13674_v8 }
0x30b6   :  { %11815 = vmatprep.subr.bf16.mxu1 %v12578_v33 }
0x30b7   :  { %10976 = vmatmul.mubr.msk.f32.vlgmr.msra.gmra.mrb[38].mxu0 %vm831_vm1, %v5690_v28 }
0x30b8   :  { %11811 = vmatpush3.bf16.msra.mxu0 %v13689_v32  ;;  %10997 = vmatprep.mubr.msk.f32.mxu0 %vm12579_vm0, %v12580_v42 }
0x30b9   :  { %11812 = vmatprep.subr.bf16.mxu0 %v12578_v33 }
0x30bc   :  { %11814 = vmatpush3.bf16.msra.mxu0 %v13699_v54 }
0x30bd   :  { %11821 = vmatprep.subr.bf16.mxu0 %v12578_v33 }
0x3182   :  { %v5759_v51 = vpop.f32.mrb[36].mxu0  ;;  %v5829_v52 = vpop.f32.mrb[80].mxu1 }
0x3183   :  { %v5834_v55 = vrot.slane %v5759_v51, 4  ;;  %v5844_v59 = vrot.slane %v5829_v52, 4  ;;  %v10955_v18 = vpop.f32.mrb[37].mxu0  ;;  %v10966_v5 = vpop.f32.mrb[81].mxu1 }
0x3185   :  { %v5836_v60 = vadd.f32 %v5834_v55, %v13836_v7  ;;  %5845 = vrot.lane.b32.xlu1 %v5844_v59, %s12582_s27 }
0x3187   :  { %v9775_v27 = vmul.f32 -1.442695, %v5836_v60 }
0x3189   :  { %12413 = vpow2.f32 %v9775_v27 }
0x318a   :  { %v5921_v56 = vpop.f32.mrb[38].mxu0 }
0x318b   :  { %v10977_v50 = vpop.f32.mrb[39].mxu0  ;;  %v5922_v46 = vadd.f32 %v13849_v44, %v5921_v56 }
0x318d   :  { %v5926_v1 = vrot.slane %v5922_v46, 4 }
0x3193   :  { %v12414_v0 = vpop.eup %12413 }
0x3194   :  { %v5840_v10 = vadd.f32 1.0, %v12414_v0 }
0x3196   :  { %12415 = vrcp.f32 %v5840_v10 }
0x31a0   :  { %v12416_v6 = vpop.eup %12415 }
0x31a1   :  { %v5928_v31 = vmul.f32 %v12416_v6, %v5926_v1 }
0x31a3   :  { %5930 = vrot.lane.b32.xlu0 %v5928_v31, %s12581_s26 }
0x31f7   :  { %v5846_v17 = vpop.permute.xlu1 %5845 }
0x31f8   :  { %v5848_v58 = vadd.f32 %v5846_v17, %v13836_v7 }
0x31fa   :  { %v9776_v20 = vmul.f32 -1.442695, %v5848_v58 }
0x3215   :  { %v5931_v19 = vpop.permute.xlu0 %5930 }
0x3216   :  { %v5933_v11 = vadd.f32 %v5931_v19, %v13836_v7 }
0x3218   :  { %12417 = vtanh.f32 %v5933_v11 }
0x3219   :  { %12419 = vpow2.f32 %v9776_v20 }
0x3222   :  { %v12418_v12 = vpop.eup %12417 }
0x3223   :  { %v5936_v9 = vrot.slane %v12418_v12, 2  ;;  %v12420_v14 = vpop.eup %12419 }
0x3224   :  { %v5852_v45 = vadd.f32 1.0, %v12420_v14 }
0x3225   :  { %v5938_v15 = vsub.f32 %v5686_v23, %v5936_v9 }
0x3226   :  { %12421 = vrcp.f32 %v5852_v45 }
0x3227   :  { %v5940_v16 = vrot.slane %v5938_v15, 6 }
0x3229   :  { %5941 = vrot.lane.b32.xlu0 %v5940_v16, %s12583_s4 }
0x3230   :  { %v12422_v37 = vpop.eup %12421 }
0x329b   :  { %v5942_v62 = vpop.permute.xlu0 %5941 }
0x329c   :  { %v5944_v26 = vmul.f32 %v12422_v37, %v5942_v62 }
0x329e   :  { %5946 = vrot.lane.b32.xlu1 %v5944_v26, %s12582_s27 }
0x3310   :  { %v5947_v49 = vpop.permute.xlu1 %5946 }
0x3311   :  { %v5949_v61 = vadd.f32 %v12418_v12, %v5947_v49 }
0x3313   :  { %v5951_v30 = vrot.slane %v5949_v61, 4 }
0x3315   :  { %5952 = vrot.lane.b32.xlu0 %v5951_v30, %s12581_s26 }
0x3387   :  { %v5953_v25 = vpop.permute.xlu0 %5952 }
0x3388   :  { %10987 = vmatmul.mubr.msk.f32.vlgmr.msra.gmra.mrb[82].mxu1 %vm831_vm1, %v5953_v25  ;;  %10998 = vmatmul.mubr.msk.f32.vlgmr.msra.gmra.mrb[40].mxu0 %vm831_vm1, %v5953_v25 }
0x3389   :  { %11817 = vmatpush3.bf16.msra.mxu1 %v13799_v53  ;;  %11008 = vmatprep.mubr.msk.f32.mxu1 %vm12579_vm0, %v12580_v42 }
0x338a   :  { %11818 = vmatprep.subr.bf16.mxu1 %v12578_v33  ;;  %11823 = vmatpush3.bf16.msra.mxu0 %v13667_v2 }
0x338b   :  { %11824 = vmatprep.subr.bf16.mxu0 %v12578_v33  ;;  %11019 = vmatprep.mubr.msk.f32.mxu0 %vm12579_vm0, %v12580_v42 }
0x338d   :  { %11820 = vmatpush3.bf16.msra.mxu1 %v13811_v57 }
0x338e   :  { %11827 = vmatprep.subr.bf16.mxu1 %v12578_v33  ;;  %11826 = vmatpush3.bf16.msra.mxu0 %v13674_v8 }
0x338f   :  { %11833 = vmatprep.subr.bf16.mxu0 %v12578_v33 }
0x3390   :  { %11009 = vmatmul.mubr.msk.f32.vlgmr.msra.gmra.mrb[84].mxu1 %vm831_vm1, %v5953_v25 }
0x3391   :  { %11829 = vmatpush3.bf16.msra.mxu1 %v13689_v32  ;;  %11030 = vmatprep.mubr.msk.f32.mxu1 %vm12579_vm0, %v12580_v42 }
0x3392   :  { %11830 = vmatprep.subr.bf16.mxu1 %v12578_v33 }
0x3395   :  { %11832 = vmatpush3.bf16.msra.mxu1 %v13699_v54 }
0x3396   :  { %11839 = vmatprep.subr.bf16.mxu1 %v12578_v33 }
0x345b   :  { %v6022_v13 = vpop.f32.mrb[82].mxu1  ;;  %v6092_v4 = vpop.f32.mrb[40].mxu0 }
0x345c   :  { %v6097_v3 = vrot.slane %v6022_v13, 2  ;;  %v6107_v29 = vrot.slane %v6092_v4, 2  ;;  %v10988_v35 = vpop.f32.mrb[83].mxu1  ;;  %v10999_v41 = vpop.f32.mrb[41].mxu0 }
0x345e   :  { %v6099_v38 = vadd.f32 %v6097_v3, %v13836_v7  ;;  %6108 = vrot.lane.b32.xlu0 %v6107_v29, %s12582_s27 }
0x3460   :  { %v9780_v39 = vmul.f32 -1.442695, %v6099_v38 }
0x3462   :  { %12423 = vpow2.f32 %v9780_v39 }
0x3463   :  { %v6184_v40 = vpop.f32.mrb[84].mxu1 }
0x3464   :  { %v11010_v34 = vpop.f32.mrb[85].mxu1  ;;  %v6185_v24 = vadd.f32 %v13849_v44, %v6184_v40 }
0x3466   :  { %v6189_v23 = vrot.slane %v6185_v24, 2 }
0x346c   :  { %v12424_v22 = vpop.eup %12423 }
0x346d   :  { %v6103_v21 = vadd.f32 1.0, %v12424_v22 }
0x346f   :  { %12425 = vrcp.f32 %v6103_v21 }
0x3479   :  { %v12426_v48 = vpop.eup %12425 }
0x347a   :  { %v6191_v28 = vmul.f32 %v12426_v48, %v6189_v23 }
0x347c   :  { %6193 = vrot.lane.b32.xlu1 %v6191_v28, %s12581_s26 }
0x34d0   :  { %v6109_v60 = vpop.permute.xlu0 %6108 }
0x34d1   :  { %v6111_v27 = vadd.f32 %v6109_v60, %v13836_v7 }
0x34d3   :  { %v9781_v56 = vmul.f32 -1.442695, %v6111_v27 }
0x34ee   :  { %v6194_v51 = vpop.permute.xlu1 %6193 }
0x34ef   :  { %v6196_v52 = vadd.f32 %v6194_v51, %v13836_v7 }
0x34f1   :  { %12427 = vtanh.f32 %v6196_v52 }
0x34f2   :  { %12429 = vpow2.f32 %v9781_v56 }
0x34fb   :  { %v12428_v55 = vpop.eup %12427 }
0x34fc   :  { %v6199_v59 = vrot.slane %v12428_v55, 2  ;;  %v12430_v50 = vpop.eup %12429 }
0x34fd   :  { %v6115_v0 = vadd.f32 1.0, %v12430_v50 }
0x34fe   :  { %v6201_v18 = vsub.f32 %v5949_v61, %v6199_v59 }
0x34ff   :  { %12431 = vrcp.f32 %v6115_v0 }
0x3500   :  { %v6203_v5 = vrot.slane %v6201_v18, 6 }
0x3502   :  { %6204 = vrot.lane.b32.xlu1 %v6203_v5, %s12583_s4 }
0x3509   :  { %v12432_v10 = vpop.eup %12431 }
0x3574   :  { %v6205_v46 = vpop.permute.xlu1 %6204 }
0x3575   :  { %v6207_v1 = vmul.f32 %v12432_v10, %v6205_v46 }
0x3577   :  { %6209 = vrot.lane.b32.xlu0 %v6207_v1, %s12582_s27 }
0x35e9   :  { %v6210_v6 = vpop.permute.xlu0 %6209 }
0x35ea   :  { %v6212_v31 = vadd.f32 %v12428_v55, %v6210_v6 }
0x35ec   :  { %v6214_v19 = vrot.slane %v6212_v31, 6 }
0x35ee   :  { %6215 = vrot.lane.b32.xlu1 %v6214_v19, %s12581_s26 }
0x3660   :  { %v6216_v11 = vpop.permute.xlu1 %6215 }
0x3661   :  { %11020 = vmatmul.mubr.msk.f32.vlgmr.msra.gmra.mrb[42].mxu0 %vm831_vm1, %v6216_v11  ;;  %11031 = vmatmul.mubr.msk.f32.vlgmr.msra.gmra.mrb[86].mxu1 %vm831_vm1, %v6216_v11 }
0x3662   :  { %11835 = vmatpush3.bf16.msra.mxu0 %v13799_v53  ;;  %11041 = vmatprep.mubr.msk.f32.mxu0 %vm12579_vm0, %v12580_v42 }
0x3663   :  { %11836 = vmatprep.subr.bf16.mxu0 %v12578_v33  ;;  %11841 = vmatpush3.bf16.msra.mxu1 %v13667_v2 }
0x3664   :  { %11842 = vmatprep.subr.bf16.mxu1 %v12578_v33  ;;  %11052 = vmatprep.mubr.msk.f32.mxu1 %vm12579_vm0, %v12580_v42 }
0x3666   :  { %11838 = vmatpush3.bf16.msra.mxu0 %v13811_v57 }
0x3667   :  { %11845 = vmatprep.subr.bf16.mxu0 %v12578_v33  ;;  %11844 = vmatpush3.bf16.msra.mxu1 %v13674_v8 }
0x3668   :  { %11851 = vmatprep.subr.bf16.mxu1 %v12578_v33 }
0x3669   :  { %11042 = vmatmul.mubr.msk.f32.vlgmr.msra.gmra.mrb[44].mxu0 %vm831_vm1, %v6216_v11 }
0x366a   :  { %11847 = vmatpush3.bf16.msra.mxu0 %v13689_v32  ;;  %11063 = vmatprep.mubr.msk.f32.mxu0 %vm12579_vm0, %v12580_v42 }
0x366b   :  { %11848 = vmatprep.subr.bf16.mxu0 %v12578_v33 }
0x366e   :  { %11850 = vmatpush3.bf16.msra.mxu0 %v13699_v54 }
0x366f   :  { %11857 = vmatprep.subr.bf16.mxu0 %v12578_v33 }
0x3734   :  { %v6285_v7 = vpop.f32.mrb[42].mxu0  ;;  %v6355_v12 = vpop.f32.mrb[86].mxu1 }
0x3735   :  { %v6359_v9 = vadd.f32 %v6285_v7, %v13842_v43  ;;  %v11021_v15 = vpop.f32.mrb[43].mxu0  ;;  %6367 = vrot.lane.b32.xlu1 %v6355_v12, %s12582_s27  ;;  %v11032_v16 = vpop.f32.mrb[87].mxu1 }
0x3737   :  { %v9785_v17 = vmul.f32 -1.442695, %v6359_v9 }
0x3739   :  { %12433 = vpow2.f32 %v9785_v17 }
0x373c   :  { %v6443_v58 = vpop.f32.mrb[44].mxu0 }
0x373d   :  { %v11043_v20 = vpop.f32.mrb[45].mxu0  ;;  %v6444_v37 = vadd.f32 %v13849_v44, %v6443_v58 }
0x3743   :  { %v12434_v14 = vpop.eup %12433 }
0x3744   :  { %v6363_v45 = vadd.f32 1.0, %v12434_v14 }
0x3746   :  { %12435 = vrcp.f32 %v6363_v45 }
0x3750   :  { %v12436_v62 = vpop.eup %12435 }
0x3751   :  { %v6447_v26 = vmul.f32 %v12436_v62, %v6444_v37 }
0x3753   :  { %6449 = vrot.lane.b32.xlu0 %v6447_v26, %s12581_s26 }
0x37a7   :  { %v6368_v3 = vpop.permute.xlu1 %6367 }
0x37a8   :  { %v6370_v29 = vadd.f32 %v6368_v3, %v13842_v43 }
0x37aa   :  { %v9786_v35 = vmul.f32 -1.442695, %v6370_v29 }
0x37c5   :  { %v6450_v49 = vpop.permute.xlu0 %6449 }
0x37c6   :  { %v6452_v61 = vadd.f32 %v6450_v49, %v13842_v43 }
0x37c8   :  { %12437 = vtanh.f32 %v6452_v61 }
0x37c9   :  { %12439 = vpow2.f32 %v9786_v35 }
0x37d2   :  { %v12438_v30 = vpop.eup %12437 }
0x37d3   :  { %v6455_v25 = vrot.slane %v12438_v30, 2  ;;  %v12440_v41 = vpop.eup %12439 }
0x37d4   :  { %v6374_v38 = vadd.f32 1.0, %v12440_v41 }
0x37d5   :  { %v6457_v13 = vsub.f32 %v6212_v31, %v6455_v25 }
0x37d6   :  { %12441 = vrcp.f32 %v6374_v38 }
0x37d7   :  { %v6459_v4 = vrot.slane %v6457_v13, 6 }
0x37d9   :  { %6460 = vrot.lane.b32.xlu0 %v6459_v4, %s12583_s4 }
0x37e0   :  { %v12442_v39 = vpop.eup %12441 }
0x384b   :  { %v6461_v40 = vpop.permute.xlu0 %6460 }
0x384c   :  { %v6463_v34 = vmul.f32 %v12442_v39, %v6461_v40 }
0x384e   :  { %6465 = vrot.lane.b32.xlu1 %v6463_v34, %s12582_s27 }
0x38c0   :  { %v6466_v22 = vpop.permute.xlu1 %6465 }
0x38c1   :  { %v6468_v21 = vadd.f32 %v12438_v30, %v6466_v22 }
0x38c3   :  { %6470 = vrot.lane.b32.xlu0 %v6468_v21, %s12581_s26 }
0x3935   :  { %v6471_v24 = vpop.permute.xlu0 %6470 }
0x3936   :  { %11053 = vmatmul.mubr.msk.f32.vlgmr.msra.gmra.mrb[88].mxu1 %vm831_vm1, %v6471_v24  ;;  %11064 = vmatmul.mubr.msk.f32.vlgmr.msra.gmra.mrb[46].mxu0 %vm831_vm1, %v6471_v24 }
0x3937   :  { %11853 = vmatpush3.bf16.msra.mxu1 %v13799_v53  ;;  %11074 = vmatprep.mubr.msk.f32.mxu1 %vm12579_vm0, %v12580_v42 }
0x3938   :  { %11854 = vmatprep.subr.bf16.mxu1 %v12578_v33  ;;  %11859 = vmatpush3.bf16.msra.mxu0 %v13667_v2 }
0x3939   :  { %11860 = vmatprep.subr.bf16.mxu0 %v12578_v33  ;;  %11085 = vmatprep.mubr.msk.f32.mxu0 %vm12579_vm0, %v12580_v42 }
0x393b   :  { %11856 = vmatpush3.bf16.msra.mxu1 %v13811_v57 }
0x393c   :  { %11863 = vmatprep.subr.bf16.mxu1 %v12578_v33  ;;  %11862 = vmatpush3.bf16.msra.mxu0 %v13674_v8 }
0x393d   :  { %11869 = vmatprep.subr.bf16.mxu0 %v12578_v33 }
0x393e   :  { %11075 = vmatmul.mubr.msk.f32.vlgmr.msra.gmra.mrb[90].mxu1 %vm831_vm1, %v6471_v24 }
0x393f   :  { %11865 = vmatpush3.bf16.msra.mxu1 %v13689_v32  ;;  %11096 = vmatprep.mubr.msk.f32.mxu1 %vm12579_vm0, %v12580_v42 }
0x3940   :  { %11866 = vmatprep.subr.bf16.mxu1 %v12578_v33 }
0x3943   :  { %11868 = vmatpush3.bf16.msra.mxu1 %v13699_v54 }
0x3944   :  { %11875 = vmatprep.subr.bf16.mxu1 %v12578_v33 }
0x3a09   :  { %v6540_v23 = vpop.f32.mrb[88].mxu1  ;;  %v6610_v48 = vpop.f32.mrb[46].mxu0 }
0x3a0a   :  { %v6615_v28 = vrot.slane %v6540_v23, 6  ;;  %v6625_v51 = vrot.slane %v6610_v48, 6  ;;  %v11054_v52 = vpop.f32.mrb[89].mxu1  ;;  %v11065_v55 = vpop.f32.mrb[47].mxu0 }
0x3a0c   :  { %v6617_v59 = vadd.f32 %v6615_v28, %v13842_v43  ;;  %6626 = vrot.lane.b32.xlu0 %v6625_v51, %s12582_s27 }
0x3a0e   :  { %v9790_v18 = vmul.f32 -1.442695, %v6617_v59 }
0x3a10   :  { %12443 = vpow2.f32 %v9790_v18 }
0x3a11   :  { %v6702_v5 = vpop.f32.mrb[90].mxu1 }
0x3a12   :  { %v11076_v60 = vpop.f32.mrb[91].mxu1  ;;  %v6703_v50 = vadd.f32 %v13849_v44, %v6702_v5 }
0x3a14   :  { %v6707_v0 = vrot.slane %v6703_v50, 6  ;;  %v7257_v50 = vld [vmem:[%s14457_s11] sm:$0xff] }
0x3a1a   :  { %v12444_v27 = vpop.eup %12443 }
0x3a1b   :  { %v6621_v56 = vadd.f32 1.0, %v12444_v27 }
0x3a1d   :  { %12445 = vrcp.f32 %v6621_v56 }
0x3a27   :  { %v12446_v10 = vpop.eup %12445 }
0x3a28   :  { %v6709_v46 = vmul.f32 %v12446_v10, %v6707_v0  ;;  %v7258_v0 = vld [vmem:[%s14457_s11 + $0x8] sm:$0xff] }
0x3a29   :  { %v14047_v10 = vpack.c.bf16 %v7258_v0, %v7257_v50 }
0x3a2a   :  { %6711 = vrot.lane.b32.xlu1 %v6709_v46, %s12581_s26  ;;  %v7259_v46 = vld [vmem:[%s14457_s11 + $0x10] sm:$0xff] }
0x3a7e   :  { %v6627_v12 = vpop.permute.xlu0 %6626 }
0x3a7f   :  { %v6629_v9 = vadd.f32 %v6627_v12, %v13842_v43 }
0x3a81   :  { %v9791_v15 = vmul.f32 -1.442695, %v6629_v9  ;;  %v9805_v9 = vld [vmem:[%s14457_s11 + $0x30] sm:$0xff] }
0x3a9c   :  { %v6712_v1 = vpop.permute.xlu1 %6711 }
0x3a9d   :  { %v6714_v6 = vadd.f32 %v6712_v1, %v13842_v43  ;;  %v7260_v1 = vld [vmem:[%s14457_s11 + $0x18] sm:$0xff] }
0x3a9f   :  { %12447 = vtanh.f32 %v6714_v6 }
0x3aa0   :  { %12449 = vpow2.f32 %v9791_v15  ;;  %v9806_v15 = vld [vmem:[%s14457_s11 + $0x38] sm:$0xff] }
0x3aa9   :  { %v12448_v31 = vpop.eup %12447 }
0x3aaa   :  { %v6717_v19 = vrot.slane %v12448_v31, 2  ;;  %v12450_v16 = vpop.eup %12449 }
0x3aab   :  { %v6633_v17 = vadd.f32 1.0, %v12450_v16 }
0x3aac   :  { %v6719_v11 = vsub.f32 %v6468_v21, %v6717_v19  ;;  %v9803_v19 = vld [vmem:[%s14457_s11 + $0x20] sm:$0xff] }
0x3aad   :  { %12451 = vrcp.f32 %v6633_v17  ;;  %v9810_v17 = vld [vmem:[%s14457_s11 + $0x58] sm:$0xff] }
0x3aae   :  { %v6721_v7 = vrot.slane %v6719_v11, 6  ;;  %v9804_v11 = vld [vmem:[%s14457_s11 + $0x28] sm:$0xff] }
0x3aaf   :  { %v14081_v12 = vpack.c.bf16 %v9804_v11, %v9803_v19 }
0x3ab0   :  { %6722 = vrot.lane.b32.xlu1 %v6721_v7, %s12583_s4  ;;  %v9808_v7 = vld [vmem:[%s14457_s11 + $0x48] sm:$0xff] }
0x3ab7   :  { %v12452_v58 = vpop.eup %12451 }
0x3b22   :  { %v6723_v20 = vpop.permute.xlu1 %6722 }
0x3b23   :  { %v6725_v14 = vmul.f32 %v12452_v58, %v6723_v20  ;;  %v14102_v58 = vpack.c.bf16 %v9806_v15, %v9805_v9 }
0x3b25   :  { %6727 = vrot.lane.b32.xlu0 %v6725_v14, %s12582_s27 }
0x3b97   :  { %v6728_v45 = vpop.permute.xlu0 %6727 }
0x3b98   :  { %v6730_v37 = vadd.f32 %v12448_v31, %v6728_v45  ;;  %v14059_v31 = vpack.c.bf16 %v7260_v1, %v7259_v46 }
0x3b9a   :  { %v6732_v62 = vrot.slane %v6730_v37, 2 }
0x3b9c   :  { %6733 = vrot.lane.b32.xlu1 %v6732_v62, %s12581_s26 }
0x3c0e   :  { %v6734_v26 = vpop.permute.xlu1 %6733 }
0x3c0f   :  { %11086 = vmatmul.mubr.msk.f32.vlgmr.msra.gmra.mrb[48].mxu0 %vm831_vm1, %v6734_v26  ;;  %11097 = vmatmul.mubr.msk.f32.vlgmr.msra.gmra.mrb[92].mxu1 %vm831_vm1, %v6734_v26 }
0x3c10   :  { %11871 = vmatpush3.bf16.msra.mxu0 %v13799_v53  ;;  %11107 = vmatprep.mubr.msk.f32.mxu0 %vm12579_vm0, %v12580_v42 }
0x3c11   :  { %11872 = vmatprep.subr.bf16.mxu0 %v12578_v33  ;;  %11877 = vmatpush3.bf16.msra.mxu1 %v13667_v2 }
0x3c12   :  { %11878 = vmatprep.subr.bf16.mxu1 %v12578_v33  ;;  %11118 = vmatprep.mubr.msk.f32.mxu1 %vm12579_vm0, %v12580_v42 }
0x3c14   :  { %11874 = vmatpush3.bf16.msra.mxu0 %v13811_v57 }
0x3c15   :  { %11881 = vmatprep.subr.bf16.mxu0 %v12578_v33  ;;  %11880 = vmatpush3.bf16.msra.mxu1 %v13674_v8 }
0x3c16   :  { %11887 = vmatprep.subr.bf16.mxu1 %v12578_v33 }
0x3c17   :  { %11108 = vmatmul.mubr.msk.f32.vlgmr.msra.gmra.mrb[50].mxu0 %vm831_vm1, %v6734_v26 }
0x3c18   :  { %11883 = vmatpush3.bf16.msra.mxu0 %v13689_v32  ;;  %11129 = vmatprep.mubr.msk.f32.mxu0 %vm12579_vm0, %v12580_v42 }
0x3c19   :  { %11884 = vmatprep.subr.bf16.mxu0 %v12578_v33 }
0x3c1c   :  { %11886 = vmatpush3.bf16.msra.mxu0 %v13699_v54 }
0x3c1d   :  { %11893 = vmatprep.subr.bf16.mxu0 %v12578_v33 }
0x3ce2   :  { %v6803_v2 = vpop.f32.mrb[48].mxu0  ;;  %v6873_v49 = vpop.f32.mrb[92].mxu1 }
0x3ce3   :  { %v6878_v61 = vrot.slane %v6803_v2, 4  ;;  %v6888_v30 = vrot.slane %v6873_v49, 4  ;;  %v11087_v8 = vpop.f32.mrb[49].mxu0  ;;  %v11098_v25 = vpop.f32.mrb[93].mxu1 }
0x3ce4   :  { %v14136_v8 = vadd.f32 %v13844_v47, %v13834_v36 }
0x3ce5   :  { %v6880_v13 = vadd.f32 %v6878_v61, %v13842_v43  ;;  %6889 = vrot.lane.b32.xlu1 %v6888_v30, %s12582_s27 }
0x3ce7   :  { %v9795_v32 = vmul.f32 -1.442695, %v6880_v13 }
0x3ce9   :  { %12453 = vpow2.f32 %v9795_v32 }
0x3cea   :  { %v6965_v4 = vpop.f32.mrb[50].mxu0 }
0x3ceb   :  { %v11109_v3 = vpop.f32.mrb[51].mxu0  ;;  %v6966_v54 = vadd.f32 %v13849_v44, %v6965_v4 }
0x3ced   :  { %v6970_v41 = vrot.slane %v6966_v54, 4 }
0x3cf3   :  { %v12454_v29 = vpop.eup %12453 }
0x3cf4   :  { %v6884_v35 = vadd.f32 1.0, %v12454_v29 }
0x3cf6   :  { %12455 = vrcp.f32 %v6884_v35 }
0x3d00   :  { %v12456_v38 = vpop.eup %12455 }
0x3d01   :  { %v6972_v39 = vmul.f32 %v12456_v38, %v6970_v41 }
0x3d03   :  { %6974 = vrot.lane.b32.xlu0 %v6972_v39, %s12581_s26 }
0x3d57   :  { %v6890_v48 = vpop.permute.xlu1 %6889 }
0x3d58   :  { %v6892_v28 = vadd.f32 %v6890_v48, %v13842_v43 }
0x3d5a   :  { %v9796_v51 = vmul.f32 -1.442695, %v6892_v28 }
0x3d75   :  { %v6975_v40 = vpop.permute.xlu0 %6974 }
0x3d76   :  { %v6977_v34 = vadd.f32 %v6975_v40, %v13842_v43 }
0x3d78   :  { %12457 = vtanh.f32 %v6977_v34 }
0x3d79   :  { %12459 = vpow2.f32 %v9796_v51 }
0x3d82   :  { %v12458_v22 = vpop.eup %12457 }
0x3d83   :  { %v6980_v21 = vrot.slane %v12458_v22, 2  ;;  %v12460_v52 = vpop.eup %12459 }
0x3d84   :  { %v6896_v55 = vadd.f32 1.0, %v12460_v52 }
0x3d85   :  { %v6982_v24 = vsub.f32 %v6730_v37, %v6980_v21 }
0x3d86   :  { %12461 = vrcp.f32 %v6896_v55 }
0x3d87   :  { %v6984_v23 = vrot.slane %v6982_v24, 6 }
0x3d89   :  { %6985 = vrot.lane.b32.xlu0 %v6984_v23, %s12583_s4 }
0x3d90   :  { %v12462_v59 = vpop.eup %12461 }
0x3dfb   :  { %v6986_v18 = vpop.permute.xlu0 %6985 }
0x3dfc   :  { %v6988_v5 = vmul.f32 %v12462_v59, %v6986_v18 }
0x3dfe   :  { %6990 = vrot.lane.b32.xlu1 %v6988_v5, %s12582_s27 }
0x3e70   :  { %v6991_v60 = vpop.permute.xlu1 %6990 }
0x3e71   :  { %v14037_v27 = vadd.f32 %v12458_v22, %v6991_v60  ;;  %v14144_v22 = vld [vmem:[%s14458_s12] ss:$0 sm:$0xff] }
0x3e73   :  { %v6995_v56 = vrot.slane %v14037_v27, 4 }
0x3e75   :  { %6996 = vrot.lane.b32.xlu0 %v6995_v56, %s12581_s26 }
0x3ee7   :  { %v6997_v6 = vpop.permute.xlu0 %6996 }
0x3ee8   :  { %11119 = vmatmul.mubr.msk.f32.vlgmr.msra.gmra.mrb[94].mxu1 %vm831_vm1, %v6997_v6  ;;  %11130 = vmatmul.mubr.msk.f32.vlgmr.msra.gmra.mrb[52].mxu0 %vm831_vm1, %v6997_v6 }
0x3ee9   :  { %11889 = vmatpush3.bf16.msra.mxu1 %v13799_v53  ;;  %11895 = vmatpush3.bf16.msra.mxu0 %v14047_v10  ;;  %v9807_v53 = vld [vmem:[%s14457_s11 + $0x40] sm:$0xff] }
0x3eea   :  { %11890 = vmatprep.subr.bf16.mxu1 %v12578_v33  ;;  %11896 = vmatprep.subr.bf16.mxu0 %v12578_v33  ;;  %v14091_v16 = vpack.c.bf16 %v9808_v7, %v9807_v53 }
0x3eeb   :  { %11140 = vmatprep.mubr.msk.f32.mxu1 %vm12579_vm0, %v12580_v42  ;;  %11151 = vmatprep.mubr.msk.f32.mxu0 %vm12579_vm0, %v12580_v42 }
0x3eed   :  { %11892 = vmatpush3.bf16.msra.mxu1 %v13811_v57  ;;  %11898 = vmatpush3.bf16.msra.mxu0 %v14059_v31  ;;  %v9809_v57 = vld [vmem:[%s14457_s11 + $0x50] sm:$0xff] }
0x3eee   :  { %11899 = vmatprep.subr.bf16.mxu1 %v12578_v33  ;;  %11905 = vmatprep.subr.bf16.mxu0 %v12578_v33  ;;  %v14108_v20 = vpack.c.bf16 %v9810_v17, %v9809_v57 }
0x3ef0   :  { %11141 = vmatmul.mubr.msk.f32.vlgmr.msra.gmra.mrb[96].mxu1 %vm831_vm1, %v6997_v6  ;;  %11152 = vmatmul.mubr.f32.vlgmr.msra.gmra.mrb[54].mxu0 %v12580_v42 }
0x3ef1   :  { %11901 = vmatpush3.bf16.msra.mxu1 %v14081_v12  ;;  %11162 = vmatprep.mubr.msk.f32.mxu1 %vm12579_vm0, %v12580_v42 }
0x3ef2   :  { %11902 = vmatprep.subr.bf16.mxu1 %v12578_v33  ;;  %11907 = vmatpush3.bf16.msra.mxu0 %v14091_v16 }
0x3ef3   :  { %11908 = vmatprep.subr.bf16.mxu0 %v12578_v33  ;;  %11173 = vmatprep.mubr.msk.f32.mxu0 %vm12579_vm0, %v12580_v42 }
0x3ef5   :  { %11904 = vmatpush3.bf16.msra.mxu1 %v14102_v58 }
0x3ef6   :  { %11910 = vmatpush3.bf16.msra.mxu0 %v14108_v20  ;;  %11911 = vmatprep.subr.bf16.mxu1 %v12578_v33 }
0x3ef7   :  { %11917 = vmatprep.subr.bf16.mxu0 %v12578_v33 }
0x3ef8   :  { %11163 = vmatmul.mubr.f32.vlgmr.msra.gmra.mrb[98].mxu1 %v12580_v42 }
0x3ef9   :  { %11174 = vmatmul.mubr.f32.vlgmr.msra.gmra.mrb[56].mxu0 %v12580_v42  ;;  %11913 = vmatpush3.bf16.msra.mxu1 %v14047_v10 }
0x3efa   :  { %11919 = vmatpush3.bf16.msra.mxu0 %v14081_v12  ;;  %11914 = vmatprep.subr.bf16.mxu1 %v12578_v33 }
0x3efb   :  { %11920 = vmatprep.subr.bf16.mxu0 %v12578_v33  ;;  %11184 = vmatprep.mubr.msk.f32.mxu1 %vm12579_vm0, %v12580_v42 }
0x3efc   :  { %11195 = vmatprep.mubr.msk.f32.mxu0 %vm12579_vm0, %v12580_v42 }
0x3efd   :  { %11916 = vmatpush3.bf16.msra.mxu1 %v14059_v31 }
0x3efe   :  { %11922 = vmatpush3.bf16.msra.mxu0 %v14102_v58  ;;  %11923 = vmatprep.subr.bf16.mxu1 %v12578_v33 }
0x3eff   :  { %11929 = vmatprep.subr.bf16.mxu0 %v12578_v33 }
0x3fbb   :  { %v7066_v14 = vpop.f32.mrb[94].mxu1  ;;  %v14131_v45 = vpop.f32.mrb[52].mxu0 }
0x3fbc   :  { %v7141_v37 = vrot.slane %v7066_v14, 2  ;;  %v11120_v62 = vpop.f32.mrb[95].mxu1  ;;  %v11131_v26 = vpop.f32.mrb[53].mxu0 }
0x3fbe   :  { %v7143_v2 = vadd.f32 %v7141_v37, %v13842_v43 }
0x3fc0   :  { %v9800_v49 = vmul.f32 -1.442695, %v7143_v2 }
0x3fc2   :  { %12463 = vpow2.f32 %v9800_v49 }
0x3fc3   :  { %v7228_v61 = vpop.f32.mrb[96].mxu1  ;;  %v7344_v30 = vpop.f32.mrb[54].mxu0 }
0x3fc4   :  { %v7419_v25 = vrot.slane %v7344_v30, 2  ;;  %v11142_v13 = vpop.f32.mrb[97].mxu1  ;;  %v11153_v32 = vpop.f32.mrb[55].mxu0  ;;  %v7229_v36 = vadd.f32 %v13849_v44, %v7228_v61 }
0x3fc6   :  { %v7421_v4 = vadd.f32 %v7419_v25, %v14136_v8  ;;  %v7233_v21 = vrot.slane %v7229_v36, 2 }
0x3fc8   :  { %v9812_v3 = vmul.f32 -1.442695, %v7421_v4 }
0x3fca   :  { %12465 = vpow2.f32 %v9812_v3 }
0x3fcb   :  { %v7414_v29 = vpop.f32.mrb[98].mxu1 }
0x3fcc   :  { %v12464_v35 = vpop.eup %12463  ;;  %v7429_v54 = vrot.slane %v7414_v29, 2  ;;  %v7506_v41 = vpop.f32.mrb[56].mxu0 }
0x3fcd   :  { %v11164_v38 = vpop.f32.mrb[99].mxu1  ;;  %v7147_v39 = vadd.f32 1.0, %v12464_v35  ;;  %v11175_v40 = vpop.f32.mrb[57].mxu0  ;;  %v7507_v48 = vadd.f32 %v14144_v22, %v7506_v41 }
0x3fce   :  { %7430 = vrot.lane.b32.xlu0 %v7429_v54, %s12582_s27 }
0x3fcf   :  { %12467 = vrcp.f32 %v7147_v39  ;;  %v7511_v28 = vrot.slane %v7507_v48, 2 }
0x3fd4   :  { %v12466_v34 = vpop.eup %12465 }
0x3fd5   :  { %v7425_v47 = vadd.f32 1.0, %v12466_v34 }
0x3fd7   :  { %12469 = vrcp.f32 %v7425_v47 }
0x3fd9   :  { %v12468_v24 = vpop.eup %12467 }
0x3fda   :  { %v14146_v23 = vmul.f32 %v12468_v24, %v7233_v21 }
0x3fe1   :  { %v12470_v51 = vpop.eup %12469 }
0x3fe2   :  { %v7513_v52 = vmul.f32 %v12470_v51, %v7511_v28 }
0x3fe4   :  { %7515 = vrot.lane.b32.xlu1 %v7513_v52, %s12581_s26 }
0x4040   :  { %v7431_v5 = vpop.permute.xlu0 %7430 }
0x4041   :  { %v7433_v60 = vadd.f32 %v7431_v5, %v14136_v8 }
0x4043   :  { %v9813_v56 = vmul.f32 -1.442695, %v7433_v60 }
0x4056   :  { %v7516_v55 = vpop.permute.xlu1 %7515 }
0x4057   :  { %v7518_v44 = vadd.f32 %v7516_v55, %v14136_v8 }
0x4059   :  { %12471 = vtanh.f32 %v7518_v44 }
0x405a   :  { %12473 = vpow2.f32 %v9813_v56 }
0x4063   :  { %v12472_v59 = vpop.eup %12471 }
0x4064   :  { %v7520_v18 = vsub.f32 0.0, %v12472_v59  ;;  %v12474_v50 = vpop.eup %12473 }
0x4065   :  { %v7437_v0 = vadd.f32 1.0, %v12474_v50 }
0x4066   :  { %7522 = vrot.lane.b32.xlu1 %v7520_v18, %s12583_s4 }
0x4067   :  { %12475 = vrcp.f32 %v7437_v0 }
0x4071   :  { %v12476_v46 = vpop.eup %12475 }
0x40d8   :  { %v7523_v1 = vpop.permute.xlu1 %7522 }
0x40d9   :  { %v7525_v6 = vmul.f32 %v12476_v46, %v7523_v1 }
0x40db   :  { %7527 = vrot.lane.b32.xlu0 %v7525_v6, %s12582_s27 }
0x414d   :  { %v7528_v19 = vpop.permute.xlu0 %7527 }
0x414e   :  { %v7530_v11 = vadd.f32 %v12472_v59, %v7528_v19 }
0x4150   :  { %v7532_v53 = vrot.slane %v7530_v11, 6 }
0x4152   :  { %7533 = vrot.lane.b32.xlu1 %v7532_v53, %s12581_s26 }
0x41c4   :  { %v7534_v7 = vpop.permute.xlu1 %7533 }
0x41c5   :  { %11185 = vmatmul.mubr.msk.f32.vlgmr.msra.gmra.mrb[100].mxu1 %vm831_vm1, %v7534_v7  ;;  %11196 = vmatmul.mubr.msk.f32.vlgmr.msra.gmra.mrb[58].mxu0 %vm831_vm1, %v7534_v7 }
0x41c6   :  { %11925 = vmatpush3.bf16.msra.mxu1 %v14091_v16  ;;  %11206 = vmatprep.mubr.msk.f32.mxu1 %vm12579_vm0, %v12580_v42 }
0x41c7   :  { %11926 = vmatprep.subr.bf16.mxu1 %v12578_v33  ;;  %11931 = vmatpush3.bf16.msra.mxu0 %v14047_v10 }
0x41c8   :  { %11932 = vmatprep.subr.bf16.mxu0 %v12578_v33  ;;  %11217 = vmatprep.mubr.msk.f32.mxu0 %vm12579_vm0, %v12580_v42 }
0x41ca   :  { %11928 = vmatpush3.bf16.msra.mxu1 %v14108_v20 }
0x41cb   :  { %11935 = vmatprep.subr.bf16.mxu1 %v12578_v33  ;;  %11934 = vmatpush3.bf16.msra.mxu0 %v14059_v31 }
0x41cc   :  { %11941 = vmatprep.subr.bf16.mxu0 %v12578_v33 }
0x41cd   :  { %11207 = vmatmul.mubr.msk.f32.vlgmr.msra.gmra.mrb[102].mxu1 %vm831_vm1, %v7534_v7 }
0x41ce   :  { %11937 = vmatpush3.bf16.msra.mxu1 %v14081_v12  ;;  %11228 = vmatprep.mubr.msk.f32.mxu1 %vm12579_vm0, %v12580_v42 }
0x41cf   :  { %11938 = vmatprep.subr.bf16.mxu1 %v12578_v33 }
0x41d2   :  { %11940 = vmatpush3.bf16.msra.mxu1 %v14102_v58 }
0x41d3   :  { %11947 = vmatprep.subr.bf16.mxu1 %v12578_v33 }
0x4298   :  { %v7603_v9 = vpop.f32.mrb[100].mxu1  ;;  %v7673_v15 = vpop.f32.mrb[58].mxu0 }
0x4299   :  { %v7678_v57 = vrot.slane %v7603_v9, 4  ;;  %v7688_v17 = vrot.slane %v7673_v15, 4  ;;  %v11186_v14 = vpop.f32.mrb[101].mxu1  ;;  %v11197_v37 = vpop.f32.mrb[59].mxu0 }
0x429b   :  { %v7680_v62 = vadd.f32 %v7678_v57, %v14136_v8  ;;  %7689 = vrot.lane.b32.xlu1 %v7688_v17, %s12582_s27 }
0x429d   :  { %v9816_v26 = vmul.f32 -1.442695, %v7680_v62 }
0x429f   :  { %12477 = vpow2.f32 %v9816_v26 }
0x42a0   :  { %v7765_v2 = vpop.f32.mrb[102].mxu1 }
0x42a1   :  { %v11208_v49 = vpop.f32.mrb[103].mxu1  ;;  %v7766_v25 = vadd.f32 %v14144_v22, %v7765_v2 }
0x42a3   :  { %v7770_v13 = vrot.slane %v7766_v25, 4 }
0x42a9   :  { %v12478_v61 = vpop.eup %12477 }
0x42aa   :  { %v7684_v30 = vadd.f32 1.0, %v12478_v61 }
0x42ac   :  { %12479 = vrcp.f32 %v7684_v30 }
0x42b6   :  { %v12480_v32 = vpop.eup %12479 }
0x42b7   :  { %v7772_v4 = vmul.f32 %v12480_v32, %v7770_v13 }
0x42b9   :  { %7774 = vrot.lane.b32.xlu0 %v7772_v4, %s12581_s26 }
0x430d   :  { %v7690_v39 = vpop.permute.xlu1 %7689 }
0x430e   :  { %v7692_v40 = vadd.f32 %v7690_v39, %v14136_v8 }
0x4310   :  { %v9817_v34 = vmul.f32 -1.442695, %v7692_v40 }
0x432b   :  { %v7775_v3 = vpop.permute.xlu0 %7774 }
0x432c   :  { %v7777_v29 = vadd.f32 %v7775_v3, %v14136_v8 }
0x432e   :  { %12481 = vtanh.f32 %v7777_v29 }
0x432f   :  { %12483 = vpow2.f32 %v9817_v34 }
0x4338   :  { %v12482_v35 = vpop.eup %12481 }
0x4339   :  { %v7780_v54 = vrot.slane %v12482_v35, 6  ;;  %v12484_v36 = vpop.eup %12483 }
0x433a   :  { %v7696_v47 = vadd.f32 1.0, %v12484_v36 }
0x433b   :  { %v7782_v41 = vsub.f32 %v7530_v11, %v7780_v54 }
0x433c   :  { %12485 = vrcp.f32 %v7696_v47 }
0x433d   :  { %v7784_v38 = vrot.slane %v7782_v41, 2 }
0x433f   :  { %7785 = vrot.lane.b32.xlu0 %v7784_v38, %s12583_s4 }
0x4346   :  { %v12486_v21 = vpop.eup %12485 }
0x43b1   :  { %v7786_v24 = vpop.permute.xlu0 %7785 }
0x43b2   :  { %v7788_v48 = vmul.f32 %v12486_v21, %v7786_v24 }
0x43b4   :  { %7790 = vrot.lane.b32.xlu1 %v7788_v48, %s12582_s27 }
0x4426   :  { %v7791_v28 = vpop.permute.xlu1 %7790 }
0x4427   :  { %v7793_v51 = vadd.f32 %v12482_v35, %v7791_v28 }
0x4429   :  { %v7795_v52 = vrot.slane %v7793_v51, 4 }
0x442b   :  { %7796 = vrot.lane.b32.xlu0 %v7795_v52, %s12581_s26 }
0x449d   :  { %v7797_v55 = vpop.permute.xlu0 %7796 }
0x449e   :  { %11218 = vmatmul.mubr.msk.f32.vlgmr.msra.gmra.mrb[60].mxu0 %vm831_vm1, %v7797_v55  ;;  %11229 = vmatmul.mubr.msk.f32.vlgmr.msra.gmra.mrb[104].mxu1 %vm831_vm1, %v7797_v55 }
0x449f   :  { %11943 = vmatpush3.bf16.msra.mxu0 %v14091_v16  ;;  %11239 = vmatprep.mubr.msk.f32.mxu0 %vm12579_vm0, %v12580_v42 }
0x44a0   :  { %11944 = vmatprep.subr.bf16.mxu0 %v12578_v33  ;;  %11949 = vmatpush3.bf16.msra.mxu1 %v14047_v10 }
0x44a1   :  { %11950 = vmatprep.subr.bf16.mxu1 %v12578_v33  ;;  %11250 = vmatprep.mubr.msk.f32.mxu1 %vm12579_vm0, %v12580_v42 }
0x44a3   :  { %11946 = vmatpush3.bf16.msra.mxu0 %v14108_v20 }
0x44a4   :  { %11953 = vmatprep.subr.bf16.mxu0 %v12578_v33  ;;  %11952 = vmatpush3.bf16.msra.mxu1 %v14059_v31 }
0x44a5   :  { %11959 = vmatprep.subr.bf16.mxu1 %v12578_v33 }
0x44a6   :  { %11240 = vmatmul.mubr.msk.f32.vlgmr.msra.gmra.mrb[62].mxu0 %vm831_vm1, %v7797_v55 }
0x44a7   :  { %11955 = vmatpush3.bf16.msra.mxu0 %v14081_v12  ;;  %11261 = vmatprep.mubr.msk.f32.mxu0 %vm12579_vm0, %v12580_v42 }
0x44a8   :  { %11956 = vmatprep.subr.bf16.mxu0 %v12578_v33 }
0x44ab   :  { %11958 = vmatpush3.bf16.msra.mxu0 %v14102_v58 }
0x44ac   :  { %11965 = vmatprep.subr.bf16.mxu0 %v12578_v33 }
0x4571   :  { %v7866_v44 = vpop.f32.mrb[60].mxu0  ;;  %v7936_v59 = vpop.f32.mrb[104].mxu1 }
0x4572   :  { %v7941_v18 = vrot.slane %v7866_v44, 6  ;;  %v7951_v5 = vrot.slane %v7936_v59, 6  ;;  %v11219_v60 = vpop.f32.mrb[61].mxu0  ;;  %v11230_v56 = vpop.f32.mrb[105].mxu1 }
0x4574   :  { %v7943_v50 = vadd.f32 %v7941_v18, %v14136_v8  ;;  %7952 = vrot.lane.b32.xlu0 %v7951_v5, %s12582_s27 }
0x4576   :  { %v9821_v0 = vmul.f32 -1.442695, %v7943_v50 }
0x4578   :  { %12487 = vpow2.f32 %v9821_v0 }
0x4579   :  { %v8028_v46 = vpop.f32.mrb[62].mxu0 }
0x457a   :  { %v11241_v1 = vpop.f32.mrb[63].mxu0  ;;  %v8029_v11 = vadd.f32 %v14144_v22, %v8028_v46 }
0x457c   :  { %v8033_v53 = vrot.slane %v8029_v11, 6 }
0x4582   :  { %v12488_v6 = vpop.eup %12487 }
0x4583   :  { %v7947_v19 = vadd.f32 1.0, %v12488_v6 }
0x4585   :  { %12489 = vrcp.f32 %v7947_v19 }
0x458f   :  { %v12490_v7 = vpop.eup %12489 }
0x4590   :  { %v8035_v9 = vmul.f32 %v12490_v7, %v8033_v53 }
0x4592   :  { %8037 = vrot.lane.b32.xlu1 %v8035_v9, %s12581_s26 }
0x45e6   :  { %v7953_v26 = vpop.permute.xlu0 %7952 }
0x45e7   :  { %v7955_v2 = vadd.f32 %v7953_v26, %v14136_v8 }
0x45e9   :  { %v9822_v49 = vmul.f32 -1.442695, %v7955_v2 }
0x4604   :  { %v8038_v15 = vpop.permute.xlu1 %8037 }
0x4605   :  { %v8040_v57 = vadd.f32 %v8038_v15, %v14136_v8 }
0x4607   :  { %12491 = vtanh.f32 %v8040_v57 }
0x4608   :  { %12493 = vpow2.f32 %v9822_v49 }
0x4611   :  { %v12492_v17 = vpop.eup %12491 }
0x4612   :  { %v8043_v14 = vrot.slane %v12492_v17, 6  ;;  %v12494_v61 = vpop.eup %12493 }
0x4613   :  { %v7959_v30 = vadd.f32 1.0, %v12494_v61 }
0x4614   :  { %v8045_v37 = vsub.f32 %v7793_v51, %v8043_v14 }
0x4615   :  { %12495 = vrcp.f32 %v7959_v30 }
0x4616   :  { %v8047_v62 = vrot.slane %v8045_v37, 2 }
0x4618   :  { %8048 = vrot.lane.b32.xlu1 %v8047_v62, %s12583_s4 }
0x461f   :  { %v12496_v25 = vpop.eup %12495 }
0x468a   :  { %v8049_v13 = vpop.permute.xlu1 %8048 }
0x468b   :  { %v8051_v32 = vmul.f32 %v12496_v25, %v8049_v13 }
0x468d   :  { %8053 = vrot.lane.b32.xlu0 %v8051_v32, %s12582_s27 }
0x46ff   :  { %v8054_v4 = vpop.permute.xlu0 %8053 }
0x4700   :  { %v8056_v3 = vadd.f32 %v12492_v17, %v8054_v4 }
0x4702   :  { %v8058_v29 = vrot.slane %v8056_v3, 2 }
0x4704   :  { %8059 = vrot.lane.b32.xlu1 %v8058_v29, %s12581_s26 }
0x4776   :  { %v8060_v35 = vpop.permute.xlu1 %8059 }
0x4777   :  { %11251 = vmatmul.mubr.msk.f32.vlgmr.msra.gmra.mrb[106].mxu1 %vm831_vm1, %v8060_v35  ;;  %11262 = vmatmul.mubr.msk.f32.vlgmr.msra.gmra.mrb[64].mxu0 %vm831_vm1, %v8060_v35 }
0x4778   :  { %11961 = vmatpush3.bf16.msra.mxu1 %v14091_v16  ;;  %11272 = vmatprep.mubr.msk.f32.mxu1 %vm12579_vm0, %v12580_v42 }
0x4779   :  { %11962 = vmatprep.subr.bf16.mxu1 %v12578_v33  ;;  %11967 = vmatpush3.bf16.msra.mxu0 %v14047_v10 }
0x477a   :  { %11968 = vmatprep.subr.bf16.mxu0 %v12578_v33  ;;  %11283 = vmatprep.mubr.msk.f32.mxu0 %vm12579_vm0, %v12580_v42 }
0x477c   :  { %11964 = vmatpush3.bf16.msra.mxu1 %v14108_v20 }
0x477d   :  { %11971 = vmatprep.subr.bf16.mxu1 %v12578_v33  ;;  %11970 = vmatpush3.bf16.msra.mxu0 %v14059_v31 }
0x477e   :  { %11977 = vmatprep.subr.bf16.mxu0 %v12578_v33 }
0x477f   :  { %11273 = vmatmul.mubr.msk.f32.vlgmr.msra.gmra.mrb[108].mxu1 %vm831_vm1, %v8060_v35 }
0x4780   :  { %11973 = vmatpush3.bf16.msra.mxu1 %v14081_v12  ;;  %11294 = vmatprep.mubr.msk.f32.mxu1 %vm12579_vm0, %v12580_v42 }
0x4781   :  { %11974 = vmatprep.subr.bf16.mxu1 %v12578_v33 }
0x4784   :  { %11976 = vmatpush3.bf16.msra.mxu1 %v14102_v58 }
0x4785   :  { %11983 = vmatprep.subr.bf16.mxu1 %v12578_v33 }
0x484a   :  { %v8129_v54 = vpop.f32.mrb[106].mxu1  ;;  %v8199_v41 = vpop.f32.mrb[64].mxu0 }
0x484b   :  { %v8203_v38 = vadd.f32 %v8129_v54, %v14136_v8  ;;  %8211 = vrot.lane.b32.xlu1 %v8199_v41, %s12582_s27  ;;  %v11252_v39 = vpop.f32.mrb[107].mxu1  ;;  %v11263_v40 = vpop.f32.mrb[65].mxu0 }
0x484d   :  { %v9826_v34 = vmul.f32 -1.442695, %v8203_v38 }
0x484f   :  { %12497 = vpow2.f32 %v9826_v34 }
0x4852   :  { %v8287_v36 = vpop.f32.mrb[108].mxu1 }
0x4853   :  { %v11274_v47 = vpop.f32.mrb[109].mxu1  ;;  %v8288_v48 = vadd.f32 %v14144_v22, %v8287_v36 }
0x4859   :  { %v12498_v21 = vpop.eup %12497 }
0x485a   :  { %v8207_v24 = vadd.f32 1.0, %v12498_v21 }
0x485c   :  { %12499 = vrcp.f32 %v8207_v24 }
0x4866   :  { %v12500_v28 = vpop.eup %12499 }
0x4867   :  { %v8291_v51 = vmul.f32 %v12500_v28, %v8288_v48 }
0x4869   :  { %8293 = vrot.lane.b32.xlu0 %v8291_v51, %s12581_s26 }
0x48bd   :  { %v8212_v60 = vpop.permute.xlu1 %8211 }
0x48be   :  { %v8214_v56 = vadd.f32 %v8212_v60, %v14136_v8 }
0x48c0   :  { %v9827_v50 = vmul.f32 -1.442695, %v8214_v56 }
0x48db   :  { %v8294_v52 = vpop.permute.xlu0 %8293 }
0x48dc   :  { %v8296_v55 = vadd.f32 %v8294_v52, %v14136_v8 }
0x48de   :  { %12501 = vtanh.f32 %v8296_v55 }
0x48df   :  { %12503 = vpow2.f32 %v9827_v50 }
0x48e8   :  { %v12502_v44 = vpop.eup %12501 }
0x48e9   :  { %v8299_v59 = vrot.slane %v12502_v44, 6  ;;  %v12504_v0 = vpop.eup %12503 }
0x48ea   :  { %v8218_v46 = vadd.f32 1.0, %v12504_v0 }
0x48eb   :  { %v8301_v18 = vsub.f32 %v8056_v3, %v8299_v59 }
0x48ec   :  { %12505 = vrcp.f32 %v8218_v46 }
0x48ed   :  { %v8303_v5 = vrot.slane %v8301_v18, 2 }
0x48ef   :  { %8304 = vrot.lane.b32.xlu0 %v8303_v5, %s12583_s4 }
0x48f6   :  { %v12506_v1 = vpop.eup %12505 }
0x4961   :  { %v8305_v6 = vpop.permute.xlu0 %8304 }
0x4962   :  { %v8307_v19 = vmul.f32 %v12506_v1, %v8305_v6 }
0x4964   :  { %8309 = vrot.lane.b32.xlu1 %v8307_v19, %s12582_s27 }
0x49d6   :  { %v8310_v11 = vpop.permute.xlu1 %8309 }
0x49d7   :  { %v8312_v53 = vadd.f32 %v12502_v44, %v8310_v11 }
0x49d9   :  { %8314 = vrot.lane.b32.xlu0 %v8312_v53, %s12581_s26 }
0x4a4b   :  { %v8315_v7 = vpop.permute.xlu0 %8314 }
0x4a4c   :  { %11284 = vmatmul.mubr.msk.f32.vlgmr.msra.gmra.mrb[66].mxu0 %vm831_vm1, %v8315_v7  ;;  %11295 = vmatmul.mubr.msk.f32.vlgmr.msra.gmra.mrb[110].mxu1 %vm831_vm1, %v8315_v7 }
0x4a4d   :  { %11979 = vmatpush3.bf16.msra.mxu0 %v14091_v16  ;;  %11305 = vmatprep.mubr.msk.f32.mxu0 %vm12579_vm0, %v12580_v42 }
0x4a4e   :  { %11980 = vmatprep.subr.bf16.mxu0 %v12578_v33  ;;  %11985 = vmatpush3.bf16.msra.mxu1 %v14047_v10 }
0x4a4f   :  { %11986 = vmatprep.subr.bf16.mxu1 %v12578_v33  ;;  %11316 = vmatprep.mubr.msk.f32.mxu1 %vm12579_vm0, %v12580_v42 }
0x4a51   :  { %11982 = vmatpush3.bf16.msra.mxu0 %v14108_v20 }
0x4a52   :  { %11989 = vmatprep.subr.bf16.mxu0 %v12578_v33  ;;  %11988 = vmatpush3.bf16.msra.mxu1 %v14059_v31 }
0x4a53   :  { %11995 = vmatprep.subr.bf16.mxu1 %v12578_v33 }
0x4a54   :  { %11306 = vmatmul.mubr.msk.f32.vlgmr.msra.gmra.mrb[68].mxu0 %vm831_vm1, %v8315_v7 }
0x4a55   :  { %11991 = vmatpush3.bf16.msra.mxu0 %v14081_v12  ;;  %11327 = vmatprep.mubr.msk.f32.mxu0 %vm12579_vm0, %v12580_v42 }
0x4a56   :  { %11992 = vmatprep.subr.bf16.mxu0 %v12578_v33 }
0x4a59   :  { %11994 = vmatpush3.bf16.msra.mxu0 %v14102_v58 }
0x4a5a   :  { %12001 = vmatprep.subr.bf16.mxu0 %v12578_v33 }
0x4b1f   :  { %v8384_v8 = vpop.f32.mrb[66].mxu0  ;;  %v8454_v9 = vpop.f32.mrb[110].mxu1 }
0x4b20   :  { %v8459_v15 = vrot.slane %v8384_v8, 2  ;;  %v8469_v57 = vrot.slane %v8454_v9, 2  ;;  %v11285_v17 = vpop.f32.mrb[67].mxu0  ;;  %v11296_v14 = vpop.f32.mrb[111].mxu1 }
0x4b22   :  { %v8461_v37 = vadd.f32 %v8459_v15, %v13839_v63  ;;  %8470 = vrot.lane.b32.xlu0 %v8469_v57, %s12582_s27 }
0x4b24   :  { %v9831_v62 = vmul.f32 -1.442695, %v8461_v37 }
0x4b26   :  { %12507 = vpow2.f32 %v9831_v62 }
0x4b27   :  { %v8546_v26 = vpop.f32.mrb[68].mxu0 }
0x4b28   :  { %v11307_v2 = vpop.f32.mrb[69].mxu0  ;;  %v8547_v30 = vadd.f32 %v14144_v22, %v8546_v26 }
0x4b2a   :  { %v8551_v25 = vrot.slane %v8547_v30, 2 }
0x4b30   :  { %v12508_v49 = vpop.eup %12507 }
0x4b31   :  { %v8465_v61 = vadd.f32 1.0, %v12508_v49 }
0x4b33   :  { %12509 = vrcp.f32 %v8465_v61 }
0x4b3d   :  { %v12510_v13 = vpop.eup %12509 }
0x4b3e   :  { %v8553_v32 = vmul.f32 %v12510_v13, %v8551_v25 }
0x4b40   :  { %8555 = vrot.lane.b32.xlu1 %v8553_v32, %s12581_s26 }
0x4b94   :  { %v8471_v38 = vpop.permute.xlu0 %8470 }
0x4b95   :  { %v8473_v39 = vadd.f32 %v8471_v38, %v13839_v63 }
0x4b97   :  { %v9832_v40 = vmul.f32 -1.442695, %v8473_v39 }
0x4bb2   :  { %v8556_v4 = vpop.permute.xlu1 %8555 }
0x4bb3   :  { %v8558_v3 = vadd.f32 %v8556_v4, %v13839_v63 }
0x4bb5   :  { %12511 = vtanh.f32 %v8558_v3 }
0x4bb6   :  { %12513 = vpow2.f32 %v9832_v40 }
0x4bbf   :  { %v12512_v29 = vpop.eup %12511 }
0x4bc0   :  { %v8561_v35 = vrot.slane %v12512_v29, 6  ;;  %v12514_v34 = vpop.eup %12513 }
0x4bc1   :  { %v8477_v36 = vadd.f32 1.0, %v12514_v34 }
0x4bc2   :  { %v8563_v54 = vsub.f32 %v8312_v53, %v8561_v35 }
0x4bc3   :  { %12515 = vrcp.f32 %v8477_v36 }
0x4bc4   :  { %v8565_v41 = vrot.slane %v8563_v54, 2 }
0x4bc6   :  { %8566 = vrot.lane.b32.xlu1 %v8565_v41, %s12583_s4 }
0x4bcd   :  { %v12516_v47 = vpop.eup %12515 }
0x4c38   :  { %v8567_v21 = vpop.permute.xlu1 %8566 }
0x4c39   :  { %v8569_v24 = vmul.f32 %v12516_v47, %v8567_v21 }
0x4c3b   :  { %8571 = vrot.lane.b32.xlu0 %v8569_v24, %s12582_s27 }
0x4cad   :  { %v8572_v48 = vpop.permute.xlu0 %8571 }
0x4cae   :  { %v8574_v28 = vadd.f32 %v12512_v29, %v8572_v48 }
0x4cb0   :  { %v8576_v51 = vrot.slane %v8574_v28, 6 }
0x4cb2   :  { %8577 = vrot.lane.b32.xlu1 %v8576_v51, %s12581_s26 }
0x4d24   :  { %v8578_v52 = vpop.permute.xlu1 %8577 }
0x4d25   :  { %11317 = vmatmul.mubr.msk.f32.vlgmr.msra.gmra.mrb[112].mxu1 %vm831_vm1, %v8578_v52  ;;  %11328 = vmatmul.mubr.msk.f32.vlgmr.msra.gmra.mrb[70].mxu0 %vm831_vm1, %v8578_v52 }
0x4d26   :  { %11997 = vmatpush3.bf16.msra.mxu1 %v14091_v16  ;;  %11338 = vmatprep.mubr.msk.f32.mxu1 %vm12579_vm0, %v12580_v42 }
0x4d27   :  { %11998 = vmatprep.subr.bf16.mxu1 %v12578_v33  ;;  %12003 = vmatpush3.bf16.msra.mxu0 %v14047_v10 }
0x4d28   :  { %12004 = vmatprep.subr.bf16.mxu0 %v12578_v33  ;;  %11349 = vmatprep.mubr.msk.f32.mxu0 %vm12579_vm0, %v12580_v42 }
0x4d2a   :  { %12000 = vmatpush3.bf16.msra.mxu1 %v14108_v20 }
0x4d2b   :  { %12007 = vmatprep.subr.bf16.mxu1 %v12578_v33  ;;  %12006 = vmatpush3.bf16.msra.mxu0 %v14059_v31 }
0x4d2c   :  { %12013 = vmatprep.subr.bf16.mxu0 %v12578_v33 }
0x4d2d   :  { %11339 = vmatmul.mubr.msk.f32.vlgmr.msra.gmra.mrb[114].mxu1 %vm831_vm1, %v8578_v52 }
0x4d2e   :  { %12009 = vmatpush3.bf16.msra.mxu1 %v14081_v12  ;;  %11360 = vmatprep.mubr.msk.f32.mxu1 %vm12579_vm0, %v12580_v42 }
0x4d2f   :  { %12010 = vmatprep.subr.bf16.mxu1 %v12578_v33 }
0x4d32   :  { %12012 = vmatpush3.bf16.msra.mxu1 %v14102_v58 }
0x4d33   :  { %12019 = vmatprep.subr.bf16.mxu1 %v12578_v33 }
0x4df8   :  { %v8647_v55 = vpop.f32.mrb[112].mxu1  ;;  %v8717_v44 = vpop.f32.mrb[70].mxu0 }
0x4df9   :  { %v8722_v59 = vrot.slane %v8647_v55, 4  ;;  %v8732_v18 = vrot.slane %v8717_v44, 4  ;;  %v11318_v5 = vpop.f32.mrb[113].mxu1  ;;  %v11329_v60 = vpop.f32.mrb[71].mxu0 }
0x4dfb   :  { %v8724_v56 = vadd.f32 %v8722_v59, %v13839_v63  ;;  %8733 = vrot.lane.b32.xlu1 %v8732_v18, %s12582_s27 }
0x4dfd   :  { %v9836_v50 = vmul.f32 -1.442695, %v8724_v56 }
0x4dff   :  { %12517 = vpow2.f32 %v9836_v50 }
0x4e00   :  { %v8809_v0 = vpop.f32.mrb[114].mxu1 }
0x4e01   :  { %v11340_v46 = vpop.f32.mrb[115].mxu1  ;;  %v8810_v19 = vadd.f32 %v14144_v22, %v8809_v0 }
0x4e03   :  { %v8814_v11 = vrot.slane %v8810_v19, 4 }
0x4e09   :  { %v12518_v1 = vpop.eup %12517 }
0x4e0a   :  { %v8728_v6 = vadd.f32 1.0, %v12518_v1 }
0x4e0c   :  { %12519 = vrcp.f32 %v8728_v6 }
0x4e16   :  { %v12520_v53 = vpop.eup %12519 }
0x4e17   :  { %v8816_v7 = vmul.f32 %v12520_v53, %v8814_v11  ;;  %v7151_v11 = vrot.slane %v14131_v45, 2 }
0x4e19   :  { %8818 = vrot.lane.b32.xlu0 %v8816_v7, %s12581_s26 }
0x4e6d   :  { %v8734_v37 = vpop.permute.xlu1 %8733 }
0x4e6e   :  { %v8736_v62 = vadd.f32 %v8734_v37, %v13839_v63 }
0x4e70   :  { %v9837_v26 = vmul.f32 -1.442695, %v8736_v62 }
0x4e8b   :  { %v8819_v8 = vpop.permute.xlu0 %8818 }
0x4e8c   :  { %v8821_v9 = vadd.f32 %v8819_v8, %v13839_v63 }
0x4e8e   :  { %12521 = vtanh.f32 %v8821_v9 }
0x4e8f   :  { %12523 = vpow2.f32 %v9837_v26 }
0x4e98   :  { %v12522_v15 = vpop.eup %12521 }
0x4e99   :  { %v8824_v57 = vrot.slane %v12522_v15, 6  ;;  %v12524_v2 = vpop.eup %12523 }
0x4e9a   :  { %v8740_v49 = vadd.f32 1.0, %v12524_v2 }
0x4e9b   :  { %v8826_v17 = vsub.f32 %v8574_v28, %v8824_v57 }
0x4e9c   :  { %12525 = vrcp.f32 %v8740_v49 }
0x4e9d   :  { %v8828_v14 = vrot.slane %v8826_v17, 2 }
0x4e9f   :  { %8829 = vrot.lane.b32.xlu0 %v8828_v14, %s12583_s4 }
0x4ea6   :  { %v12526_v61 = vpop.eup %12525 }
0x4f11   :  { %v8830_v30 = vpop.permute.xlu0 %8829 }
0x4f12   :  { %v8832_v25 = vmul.f32 %v12526_v61, %v8830_v30 }
0x4f14   :  { %8834 = vrot.lane.b32.xlu1 %v8832_v25, %s12582_s27 }
0x4f86   :  { %v8835_v13 = vpop.permute.xlu1 %8834 }
0x4f87   :  { %v8837_v32 = vadd.f32 %v12522_v15, %v8835_v13 }
0x4f89   :  { %v8839_v4 = vrot.slane %v8837_v32, 4 }
0x4f8b   :  { %8840 = vrot.lane.b32.xlu0 %v8839_v4, %s12581_s26 }
0x4ffd   :  { %v8841_v3 = vpop.permute.xlu0 %8840 }
0x4ffe   :  { %11350 = vmatmul.mubr.msk.f32.vlgmr.msra.gmra.mrb[72].mxu0 %vm831_vm1, %v8841_v3  ;;  %11361 = vmatmul.mubr.msk.f32.vlgmr.msra.gmra.mrb[116].mxu1 %vm831_vm1, %v8841_v3 }
0x4fff   :  { %12015 = vmatpush3.bf16.msra.mxu0 %v14091_v16  ;;  %11371 = vmatprep.mubr.msk.f32.mxu0 %vm12579_vm0, %v12580_v42 }
0x5000   :  { %12016 = vmatprep.subr.bf16.mxu0 %v12578_v33  ;;  %12021 = vmatpush3.bf16.msra.mxu1 %v14047_v10 }
0x5001   :  { %12022 = vmatprep.subr.bf16.mxu1 %v12578_v33  ;;  %11382 = vmatprep.mubr.msk.f32.mxu1 %vm12579_vm0, %v12580_v42 }
0x5003   :  { %12018 = vmatpush3.bf16.msra.mxu0 %v14108_v20 }
0x5004   :  { %12025 = vmatprep.subr.bf16.mxu0 %v12578_v33  ;;  %12024 = vmatpush3.bf16.msra.mxu1 %v14059_v31 }
0x5005   :  { %12031 = vmatprep.subr.bf16.mxu1 %v12578_v33 }
0x5006   :  { %11372 = vmatmul.mubr.msk.f32.vlgmr.msra.gmra.mrb[74].mxu0 %vm831_vm1, %v8841_v3 }
0x5007   :  { %12027 = vmatpush3.bf16.msra.mxu0 %v14081_v12  ;;  %11393 = vmatprep.mubr.msk.f32.mxu0 %vm12579_vm0, %v12580_v42 }
0x5008   :  { %12028 = vmatprep.subr.bf16.mxu0 %v12578_v33 }
0x500b   :  { %12030 = vmatpush3.bf16.msra.mxu0 %v14102_v58 }
0x500c   :  { %12037 = vmatprep.subr.bf16.mxu0 %v12578_v33 }
0x50d1   :  { %v8910_v10 = vpop.f32.mrb[72].mxu0  ;;  %v8980_v29 = vpop.f32.mrb[116].mxu1 }
0x50d2   :  { %v8985_v35 = vrot.slane %v8910_v10, 6  ;;  %v8995_v54 = vrot.slane %v8980_v29, 6  ;;  %v11351_v31 = vpop.f32.mrb[73].mxu0  ;;  %v11362_v41 = vpop.f32.mrb[117].mxu1 }
0x50d4   :  { %v8987_v38 = vadd.f32 %v8985_v35, %v13839_v63  ;;  %8996 = vrot.lane.b32.xlu0 %v8995_v54, %s12582_s27 }
0x50d6   :  { %v9841_v12 = vmul.f32 -1.442695, %v8987_v38 }
0x50d8   :  { %12527 = vpow2.f32 %v9841_v12 }
0x50d9   :  { %v9072_v39 = vpop.f32.mrb[74].mxu0 }
0x50da   :  { %v11373_v40 = vpop.f32.mrb[75].mxu0  ;;  %v9073_v58 = vadd.f32 %v14144_v22, %v9072_v39 }
0x50dc   :  { %v9077_v47 = vrot.slane %v9073_v58, 6  ;;  %v9368_v58 = vld [vmem:[%s14459_s13 + $0x8] sm:$0xff] }
0x50e2   :  { %v12528_v34 = vpop.eup %12527 }
0x50e3   :  { %v8991_v36 = vadd.f32 1.0, %v12528_v34 }
0x50e5   :  { %12529 = vrcp.f32 %v8991_v36  ;;  %v9367_v36 = vld [vmem:[%s14459_s13] sm:$0xff] }
0x50ef   :  { %v12530_v21 = vpop.eup %12529 }
0x50f0   :  { %v9079_v24 = vmul.f32 %v12530_v21, %v9077_v47  ;;  %v9369_v47 = vld [vmem:[%s14459_s13 + $0x10] sm:$0xff]  ;;  %v12038_v21 = vpack.c.bf16 %v9368_v58, %v9367_v36 }
0x50f2   :  { %9081 = vrot.lane.b32.xlu1 %v9079_v24, %s12581_s26 }
0x5146   :  { %v8997_v59 = vpop.permute.xlu0 %8996 }
0x5147   :  { %v8999_v18 = vadd.f32 %v8997_v59, %v13839_v63 }
0x5149   :  { %v9842_v5 = vmul.f32 -1.442695, %v8999_v18 }
0x5164   :  { %v9082_v48 = vpop.permute.xlu1 %9081 }
0x5165   :  { %v9084_v28 = vadd.f32 %v9082_v48, %v13839_v63  ;;  %v9371_v48 = vld [vmem:[%s14459_s13 + $0x20] sm:$0xff] }
0x5167   :  { %12531 = vtanh.f32 %v9084_v28  ;;  %v9372_v28 = vld [vmem:[%s14459_s13 + $0x28] sm:$0xff] }
0x5168   :  { %12533 = vpow2.f32 %v9842_v5  ;;  %v9373_v5 = vld [vmem:[%s14459_s13 + $0x30] sm:$0xff] }
0x5171   :  { %v12532_v51 = vpop.eup %12531 }
0x5172   :  { %v9087_v52 = vrot.slane %v12532_v51, 6  ;;  %v12534_v60 = vpop.eup %12533 }
0x5173   :  { %v9003_v56 = vadd.f32 1.0, %v12534_v60  ;;  %v9374_v60 = vld [vmem:[%s14459_s13 + $0x38] sm:$0xff] }
0x5174   :  { %v9089_v55 = vsub.f32 %v8837_v32, %v9087_v52 }
0x5175   :  { %12535 = vrcp.f32 %v9003_v56  ;;  %v12047_v56 = vpack.c.bf16 %v9374_v60, %v9373_v5 }
0x5176   :  { %v9091_v44 = vrot.slane %v9089_v55, 2 }
0x5178   :  { %9092 = vrot.lane.b32.xlu1 %v9091_v44, %s12583_s4  ;;  %v12044_v44 = vpack.c.bf16 %v9372_v28, %v9371_v48 }
0x517f   :  { %v12536_v50 = vpop.eup %12535 }
0x51ea   :  { %v9093_v0 = vpop.permute.xlu1 %9092 }
0x51eb   :  { %v9095_v46 = vmul.f32 %v12536_v50, %v9093_v0  ;;  %v9457_v50 = vld [vmem:[%s14461_s15] sm:$0xff]  ;;  %v9458_v0 = vld [vmem:[%s14461_s15 + $0x8] sm:$0xff] }
0x51ed   :  { %9097 = vrot.lane.b32.xlu0 %v9095_v46, %s12582_s27  ;;  %v9459_v46 = vld [vmem:[%s14461_s15 + $0x10] sm:$0xff] }
0x525f   :  { %v9098_v1 = vpop.permute.xlu0 %9097 }
0x5260   :  { %v9100_v6 = vadd.f32 %v12532_v51, %v9098_v1  ;;  %v12050_v1 = vpack.c.bf16 %v9458_v0, %v9457_v50 }
0x5262   :  { %v9102_v19 = vrot.slane %v9100_v6, 2 }
0x5264   :  { %9103 = vrot.lane.b32.xlu1 %v9102_v19, %s12581_s26 }
0x5268   :  { %7237 = vrot.lane.b32.xlu1 %v14146_v23, %s12581_s26 }
0x526c   :  { %7152 = vrot.lane.b32.xlu1 %v7151_v11, %s12582_s27  ;;  %v9461_v11 = vld [vmem:[%s14461_s15 + $0x20] sm:$0xff] }
0x52d6   :  { %v9104_v53 = vpop.permute.xlu1 %9103 }
0x52d7   :  { %11383 = vmatmul.mubr.msk.f32.vlgmr.msra.gmra.mrb[118].mxu1 %vm831_vm1, %v9104_v53  ;;  %11394 = vmatmul.mubr.msk.f32.vlgmr.msra.gmra.mrb[76].mxu0 %vm831_vm1, %v9104_v53 }
0x52d8   :  { %12033 = vmatpush3.bf16.msra.mxu1 %v14091_v16  ;;  %11404 = vmatprep.mubr.msk.f32.mxu1 %vm12579_vm0, %v12580_v42 }
0x52d9   :  { %12034 = vmatprep.subr.bf16.mxu1 %v12578_v33  ;;  %11423 = vmatprep.mubr.msk.f32.mxu0 %vm12579_vm0, %v12580_v42 }
0x52da   :  { %v7238_v23 = vpop.permute.xlu1 %7237  ;;  %12039 = vmatpush3.bf16.msra.mxu0 %v12038_v21 }
0x52db   :  { %v7240_v45 = vadd.f32 %v7238_v23, %v13842_v43  ;;  %12040 = vmatprep.subr.bf16.mxu0 %v12578_v33 }
0x52dc   :  { %12036 = vmatpush3.bf16.msra.mxu1 %v14108_v20 }
0x52dd   :  { %12537 = vtanh.f32 %v7240_v45  ;;  %12049 = vmatprep.subr.bf16.mxu1 %v12578_v33 }
0x52de   :  { %v7153_v15 = vpop.permute.xlu1 %7152 }
0x52df   :  { %11405 = vmatmul.mubr.msk.f32.vlgmr.msra.gmra.mrb[120].mxu1 %vm831_vm1, %v9104_v53  ;;  %v7155_v20 = vadd.f32 %v7153_v15, %v13842_v43  ;;  %v9462_v53 = vld [vmem:[%s14461_s15 + $0x28] sm:$0xff] }
0x52e0   :  { %11442 = vmatprep.mubr.msk.f32.mxu1 %vm12579_vm0, %v12580_v42  ;;  %12051 = vmatpush3.bf16.msra.mxu1 %v12050_v1 }
0x52e1   :  { %v9801_v57 = vmul.f32 -1.442695, %v7155_v20  ;;  %12052 = vmatprep.subr.bf16.mxu1 %v12578_v33 }
0x52e3   :  { %12539 = vpow2.f32 %v9801_v57  ;;  %v9463_v57 = vld [vmem:[%s14461_s15 + $0x30] sm:$0xff] }
0x52e7   :  { %v14353_v16 = vpop.eup %12537 }
0x52e8   :  { %v7243_v7 = vrot.slane %v14353_v16, 2 }
0x52ea   :  { %v7245_v8 = vsub.f32 %v14037_v27, %v7243_v7 }
0x52ec   :  { %v7247_v9 = vrot.slane %v7245_v8, 6 }
0x52ed   :  { %v12540_v17 = vpop.eup %12539 }
0x52ee   :  { %7248 = vrot.lane.b32.xlu1 %v7247_v9, %s12583_s4  ;;  %v7159_v14 = vadd.f32 1.0, %v12540_v17  ;;  %v9464_v17 = vld [vmem:[%s14461_s15 + $0x38] sm:$0xff] }
0x52f0   :  { %12541 = vrcp.f32 %v7159_v14  ;;  %v12059_v14 = vpack.c.bf16 %v9464_v17, %v9463_v57 }
0x52fa   :  { %v12542_v37 = vpop.eup %12541 }
0x5360   :  { %v7249_v62 = vpop.permute.xlu1 %7248 }
0x5361   :  { %v7251_v42 = vmul.f32 %v12542_v37, %v7249_v62 }
0x5363   :  { %7253 = vrot.lane.b32.xlu1 %v7251_v42, %s12582_s27 }
0x53aa   :  { %v9173_v26 = vpop.f32.mrb[118].mxu1  ;;  %v9243_v2 = vpop.f32.mrb[76].mxu0 }
0x53ab   :  { %v9247_v27 = vadd.f32 %v9173_v26, %v13839_v63  ;;  %v11384_v49 = vpop.f32.mrb[119].mxu1  ;;  %v11395_v61 = vpop.f32.mrb[77].mxu0 }
0x53ad   :  { %v9846_v30 = vmul.f32 -1.442695, %v9247_v27 }
0x53af   :  { %12543 = vpow2.f32 %v9846_v30 }
0x53b2   :  { %v9331_v25 = vpop.f32.mrb[120].mxu1 }
0x53b3   :  { %v11406_v43 = vpop.f32.mrb[121].mxu1  ;;  %v9332_v4 = vadd.f32 %v14144_v22, %v9331_v25 }
0x53b9   :  { %v12544_v13 = vpop.eup %12543 }
0x53ba   :  { %v9251_v32 = vadd.f32 1.0, %v12544_v13 }
0x53bc   :  { %12545 = vrcp.f32 %v9251_v32 }
0x53c6   :  { %v12546_v3 = vpop.eup %12545 }
0x53c7   :  { %v9335_v10 = vmul.f32 %v12546_v3, %v9332_v4 }
0x53c9   :  { %9337 = vrot.lane.b32.xlu0 %v9335_v10, %s12581_s26 }
0x53cd   :  { %9255 = vrot.lane.b32.xlu0 %v9243_v2, %s12582_s27  ;;  %v9851_v2 = vld [vmem:[%s14462_s16] ss:$0 sm:$0xff] }
0x53d5   :  { %v7254_v59 = vpop.permute.xlu1 %7253 }
0x53d6   :  { %v7256_v18 = vadd.f32 %v14353_v16, %v7254_v59  ;;  %v12056_v16 = vpack.c.bf16 %v9462_v53, %v9461_v11 }
0x543b   :  { %v9338_v29 = vpop.permute.xlu0 %9337 }
0x543c   :  { %v9340_v35 = vadd.f32 %v9338_v29, %v13839_v63 }
0x543e   :  { %12547 = vtanh.f32 %v9340_v35 }
0x543f   :  { %v9256_v12 = vpop.permute.xlu0 %9255 }
0x5440   :  { %v9258_v39 = vadd.f32 %v9256_v12, %v13839_v63  ;;  %v9370_v63 = vld [vmem:[%s14459_s13 + $0x18] sm:$0xff] }
0x5441   :  { %v12041_v24 = vpack.c.bf16 %v9370_v63, %v9369_v47 }
0x5442   :  { %v9847_v22 = vmul.f32 -1.442695, %v9258_v39 }
0x5443   :  { %12042 = vmatpush3.bf16.msra.mxu0 %v12041_v24 }
0x5444   :  { %12549 = vpow2.f32 %v9847_v22  ;;  %12043 = vmatprep.subr.bf16.mxu0 %v12578_v33 }
0x5447   :  { %12045 = vmatpush3.bf16.msra.mxu0 %v12044_v44 }
0x5448   :  { %v12548_v54 = vpop.eup %12547  ;;  %12046 = vmatprep.subr.bf16.mxu0 %v12578_v33 }
0x5449   :  { %v9343_v31 = vrot.slane %v12548_v54, 6 }
0x544b   :  { %v9345_v41 = vsub.f32 %v9100_v6, %v9343_v31  ;;  %12048 = vmatpush3.bf16.msra.mxu0 %v12047_v56  ;;  %v9460_v6 = vld [vmem:[%s14461_s15 + $0x18] sm:$0xff]  ;;  %s12554_s15 = scalar_lea.vmem %s9554_s6, 32 }
0x544c   :  { %v12053_v19 = vpack.c.bf16 %v9460_v6, %v9459_v46  ;;  %p12555_p0 = scmp.ne.s32.totalorder %s9554_s6, %s12554_s15  ;;  %p12560_p2 = scmp.lt.s32.totalorder %s12554_s15, %s12554_s15 }
0x544d   :  { %v9347_v38 = vrot.slane %v9345_v41, 2 }
0x544e   :  { %v12550_v40 = vpop.eup %12549  ;;  %12054 = vmatpush3.bf16.msra.mxu1 %v12053_v19  ;;  %p12561_p3 = por %p12560_p2, %p12559_p1 }
0x544f   :  { %9348 = vrot.lane.b32.xlu0 %v9347_v38, %s12583_s4  ;;  %v9262_v34 = vadd.f32 1.0, %v12550_v40  ;;  %12055 = vmatprep.subr.bf16.mxu1 %v12578_v33 }
0x5450   :  { %p12562_p4 = pnand %p12561_p3, %p12555_p0 }
0x5451   :  { %12551 = vrcp.f32 %v9262_v34 }
0x5452   :  { %12057 = vmatpush3.bf16.msra.mxu1 %v12056_v16 }
0x5453   :  { %12058 = vmatprep.subr.bf16.mxu1 %v12578_v33  ;;  %v9849_v33 = vld [vmem:[%s14460_s14] ss:$0 sm:$0xff] }
0x5456   :  { %12060 = vmatpush3.bf16.msra.mxu1 %v12059_v14 }
0x545b   :  { %v12552_v51 = vpop.eup %12551 }
0x54c1   :  { %v9349_v52 = vpop.permute.xlu0 %9348 }
0x54c2   :  { %v9351_v55 = vmul.f32 %v12552_v51, %v9349_v52 }
0x54c4   :  { %9353 = vrot.lane.b32.xlu0 %v9351_v55, %s12582_s27 }
0x54c8   :  { %9358 = vrot.lane.b32.xlu0 %v7256_v18, %s12581_s26 }
0x5536   :  { %v9354_v23 = vpop.permute.xlu0 %9353 }
0x5537   :  { %v9356_v45 = vadd.f32 %v12548_v54, %v9354_v23 }
0x5539   :  { %v9362_v7 = vrot.slane %v9356_v45, 2 }
0x553a   :  { %v9359_v8 = vpop.permute.xlu0 %9358 }
0x553b   :  { %9363 = vrot.lane.b32.xlu1 %v9362_v7, %s12583_s4 }
0x55ad   :  { %v9364_v9 = vpop.permute.xlu1 %9363 }
0x55ae   :  { %v9366_v15 = vsel %vm831_vm1, %v9359_v8, %v9364_v9 }
0x55af   :  { %v9383_v20 = vrot.slane %v9366_v15, 6 }
0x55b1   :  { %11424 = vmatmul.mubr.msk.f32.vlgmr.msra.gmra.mrb[78].mxu0 %vm5074_vm5, %v9383_v20 }
0x5684   :  { %v9452_v37 = vpop.f32.mrb[78].mxu0 }
0x5685   :  { %v9453_v62 = vadd.f32 %v9849_v33, %v9452_v37  ;;  %v11425_v42 = vpop.f32.mrb[79].mxu0 }
0x5687   :  { %v9456_v26 = vmax.f32 %v9453_v62, 0.0 }
0x5689   :  { %11443 = vmatmul.mubr.msk.f32.vlgmr.msra.gmra.mrb[122].mxu1 %vm5074_vm5, %v9456_v26 }
0x575c   :  { %v9541_v27 = vpop.f32.mrb[122].mxu1 }
0x575d   :  { %v9542_v49 = vadd.f32 %v9851_v2, %v9541_v27  ;;  %v11444_v61 = vpop.f32.mrb[123].mxu1 }
0x575f   :  { %9546 = vst.msk [vmem:[#allocation2] sm:$0x3] %vm9545_vm6, %v9542_v49 }
0x5760   :  { %12565 = shalt.err (!%p12562_p4)
}
0x5761   :  { %s12566_s22 = scalar_lea.hbm %s14463_s17, 32 }
0x5762   :  { %p12567_p5 = scmp.ne.s32.totalorder %s14463_s17, %s12566_s22  ;;  %p12570_p6 = scmp.lt.u32.totalorder %s12566_s22, %s14463_s17 }
0x5764   :  { %p12572_p7 = pnand %p12570_p6, %p12567_p5 }
0x5766   :  { %12575 = shalt.err (!%p12572_p7)
}
0x5767   :  { %9556 = dma.vmem_to_hbm [thread:$0]  %s9554_s6, 32, %s14463_s17, [#allocation3]  }
0x5768   :  { %12576 = dma.done.wait [#allocation3], 32  }
0x5769   :  { %12577 = vsyncadd [#allocation3], 4294967264 }
0x576a   :  { %9560 = vsyncpa [#allocation3], 1 }

</bundles_post_ra>
